<compile_context>
chip_gen: v7x
topology: tpu7x:2x2x1
jax: 0.10.0
libtpu: 0.0.40
codegen_flags: <defaults>
</compile_context>

<pallas_src>
import numpy as np
import jax
import jax.numpy as jnp
from jax.experimental import pallas as pl
from jax.experimental.pallas import tpu as pltpu

# Both the kernel and the pure-JAX reference use true f32 matmuls so the 1e-4 numerical
# parity check below stays meaningful (the fused/hoisted kernel matmuls no longer mirror
# the reference's per-step matmul structure, so reduced default precision would drift).
# For production shapes on v6e/v7x, cast the fused weights + matmul LHS to bf16 (keep
# preferred_element_type=f32); kept f32 here to preserve strict parity with the reference.
jax.config.update("jax_default_matmul_precision", "highest")

NEG_BIG = -1e30  # numerically identical to masked_fill(-inf) after softmax


def att_blstm_kernel(xcat_ref, mcat_ref, wih_ref, whh_ref, b_ref,
                     attw_ref, wd_ref, bd_ref,
                     out_ref,
                     gx_ref, hf_ref, hb_ref):
    T, B, twoH = mcat_ref.shape
    H = twoH // 2

    # ---- hoisted input projection: ONE (T*B, 2D) @ (2D, 8H) matmul (+ bias) ----
    gx_ref[...] = (jnp.dot(xcat_ref[...], wih_ref[...],
                           preferred_element_type=jnp.float32)
                   + b_ref[...])

    whh = whh_ref[...]                                   # (2H, 8H), loaded once

    # Static lane mask: the 'g' gate (tanh) occupies fused columns [4H, 6H).
    lane = jax.lax.broadcasted_iota(jnp.int32, (B, 8 * H), 1)
    is_g = jnp.logical_and(lane >= 4 * H, lane < 6 * H)

    # ---- fused fwd+bwd recurrence, fully unrolled; (h, c) live in vregs ----
    h = jnp.zeros((B, twoH), jnp.float32)                # [h_fwd | h_bwd]
    c = jnp.zeros((B, twoH), jnp.float32)
    for s in range(T):                                   # static indices everywhere
        gates = gx_ref[s * B:(s + 1) * B, :] + jnp.dot(
            h, whh, preferred_element_type=jnp.float32)  # (B, 8H)
        act = jnp.where(is_g, jnp.tanh(gates), jax.nn.sigmoid(gates))
        i_g = act[:, 0 * H:2 * H]
        f_g = act[:, 2 * H:4 * H]
        g_g = act[:, 4 * H:6 * H]
        o_g = act[:, 6 * H:8 * H]
        c_new = f_g * c + i_g * g_g
        h_new = o_g * jnp.tanh(c_new)
        valid = mcat_ref[s] > 0.0                        # (B, 2H)
        h_out = jnp.where(valid, h_new, 0.0)             # padding_value = 0.0
        h = jnp.where(valid, h_new, h)                   # padded step: state frozen
        c = jnp.where(valid, c_new, c)
        hf_ref[s] = h_out[:, :H]                         # fwd output belongs to time s
        hb_ref[T - 1 - s] = h_out[:, H:]                 # bwd output belongs to time T-1-s

    # ---- attention over time (h.view(..., 2, H).sum(2) == hf + hb) ----
    hs = hf_ref[...] + hb_ref[...]                       # (T, B, H)
    msk = mcat_ref[:, :, 0:1]                            # (T, B, 1) forward-time mask
    attw = attw_ref[...]                                 # (1, H)

    score = jnp.sum(jnp.tanh(hs) * attw[None, :, :], axis=-1,
                    keepdims=True)                       # (T, B, 1)
    score = jnp.where(msk > 0.0, score, NEG_BIG)
    s_max = jnp.max(score, axis=0, keepdims=True)        # (1, B, 1)
    p = jnp.exp(score - s_max)
    # NOTE: pl.reciprocal(approx=True) would use the otherwise-idle EUP slot, but its
    # extra error breaks the strict 1e-4 parity check; this epilogue runs exactly once,
    # so the exact reciprocal is kept.
    alpha = p * pl.reciprocal(jnp.sum(p, axis=0, keepdims=True), approx=False)
    reps = jnp.tanh(jnp.sum(hs * alpha, axis=0))         # (B, H)

    # ---- dense + class softmax ----
    logits = jnp.dot(reps, wd_ref[...],
                     preferred_element_type=jnp.float32) + bd_ref[...]   # (B, C)
    e = jnp.exp(logits - jnp.max(logits, axis=1, keepdims=True))
    out_ref[...] = e * pl.reciprocal(jnp.sum(e, axis=1, keepdims=True), approx=False)


def fuse_lstm_weights(wih_f, whh_f, b_f, wih_b, whh_b, b_b):
    """Fused gate-major, block-diagonal bidirectional LSTM weights.

    Column order is gate-major: [i_f,i_b, f_f,f_b, g_f,g_b, o_f,o_b] (each block H wide),
    so with state packed as [h_fwd | h_bwd] every gate is a contiguous 2H slab.
    """
    D, fourH = wih_f.shape
    H = fourH // 4
    zD = jnp.zeros((D, H), jnp.float32)
    zH = jnp.zeros((H, H), jnp.float32)
    wih_cols, whh_cols, b_cols = [], [], []
    for k in range(4):                                   # PyTorch gate order i, f, g, o
        src = slice(k * H, (k + 1) * H)
        wih_cols += [jnp.concatenate([wih_f[:, src], zD], axis=0),
                     jnp.concatenate([zD, wih_b[:, src]], axis=0)]
        whh_cols += [jnp.concatenate([whh_f[:, src], zH], axis=0),
                     jnp.concatenate([zH, whh_b[:, src]], axis=0)]
        b_cols += [b_f[:, src], b_b[:, src]]
    return (jnp.concatenate(wih_cols, axis=1),           # (2D, 8H)
            jnp.concatenate(whh_cols, axis=1),           # (2H, 8H)
            jnp.concatenate(b_cols, axis=1))             # (1, 8H)


def att_blstm_forward(emb_tbd, mask_tb1, params):
    T, B, D = emb_tbd.shape
    H = params["whh_f"].shape[0]
    C = params["wd"].shape[1]

    wih_big, whh_blk, b_cat = fuse_lstm_weights(
        params["wih_f"], params["whh_f"], params["b_f"],
        params["wih_b"], params["whh_b"], params["b_b"])

    # Glue (layout plumbing, done once per call):
    #   xcat row t*B+b = [emb[t,b,:] | emb[T-1-t,b,:]] -> both directions' input
    #   projections collapse into ONE matmul against the block-diagonal (2D, 8H) weight.
    xcat = jnp.concatenate([emb_tbd, emb_tbd[::-1]], axis=-1).reshape(T * B, 2 * D)
    #   mcat[t] = [mask[t] broadcast over H | mask[T-1-t] broadcast over H]
    mcat = jnp.concatenate([jnp.broadcast_to(mask_tb1, (T, B, H)),
                            jnp.broadcast_to(mask_tb1[::-1], (T, B, H))], axis=-1)

    vspec = pl.BlockSpec(memory_space=pltpu.MemorySpace.VMEM)
    # TODO(synk): at production T/B/H on v7x (64 MiB VMEM, 2 TCs) tile the batch over a
    # "parallel" grid axis, store hf/hb in bf16 and stream emb over T with a manual
    # double buffer; everything comfortably fits resident at these toy shapes.
    return pl.pallas_call(
        att_blstm_kernel,
        out_shape=jax.ShapeDtypeStruct((B, C), jnp.float32),
        in_specs=[vspec] * 8,
        out_specs=vspec,
        scratch_shapes=[
            pltpu.VMEM((T * B, 8 * H), jnp.float32),     # hoisted input-gate projections
            pltpu.VMEM((T, B, H), jnp.float32),          # masked fwd outputs (time-indexed)
            pltpu.VMEM((T, B, H), jnp.float32),          # masked bwd outputs (time-indexed)
        ],
        compiler_params=pltpu.CompilerParams(vmem_limit_bytes=32 * 1024 * 1024),
    )(xcat, mcat, wih_big, whh_blk, b_cat,
      params["attw"], params["wd"], params["bd"])


def reference_forward(emb_btd, mask_bt, p):
    """Pure-JAX reference of the same (inference-mode) forward pass."""
    B, T, D = emb_btd.shape
    H = p["whh_f"].shape[0]

    def run(direction):
        wih, whh, b = ((p["wih_f"], p["whh_f"], p["b_f"]) if direction == "f"
                       else (p["wih_b"], p["whh_b"], p["b_b"]))
        h = jnp.zeros((B, H), jnp.float32)
        c = jnp.zeros((B, H), jnp.float32)
        outs = [None] * T
        order = range(T) if direction == "f" else range(T - 1, -1, -1)
        for t in order:
            x = emb_btd[:, t, :]
            gates = x @ wih + h @ whh + b
            i = jax.nn.sigmoid(gates[:, :H])
            f = jax.nn.sigmoid(gates[:, H:2 * H])
            g = jnp.tanh(gates[:, 2 * H:3 * H])
            o = jax.nn.sigmoid(gates[:, 3 * H:4 * H])
            c_new = f * c + i * g
            h_new = o * jnp.tanh(c_new)
            m = mask_bt[:, t:t + 1]
            outs[t] = m * h_new
            h = m * h_new + (1 - m) * h
            c = m * c_new + (1 - m) * c
        return jnp.stack(outs, axis=1)                   # (B, T, H)

    hsum = run("f") + run("b")                           # (B, T, H)
    score = jnp.sum(jnp.tanh(hsum) * p["attw"][None, :, :], axis=-1)  # (B, T)
    score = jnp.where(mask_bt > 0, score, NEG_BIG)
    alpha = jax.nn.softmax(score, axis=1)
    reps = jnp.tanh(jnp.einsum("bth,bt->bh", hsum, alpha))
    logits = reps @ p["wd"] + p["bd"]
    return jax.nn.softmax(logits, axis=1)


if __name__ == "__main__":
    # Small, module-consistent shapes.
    V, D, H, C = 20, 32, 32, 5     # vocab, embedding_dim, hidden_dim, class_num
    B, T = 2, 8                    # batch, max sentence length

    key = jax.random.PRNGKey(0)
    ks = jax.random.split(key, 12)

    emb_table = 0.5 * jax.random.normal(ks[0], (V, D), jnp.float32)
    sentences = jax.random.randint(ks[1], (B, T), 0, V)              # int token ids
    lengths = jnp.array([T, T - 3], dtype=jnp.int32)                 # right-padded
    mask_bt = (jnp.arange(T)[None, :] < lengths[:, None]).astype(jnp.float32)  # (B, T)

    scale = 0.1
    params = {
        "wih_f": scale * jax.random.normal(ks[2], (D, 4 * H), jnp.float32),
        "whh_f": scale * jax.random.normal(ks[3], (H, 4 * H), jnp.float32),
        "b_f":   scale * jax.random.normal(ks[4], (1, 4 * H), jnp.float32),
        "wih_b": scale * jax.random.normal(ks[5], (D, 4 * H), jnp.float32),
        "whh_b": scale * jax.random.normal(ks[6], (H, 4 * H), jnp.float32),
        "b_b":   scale * jax.random.normal(ks[7], (1, 4 * H), jnp.float32),
        "attw":  jax.random.normal(ks[8], (1, H), jnp.float32),       # torch.randn(1, H, 1)
        "wd":    (jnp.sqrt(2.0 / (H + C))
                  * jax.random.normal(ks[9], (H, C), jnp.float32)),   # xavier_normal_
        "bd":    jnp.zeros((1, C), jnp.float32),                      # init.constant_(0.0)
    }

    # Glue: embedding lookup + transpose to the kernel's time-major layout.
    emb_btd = jnp.take(emb_table, sentences, axis=0)                  # (B, T, D)
    emb_tbd = jnp.transpose(emb_btd, (1, 0, 2))                       # (T, B, D)
    mask_tb1 = jnp.transpose(mask_bt, (1, 0))[:, :, None]             # (T, B, 1)

    scores = att_blstm_forward(emb_tbd, mask_tb1, params)
    scores = jax.block_until_ready(scores)

    ref = jax.block_until_ready(reference_forward(emb_btd, mask_bt, params))

    assert scores.shape == (B, C)
    np.testing.assert_allclose(np.asarray(scores), np.asarray(ref),
                               rtol=1e-4, atol=1e-4)
    np.testing.assert_allclose(np.asarray(scores).sum(axis=1),
                               np.ones(B), rtol=1e-5, atol=1e-5)
    print("KERNEL_OK")
</pallas_src>

<mosaic_0001>
module attributes {stable_mosaic.version = 11 : i64} {
  func.func @att_blstm_kernel(%arg0: memref<16x64xf32, #tpu.memory_space<vmem>>, %arg1: memref<8x2x64xf32, #tpu.memory_space<vmem>>, %arg2: memref<64x256xf32, #tpu.memory_space<vmem>>, %arg3: memref<64x256xf32, #tpu.memory_space<vmem>>, %arg4: memref<1x256xf32, #tpu.memory_space<vmem>>, %arg5: memref<1x32xf32, #tpu.memory_space<vmem>>, %arg6: memref<32x5xf32, #tpu.memory_space<vmem>>, %arg7: memref<1x5xf32, #tpu.memory_space<vmem>>, %arg8: memref<2x5xf32, #tpu.memory_space<vmem>>, %arg9: memref<16x256xf32, #tpu.memory_space<vmem>>, %arg10: memref<8x2x32xf32, #tpu.memory_space<vmem>>, %arg11: memref<8x2x32xf32, #tpu.memory_space<vmem>>) attributes {dimension_semantics = [], scalar_prefetch = 0 : i64, scratch_operands = 3 : i64, tpu.core_type = #tpu.core_type<tc>} {
    %c0 = arith.constant 0 : index
    %c0_0 = arith.constant 0 : index
    %0 = vector.load %arg0[%c0, %c0_0] : memref<16x64xf32, #tpu.memory_space<vmem>>, vector<16x64xf32>
    %c0_1 = arith.constant 0 : index
    %c0_2 = arith.constant 0 : index
    %1 = vector.load %arg2[%c0_1, %c0_2] : memref<64x256xf32, #tpu.memory_space<vmem>>, vector<64x256xf32>
    %cst = arith.constant dense<0.000000e+00> : vector<16x256xf32>
    %2 = tpu.matmul %0, %1, %cst {dimension_numbers = #tpu.dot_dimension_numbers<[1], [0], [0], [1], [0, 0, 1, 1], [], []>, precision = #tpu.contract_precision<fp32>} : vector<16x64xf32>, vector<64x256xf32>, vector<16x256xf32> -> vector<16x256xf32>
    %c0_3 = arith.constant 0 : index
    %c0_4 = arith.constant 0 : index
    %3 = vector.load %arg4[%c0_3, %c0_4] : memref<1x256xf32, #tpu.memory_space<vmem>>, vector<1x256xf32>
    %4 = vector.broadcast %3 : vector<1x256xf32> to vector<16x256xf32>
    %5 = arith.addf %2, %4 : vector<16x256xf32>
    %c0_5 = arith.constant 0 : index
    %c0_6 = arith.constant 0 : index
    %6 = vector.load %arg9[%c0_5, %c0_6] : memref<16x256xf32, #tpu.memory_space<vmem>>, vector<16x256xf32>
    tpu.vector_store %arg9[%c0_5, %c0_6], %5 {strides = array<i32>} : memref<16x256xf32, #tpu.memory_space<vmem>>, vector<16x256xf32>,
    %c0_7 = arith.constant 0 : index
    %c0_8 = arith.constant 0 : index
    %7 = vector.load %arg3[%c0_7, %c0_8] : memref<64x256xf32, #tpu.memory_space<vmem>>, vector<64x256xf32>
    %8 = tpu.iota {dimensions = array<i32: 1>} : vector<2x256xi32>
    %c128_i32 = arith.constant 128 : i32
    %9 = vector.broadcast %c128_i32 : i32 to vector<2x256xi32>
    %10 = arith.cmpi sge, %8, %9 : vector<2x256xi32>
    %c192_i32 = arith.constant 192 : i32
    %11 = vector.broadcast %c192_i32 : i32 to vector<2x256xi32>
    %12 = arith.cmpi slt, %8, %11 : vector<2x256xi32>
    %13 = arith.andi %10, %12 : vector<2x256xi1>
    %cst_9 = arith.constant 0.000000e+00 : f32
    %14 = vector.broadcast %cst_9 : f32 to vector<2x64xf32>
    %cst_10 = arith.constant 0.000000e+00 : f32
    %15 = vector.broadcast %cst_10 : f32 to vector<2x64xf32>
    %c0_11 = arith.constant 0 : index
    %c0_12 = arith.constant 0 : index
    %16 = vector.load %arg9[%c0_11, %c0_12] : memref<16x256xf32, #tpu.memory_space<vmem>>, vector<2x256xf32>
    %cst_13 = arith.constant dense<0.000000e+00> : vector<2x256xf32>
    %17 = tpu.matmul %14, %7, %cst_13 {dimension_numbers = #tpu.dot_dimension_numbers<[1], [0], [0], [1], [0, 0, 1, 1], [], []>, precision = #tpu.contract_precision<fp32>} : vector<2x64xf32>, vector<64x256xf32>, vector<2x256xf32> -> vector<2x256xf32>
    %18 = arith.addf %16, %17 : vector<2x256xf32>
    %19 = math.tanh %18 : vector<2x256xf32>
    %20 = arith.negf %18 : vector<2x256xf32>
    %21 = math.exp %20 : vector<2x256xf32>
    %cst_14 = arith.constant 1.000000e+00 : f32
    %22 = vector.broadcast %cst_14 : f32 to vector<2x256xf32>
    %23 = arith.addf %22, %21 : vector<2x256xf32>
    %24 = arith.divf %22, %23 : vector<2x256xf32>
    %25 = arith.select %13, %19, %24 : vector<2x256xi1>, vector<2x256xf32>
    %26 = vector.extract_strided_slice %25 {offsets = [0, 0], sizes = [2, 64], strides = [1, 1]} : vector<2x256xf32> to vector<2x64xf32>
    %27 = vector.extract_strided_slice %25 {offsets = [0, 64], sizes = [2, 64], strides = [1, 1]} : vector<2x256xf32> to vector<2x64xf32>
    %28 = vector.extract_strided_slice %25 {offsets = [0, 128], sizes = [2, 64], strides = [1, 1]} : vector<2x256xf32> to vector<2x64xf32>
    %29 = vector.extract_strided_slice %25 {offsets = [0, 192], sizes = [2, 64], strides = [1, 1]} : vector<2x256xf32> to vector<2x64xf32>
    %30 = arith.mulf %27, %15 : vector<2x64xf32>
    %31 = arith.mulf %26, %28 : vector<2x64xf32>
    %32 = arith.addf %30, %31 : vector<2x64xf32>
    %33 = math.tanh %32 : vector<2x64xf32>
    %34 = arith.mulf %29, %33 : vector<2x64xf32>
    %c0_15 = arith.constant 0 : index
    %c0_16 = arith.constant 0 : index
    %c0_17 = arith.constant 0 : index
    %35 = vector.load %arg1[%c0_15, %c0_16, %c0_17] : memref<8x2x64xf32, #tpu.memory_space<vmem>>, vector<1x2x64xf32>
    %36 = vector.shape_cast %35 : vector<1x2x64xf32> to vector<2x64xf32>
    %cst_18 = arith.constant 0.000000e+00 : f32
    %37 = vector.broadcast %cst_18 : f32 to vector<2x64xf32>
    %38 = arith.cmpf ogt, %36, %37 : vector<2x64xf32>
    %cst_19 = arith.constant 0.000000e+00 : f32
    %39 = vector.broadcast %cst_19 : f32 to vector<2x64xf32>
    %40 = arith.select %38, %34, %39 : vector<2x64xi1>, vector<2x64xf32>
    %41 = arith.select %38, %34, %14 : vector<2x64xi1>, vector<2x64xf32>
    %42 = arith.select %38, %32, %15 : vector<2x64xi1>, vector<2x64xf32>
    %43 = vector.extract_strided_slice %40 {offsets = [0, 0], sizes = [2, 32], strides = [1, 1]} : vector<2x64xf32> to vector<2x32xf32>
    %c0_20 = arith.constant 0 : index
    %c0_21 = arith.constant 0 : index
    %c0_22 = arith.constant 0 : index
    %44 = vector.load %arg10[%c0_20, %c0_21, %c0_22] : memref<8x2x32xf32, #tpu.memory_space<vmem>>, vector<1x2x32xf32>
    %45 = vector.shape_cast %44 : vector<1x2x32xf32> to vector<2x32xf32>
    %46 = vector.shape_cast %43 : vector<2x32xf32> to vector<1x2x32xf32>
    tpu.vector_store %arg10[%c0_20, %c0_21, %c0_22], %46 {strides = array<i32>} : memref<8x2x32xf32, #tpu.memory_space<vmem>>, vector<1x2x32xf32>,
    %47 = vector.extract_strided_slice %40 {offsets = [0, 32], sizes = [2, 32], strides = [1, 1]} : vector<2x64xf32> to vector<2x32xf32>
    %c7 = arith.constant 7 : index
    %c0_23 = arith.constant 0 : index
    %c0_24 = arith.constant 0 : index
    %48 = vector.load %arg11[%c7, %c0_23, %c0_24] : memref<8x2x32xf32, #tpu.memory_space<vmem>>, vector<1x2x32xf32>
    %49 = vector.shape_cast %48 : vector<1x2x32xf32> to vector<2x32xf32>
    %50 = vector.shape_cast %47 : vector<2x32xf32> to vector<1x2x32xf32>
    tpu.vector_store %arg11[%c7, %c0_23, %c0_24], %50 {strides = array<i32>} : memref<8x2x32xf32, #tpu.memory_space<vmem>>, vector<1x2x32xf32>,
    %c2 = arith.constant 2 : index
    %c0_25 = arith.constant 0 : index
    %51 = vector.load %arg9[%c2, %c0_25] : memref<16x256xf32, #tpu.memory_space<vmem>>, vector<2x256xf32>
    %cst_26 = arith.constant dense<0.000000e+00> : vector<2x256xf32>
    %52 = tpu.matmul %41, %7, %cst_26 {dimension_numbers = #tpu.dot_dimension_numbers<[1], [0], [0], [1], [0, 0, 1, 1], [], []>, precision = #tpu.contract_precision<fp32>} : vector<2x64xf32>, vector<64x256xf32>, vector<2x256xf32> -> vector<2x256xf32>
    %53 = arith.addf %51, %52 : vector<2x256xf32>
    %54 = math.tanh %53 : vector<2x256xf32>
    %55 = arith.negf %53 : vector<2x256xf32>
    %56 = math.exp %55 : vector<2x256xf32>
    %cst_27 = arith.constant 1.000000e+00 : f32
    %57 = vector.broadcast %cst_27 : f32 to vector<2x256xf32>
    %58 = arith.addf %57, %56 : vector<2x256xf32>
    %59 = arith.divf %57, %58 : vector<2x256xf32>
    %60 = arith.select %13, %54, %59 : vector<2x256xi1>, vector<2x256xf32>
    %61 = vector.extract_strided_slice %60 {offsets = [0, 0], sizes = [2, 64], strides = [1, 1]} : vector<2x256xf32> to vector<2x64xf32>
    %62 = vector.extract_strided_slice %60 {offsets = [0, 64], sizes = [2, 64], strides = [1, 1]} : vector<2x256xf32> to vector<2x64xf32>
    %63 = vector.extract_strided_slice %60 {offsets = [0, 128], sizes = [2, 64], strides = [1, 1]} : vector<2x256xf32> to vector<2x64xf32>
    %64 = vector.extract_strided_slice %60 {offsets = [0, 192], sizes = [2, 64], strides = [1, 1]} : vector<2x256xf32> to vector<2x64xf32>
    %65 = arith.mulf %62, %42 : vector<2x64xf32>
    %66 = arith.mulf %61, %63 : vector<2x64xf32>
    %67 = arith.addf %65, %66 : vector<2x64xf32>
    %68 = math.tanh %67 : vector<2x64xf32>
    %69 = arith.mulf %64, %68 : vector<2x64xf32>
    %c1 = arith.constant 1 : index
    %c0_28 = arith.constant 0 : index
    %c0_29 = arith.constant 0 : index
    %70 = vector.load %arg1[%c1, %c0_28, %c0_29] : memref<8x2x64xf32, #tpu.memory_space<vmem>>, vector<1x2x64xf32>
    %71 = vector.shape_cast %70 : vector<1x2x64xf32> to vector<2x64xf32>
    %cst_30 = arith.constant 0.000000e+00 : f32
    %72 = vector.broadcast %cst_30 : f32 to vector<2x64xf32>
    %73 = arith.cmpf ogt, %71, %72 : vector<2x64xf32>
    %cst_31 = arith.constant 0.000000e+00 : f32
    %74 = vector.broadcast %cst_31 : f32 to vector<2x64xf32>
    %75 = arith.select %73, %69, %74 : vector<2x64xi1>, vector<2x64xf32>
    %76 = arith.select %73, %69, %41 : vector<2x64xi1>, vector<2x64xf32>
    %77 = arith.select %73, %67, %42 : vector<2x64xi1>, vector<2x64xf32>
    %78 = vector.extract_strided_slice %75 {offsets = [0, 0], sizes = [2, 32], strides = [1, 1]} : vector<2x64xf32> to vector<2x32xf32>
    %c1_32 = arith.constant 1 : index
    %c0_33 = arith.constant 0 : index
    %c0_34 = arith.constant 0 : index
    %79 = vector.load %arg10[%c1_32, %c0_33, %c0_34] : memref<8x2x32xf32, #tpu.memory_space<vmem>>, vector<1x2x32xf32>
    %80 = vector.shape_cast %79 : vector<1x2x32xf32> to vector<2x32xf32>
    %81 = vector.shape_cast %78 : vector<2x32xf32> to vector<1x2x32xf32>
    tpu.vector_store %arg10[%c1_32, %c0_33, %c0_34], %81 {strides = array<i32>} : memref<8x2x32xf32, #tpu.memory_space<vmem>>, vector<1x2x32xf32>,
    %82 = vector.extract_strided_slice %75 {offsets = [0, 32], sizes = [2, 32], strides = [1, 1]} : vector<2x64xf32> to vector<2x32xf32>
    %c6 = arith.constant 6 : index
    %c0_35 = arith.constant 0 : index
    %c0_36 = arith.constant 0 : index
    %83 = vector.load %arg11[%c6, %c0_35, %c0_36] : memref<8x2x32xf32, #tpu.memory_space<vmem>>, vector<1x2x32xf32>
    %84 = vector.shape_cast %83 : vector<1x2x32xf32> to vector<2x32xf32>
    %85 = vector.shape_cast %82 : vector<2x32xf32> to vector<1x2x32xf32>
    tpu.vector_store %arg11[%c6, %c0_35, %c0_36], %85 {strides = array<i32>} : memref<8x2x32xf32, #tpu.memory_space<vmem>>, vector<1x2x32xf32>,
    %c4 = arith.constant 4 : index
    %c0_37 = arith.constant 0 : index
    %86 = vector.load %arg9[%c4, %c0_37] : memref<16x256xf32, #tpu.memory_space<vmem>>, vector<2x256xf32>
    %cst_38 = arith.constant dense<0.000000e+00> : vector<2x256xf32>
    %87 = tpu.matmul %76, %7, %cst_38 {dimension_numbers = #tpu.dot_dimension_numbers<[1], [0], [0], [1], [0, 0, 1, 1], [], []>, precision = #tpu.contract_precision<fp32>} : vector<2x64xf32>, vector<64x256xf32>, vector<2x256xf32> -> vector<2x256xf32>
    %88 = arith.addf %86, %87 : vector<2x256xf32>
    %89 = math.tanh %88 : vector<2x256xf32>
    %90 = arith.negf %88 : vector<2x256xf32>
    %91 = math.exp %90 : vector<2x256xf32>
    %cst_39 = arith.constant 1.000000e+00 : f32
    %92 = vector.broadcast %cst_39 : f32 to vector<2x256xf32>
    %93 = arith.addf %92, %91 : vector<2x256xf32>
    %94 = arith.divf %92, %93 : vector<2x256xf32>
    %95 = arith.select %13, %89, %94 : vector<2x256xi1>, vector<2x256xf32>
    %96 = vector.extract_strided_slice %95 {offsets = [0, 0], sizes = [2, 64], strides = [1, 1]} : vector<2x256xf32> to vector<2x64xf32>
    %97 = vector.extract_strided_slice %95 {offsets = [0, 64], sizes = [2, 64], strides = [1, 1]} : vector<2x256xf32> to vector<2x64xf32>
    %98 = vector.extract_strided_slice %95 {offsets = [0, 128], sizes = [2, 64], strides = [1, 1]} : vector<2x256xf32> to vector<2x64xf32>
    %99 = vector.extract_strided_slice %95 {offsets = [0, 192], sizes = [2, 64], strides = [1, 1]} : vector<2x256xf32> to vector<2x64xf32>
    %100 = arith.mulf %97, %77 : vector<2x64xf32>
    %101 = arith.mulf %96, %98 : vector<2x64xf32>
    %102 = arith.addf %100, %101 : vector<2x64xf32>
    %103 = math.tanh %102 : vector<2x64xf32>
    %104 = arith.mulf %99, %103 : vector<2x64xf32>
    %c2_40 = arith.constant 2 : index
    %c0_41 = arith.constant 0 : index
    %c0_42 = arith.constant 0 : index
    %105 = vector.load %arg1[%c2_40, %c0_41, %c0_42] : memref<8x2x64xf32, #tpu.memory_space<vmem>>, vector<1x2x64xf32>
    %106 = vector.shape_cast %105 : vector<1x2x64xf32> to vector<2x64xf32>
    %cst_43 = arith.constant 0.000000e+00 : f32
    %107 = vector.broadcast %cst_43 : f32 to vector<2x64xf32>
    %108 = arith.cmpf ogt, %106, %107 : vector<2x64xf32>
    %cst_44 = arith.constant 0.000000e+00 : f32
    %109 = vector.broadcast %cst_44 : f32 to vector<2x64xf32>
    %110 = arith.select %108, %104, %109 : vector<2x64xi1>, vector<2x64xf32>
    %111 = arith.select %108, %104, %76 : vector<2x64xi1>, vector<2x64xf32>
    %112 = arith.select %108, %102, %77 : vector<2x64xi1>, vector<2x64xf32>
    %113 = vector.extract_strided_slice %110 {offsets = [0, 0], sizes = [2, 32], strides = [1, 1]} : vector<2x64xf32> to vector<2x32xf32>
    %c2_45 = arith.constant 2 : index
    %c0_46 = arith.constant 0 : index
    %c0_47 = arith.constant 0 : index
    %114 = vector.load %arg10[%c2_45, %c0_46, %c0_47] : memref<8x2x32xf32, #tpu.memory_space<vmem>>, vector<1x2x32xf32>
    %115 = vector.shape_cast %114 : vector<1x2x32xf32> to vector<2x32xf32>
    %116 = vector.shape_cast %113 : vector<2x32xf32> to vector<1x2x32xf32>
    tpu.vector_store %arg10[%c2_45, %c0_46, %c0_47], %116 {strides = array<i32>} : memref<8x2x32xf32, #tpu.memory_space<vmem>>, vector<1x2x32xf32>,
    %117 = vector.extract_strided_slice %110 {offsets = [0, 32], sizes = [2, 32], strides = [1, 1]} : vector<2x64xf32> to vector<2x32xf32>
    %c5 = arith.constant 5 : index
    %c0_48 = arith.constant 0 : index
    %c0_49 = arith.constant 0 : index
    %118 = vector.load %arg11[%c5, %c0_48, %c0_49] : memref<8x2x32xf32, #tpu.memory_space<vmem>>, vector<1x2x32xf32>
    %119 = vector.shape_cast %118 : vector<1x2x32xf32> to vector<2x32xf32>
    %120 = vector.shape_cast %117 : vector<2x32xf32> to vector<1x2x32xf32>
    tpu.vector_store %arg11[%c5, %c0_48, %c0_49], %120 {strides = array<i32>} : memref<8x2x32xf32, #tpu.memory_space<vmem>>, vector<1x2x32xf32>,
    %c6_50 = arith.constant 6 : index
    %c0_51 = arith.constant 0 : index
    %121 = vector.load %arg9[%c6_50, %c0_51] : memref<16x256xf32, #tpu.memory_space<vmem>>, vector<2x256xf32>
    %cst_52 = arith.constant dense<0.000000e+00> : vector<2x256xf32>
    %122 = tpu.matmul %111, %7, %cst_52 {dimension_numbers = #tpu.dot_dimension_numbers<[1], [0], [0], [1], [0, 0, 1, 1], [], []>, precision = #tpu.contract_precision<fp32>} : vector<2x64xf32>, vector<64x256xf32>, vector<2x256xf32> -> vector<2x256xf32>
    %123 = arith.addf %121, %122 : vector<2x256xf32>
    %124 = math.tanh %123 : vector<2x256xf32>
    %125 = arith.negf %123 : vector<2x256xf32>
    %126 = math.exp %125 : vector<2x256xf32>
    %cst_53 = arith.constant 1.000000e+00 : f32
    %127 = vector.broadcast %cst_53 : f32 to vector<2x256xf32>
    %128 = arith.addf %127, %126 : vector<2x256xf32>
    %129 = arith.divf %127, %128 : vector<2x256xf32>
    %130 = arith.select %13, %124, %129 : vector<2x256xi1>, vector<2x256xf32>
    %131 = vector.extract_strided_slice %130 {offsets = [0, 0], sizes = [2, 64], strides = [1, 1]} : vector<2x256xf32> to vector<2x64xf32>
    %132 = vector.extract_strided_slice %130 {offsets = [0, 64], sizes = [2, 64], strides = [1, 1]} : vector<2x256xf32> to vector<2x64xf32>
    %133 = vector.extract_strided_slice %130 {offsets = [0, 128], sizes = [2, 64], strides = [1, 1]} : vector<2x256xf32> to vector<2x64xf32>
    %134 = vector.extract_strided_slice %130 {offsets = [0, 192], sizes = [2, 64], strides = [1, 1]} : vector<2x256xf32> to vector<2x64xf32>
    %135 = arith.mulf %132, %112 : vector<2x64xf32>
    %136 = arith.mulf %131, %133 : vector<2x64xf32>
    %137 = arith.addf %135, %136 : vector<2x64xf32>
    %138 = math.tanh %137 : vector<2x64xf32>
    %139 = arith.mulf %134, %138 : vector<2x64xf32>
    %c3 = arith.constant 3 : index
    %c0_54 = arith.constant 0 : index
    %c0_55 = arith.constant 0 : index
    %140 = vector.load %arg1[%c3, %c0_54, %c0_55] : memref<8x2x64xf32, #tpu.memory_space<vmem>>, vector<1x2x64xf32>
    %141 = vector.shape_cast %140 : vector<1x2x64xf32> to vector<2x64xf32>
    %cst_56 = arith.constant 0.000000e+00 : f32
    %142 = vector.broadcast %cst_56 : f32 to vector<2x64xf32>
    %143 = arith.cmpf ogt, %141, %142 : vector<2x64xf32>
    %cst_57 = arith.constant 0.000000e+00 : f32
    %144 = vector.broadcast %cst_57 : f32 to vector<2x64xf32>
    %145 = arith.select %143, %139, %144 : vector<2x64xi1>, vector<2x64xf32>
    %146 = arith.select %143, %139, %111 : vector<2x64xi1>, vector<2x64xf32>
    %147 = arith.select %143, %137, %112 : vector<2x64xi1>, vector<2x64xf32>
    %148 = vector.extract_strided_slice %145 {offsets = [0, 0], sizes = [2, 32], strides = [1, 1]} : vector<2x64xf32> to vector<2x32xf32>
    %c3_58 = arith.constant 3 : index
    %c0_59 = arith.constant 0 : index
    %c0_60 = arith.constant 0 : index
    %149 = vector.load %arg10[%c3_58, %c0_59, %c0_60] : memref<8x2x32xf32, #tpu.memory_space<vmem>>, vector<1x2x32xf32>
    %150 = vector.shape_cast %149 : vector<1x2x32xf32> to vector<2x32xf32>
    %151 = vector.shape_cast %148 : vector<2x32xf32> to vector<1x2x32xf32>
    tpu.vector_store %arg10[%c3_58, %c0_59, %c0_60], %151 {strides = array<i32>} : memref<8x2x32xf32, #tpu.memory_space<vmem>>, vector<1x2x32xf32>,
    %152 = vector.extract_strided_slice %145 {offsets = [0, 32], sizes = [2, 32], strides = [1, 1]} : vector<2x64xf32> to vector<2x32xf32>
    %c4_61 = arith.constant 4 : index
    %c0_62 = arith.constant 0 : index
    %c0_63 = arith.constant 0 : index
    %153 = vector.load %arg11[%c4_61, %c0_62, %c0_63] : memref<8x2x32xf32, #tpu.memory_space<vmem>>, vector<1x2x32xf32>
    %154 = vector.shape_cast %153 : vector<1x2x32xf32> to vector<2x32xf32>
    %155 = vector.shape_cast %152 : vector<2x32xf32> to vector<1x2x32xf32>
    tpu.vector_store %arg11[%c4_61, %c0_62, %c0_63], %155 {strides = array<i32>} : memref<8x2x32xf32, #tpu.memory_space<vmem>>, vector<1x2x32xf32>,
    %c8 = arith.constant 8 : index
    %c0_64 = arith.constant 0 : index
    %156 = vector.load %arg9[%c8, %c0_64] : memref<16x256xf32, #tpu.memory_space<vmem>>, vector<2x256xf32>
    %cst_65 = arith.constant dense<0.000000e+00> : vector<2x256xf32>
    %157 = tpu.matmul %146, %7, %cst_65 {dimension_numbers = #tpu.dot_dimension_numbers<[1], [0], [0], [1], [0, 0, 1, 1], [], []>, precision = #tpu.contract_precision<fp32>} : vector<2x64xf32>, vector<64x256xf32>, vector<2x256xf32> -> vector<2x256xf32>
    %158 = arith.addf %156, %157 : vector<2x256xf32>
    %159 = math.tanh %158 : vector<2x256xf32>
    %160 = arith.negf %158 : vector<2x256xf32>
    %161 = math.exp %160 : vector<2x256xf32>
    %cst_66 = arith.constant 1.000000e+00 : f32
    %162 = vector.broadcast %cst_66 : f32 to vector<2x256xf32>
    %163 = arith.addf %162, %161 : vector<2x256xf32>
    %164 = arith.divf %162, %163 : vector<2x256xf32>
    %165 = arith.select %13, %159, %164 : vector<2x256xi1>, vector<2x256xf32>
    %166 = vector.extract_strided_slice %165 {offsets = [0, 0], sizes = [2, 64], strides = [1, 1]} : vector<2x256xf32> to vector<2x64xf32>
    %167 = vector.extract_strided_slice %165 {offsets = [0, 64], sizes = [2, 64], strides = [1, 1]} : vector<2x256xf32> to vector<2x64xf32>
    %168 = vector.extract_strided_slice %165 {offsets = [0, 128], sizes = [2, 64], strides = [1, 1]} : vector<2x256xf32> to vector<2x64xf32>
    %169 = vector.extract_strided_slice %165 {offsets = [0, 192], sizes = [2, 64], strides = [1, 1]} : vector<2x256xf32> to vector<2x64xf32>
    %170 = arith.mulf %167, %147 : vector<2x64xf32>
    %171 = arith.mulf %166, %168 : vector<2x64xf32>
    %172 = arith.addf %170, %171 : vector<2x64xf32>
    %173 = math.tanh %172 : vector<2x64xf32>
    %174 = arith.mulf %169, %173 : vector<2x64xf32>
    %c4_67 = arith.constant 4 : index
    %c0_68 = arith.constant 0 : index
    %c0_69 = arith.constant 0 : index
    %175 = vector.load %arg1[%c4_67, %c0_68, %c0_69] : memref<8x2x64xf32, #tpu.memory_space<vmem>>, vector<1x2x64xf32>
    %176 = vector.shape_cast %175 : vector<1x2x64xf32> to vector<2x64xf32>
    %cst_70 = arith.constant 0.000000e+00 : f32
    %177 = vector.broadcast %cst_70 : f32 to vector<2x64xf32>
    %178 = arith.cmpf ogt, %176, %177 : vector<2x64xf32>
    %cst_71 = arith.constant 0.000000e+00 : f32
    %179 = vector.broadcast %cst_71 : f32 to vector<2x64xf32>
    %180 = arith.select %178, %174, %179 : vector<2x64xi1>, vector<2x64xf32>
    %181 = arith.select %178, %174, %146 : vector<2x64xi1>, vector<2x64xf32>
    %182 = arith.select %178, %172, %147 : vector<2x64xi1>, vector<2x64xf32>
    %183 = vector.extract_strided_slice %180 {offsets = [0, 0], sizes = [2, 32], strides = [1, 1]} : vector<2x64xf32> to vector<2x32xf32>
    %c4_72 = arith.constant 4 : index
    %c0_73 = arith.constant 0 : index
    %c0_74 = arith.constant 0 : index
    %184 = vector.load %arg10[%c4_72, %c0_73, %c0_74] : memref<8x2x32xf32, #tpu.memory_space<vmem>>, vector<1x2x32xf32>
    %185 = vector.shape_cast %184 : vector<1x2x32xf32> to vector<2x32xf32>
    %186 = vector.shape_cast %183 : vector<2x32xf32> to vector<1x2x32xf32>
    tpu.vector_store %arg10[%c4_72, %c0_73, %c0_74], %186 {strides = array<i32>} : memref<8x2x32xf32, #tpu.memory_space<vmem>>, vector<1x2x32xf32>,
    %187 = vector.extract_strided_slice %180 {offsets = [0, 32], sizes = [2, 32], strides = [1, 1]} : vector<2x64xf32> to vector<2x32xf32>
    %c3_75 = arith.constant 3 : index
    %c0_76 = arith.constant 0 : index
    %c0_77 = arith.constant 0 : index
    %188 = vector.load %arg11[%c3_75, %c0_76, %c0_77] : memref<8x2x32xf32, #tpu.memory_space<vmem>>, vector<1x2x32xf32>
    %189 = vector.shape_cast %188 : vector<1x2x32xf32> to vector<2x32xf32>
    %190 = vector.shape_cast %187 : vector<2x32xf32> to vector<1x2x32xf32>
    tpu.vector_store %arg11[%c3_75, %c0_76, %c0_77], %190 {strides = array<i32>} : memref<8x2x32xf32, #tpu.memory_space<vmem>>, vector<1x2x32xf32>,
    %c10 = arith.constant 10 : index
    %c0_78 = arith.constant 0 : index
    %191 = vector.load %arg9[%c10, %c0_78] : memref<16x256xf32, #tpu.memory_space<vmem>>, vector<2x256xf32>
    %cst_79 = arith.constant dense<0.000000e+00> : vector<2x256xf32>
    %192 = tpu.matmul %181, %7, %cst_79 {dimension_numbers = #tpu.dot_dimension_numbers<[1], [0], [0], [1], [0, 0, 1, 1], [], []>, precision = #tpu.contract_precision<fp32>} : vector<2x64xf32>, vector<64x256xf32>, vector<2x256xf32> -> vector<2x256xf32>
    %193 = arith.addf %191, %192 : vector<2x256xf32>
    %194 = math.tanh %193 : vector<2x256xf32>
    %195 = arith.negf %193 : vector<2x256xf32>
    %196 = math.exp %195 : vector<2x256xf32>
    %cst_80 = arith.constant 1.000000e+00 : f32
    %197 = vector.broadcast %cst_80 : f32 to vector<2x256xf32>
    %198 = arith.addf %197, %196 : vector<2x256xf32>
    %199 = arith.divf %197, %198 : vector<2x256xf32>
    %200 = arith.select %13, %194, %199 : vector<2x256xi1>, vector<2x256xf32>
    %201 = vector.extract_strided_slice %200 {offsets = [0, 0], sizes = [2, 64], strides = [1, 1]} : vector<2x256xf32> to vector<2x64xf32>
    %202 = vector.extract_strided_slice %200 {offsets = [0, 64], sizes = [2, 64], strides = [1, 1]} : vector<2x256xf32> to vector<2x64xf32>
    %203 = vector.extract_strided_slice %200 {offsets = [0, 128], sizes = [2, 64], strides = [1, 1]} : vector<2x256xf32> to vector<2x64xf32>
    %204 = vector.extract_strided_slice %200 {offsets = [0, 192], sizes = [2, 64], strides = [1, 1]} : vector<2x256xf32> to vector<2x64xf32>
    %205 = arith.mulf %202, %182 : vector<2x64xf32>
    %206 = arith.mulf %201, %203 : vector<2x64xf32>
    %207 = arith.addf %205, %206 : vector<2x64xf32>
    %208 = math.tanh %207 : vector<2x64xf32>
    %209 = arith.mulf %204, %208 : vector<2x64xf32>
    %c5_81 = arith.constant 5 : index
    %c0_82 = arith.constant 0 : index
    %c0_83 = arith.constant 0 : index
    %210 = vector.load %arg1[%c5_81, %c0_82, %c0_83] : memref<8x2x64xf32, #tpu.memory_space<vmem>>, vector<1x2x64xf32>
    %211 = vector.shape_cast %210 : vector<1x2x64xf32> to vector<2x64xf32>
    %cst_84 = arith.constant 0.000000e+00 : f32
    %212 = vector.broadcast %cst_84 : f32 to vector<2x64xf32>
    %213 = arith.cmpf ogt, %211, %212 : vector<2x64xf32>
    %cst_85 = arith.constant 0.000000e+00 : f32
    %214 = vector.broadcast %cst_85 : f32 to vector<2x64xf32>
    %215 = arith.select %213, %209, %214 : vector<2x64xi1>, vector<2x64xf32>
    %216 = arith.select %213, %209, %181 : vector<2x64xi1>, vector<2x64xf32>
    %217 = arith.select %213, %207, %182 : vector<2x64xi1>, vector<2x64xf32>
    %218 = vector.extract_strided_slice %215 {offsets = [0, 0], sizes = [2, 32], strides = [1, 1]} : vector<2x64xf32> to vector<2x32xf32>
    %c5_86 = arith.constant 5 : index
    %c0_87 = arith.constant 0 : index
    %c0_88 = arith.constant 0 : index
    %219 = vector.load %arg10[%c5_86, %c0_87, %c0_88] : memref<8x2x32xf32, #tpu.memory_space<vmem>>, vector<1x2x32xf32>
    %220 = vector.shape_cast %219 : vector<1x2x32xf32> to vector<2x32xf32>
    %221 = vector.shape_cast %218 : vector<2x32xf32> to vector<1x2x32xf32>
    tpu.vector_store %arg10[%c5_86, %c0_87, %c0_88], %221 {strides = array<i32>} : memref<8x2x32xf32, #tpu.memory_space<vmem>>, vector<1x2x32xf32>,
    %222 = vector.extract_strided_slice %215 {offsets = [0, 32], sizes = [2, 32], strides = [1, 1]} : vector<2x64xf32> to vector<2x32xf32>
    %c2_89 = arith.constant 2 : index
    %c0_90 = arith.constant 0 : index
    %c0_91 = arith.constant 0 : index
    %223 = vector.load %arg11[%c2_89, %c0_90, %c0_91] : memref<8x2x32xf32, #tpu.memory_space<vmem>>, vector<1x2x32xf32>
    %224 = vector.shape_cast %223 : vector<1x2x32xf32> to vector<2x32xf32>
    %225 = vector.shape_cast %222 : vector<2x32xf32> to vector<1x2x32xf32>
    tpu.vector_store %arg11[%c2_89, %c0_90, %c0_91], %225 {strides = array<i32>} : memref<8x2x32xf32, #tpu.memory_space<vmem>>, vector<1x2x32xf32>,
    %c12 = arith.constant 12 : index
    %c0_92 = arith.constant 0 : index
    %226 = vector.load %arg9[%c12, %c0_92] : memref<16x256xf32, #tpu.memory_space<vmem>>, vector<2x256xf32>
    %cst_93 = arith.constant dense<0.000000e+00> : vector<2x256xf32>
    %227 = tpu.matmul %216, %7, %cst_93 {dimension_numbers = #tpu.dot_dimension_numbers<[1], [0], [0], [1], [0, 0, 1, 1], [], []>, precision = #tpu.contract_precision<fp32>} : vector<2x64xf32>, vector<64x256xf32>, vector<2x256xf32> -> vector<2x256xf32>
    %228 = arith.addf %226, %227 : vector<2x256xf32>
    %229 = math.tanh %228 : vector<2x256xf32>
    %230 = arith.negf %228 : vector<2x256xf32>
    %231 = math.exp %230 : vector<2x256xf32>
    %cst_94 = arith.constant 1.000000e+00 : f32
    %232 = vector.broadcast %cst_94 : f32 to vector<2x256xf32>
    %233 = arith.addf %232, %231 : vector<2x256xf32>
    %234 = arith.divf %232, %233 : vector<2x256xf32>
    %235 = arith.select %13, %229, %234 : vector<2x256xi1>, vector<2x256xf32>
    %236 = vector.extract_strided_slice %235 {offsets = [0, 0], sizes = [2, 64], strides = [1, 1]} : vector<2x256xf32> to vector<2x64xf32>
    %237 = vector.extract_strided_slice %235 {offsets = [0, 64], sizes = [2, 64], strides = [1, 1]} : vector<2x256xf32> to vector<2x64xf32>
    %238 = vector.extract_strided_slice %235 {offsets = [0, 128], sizes = [2, 64], strides = [1, 1]} : vector<2x256xf32> to vector<2x64xf32>
    %239 = vector.extract_strided_slice %235 {offsets = [0, 192], sizes = [2, 64], strides = [1, 1]} : vector<2x256xf32> to vector<2x64xf32>
    %240 = arith.mulf %237, %217 : vector<2x64xf32>
    %241 = arith.mulf %236, %238 : vector<2x64xf32>
    %242 = arith.addf %240, %241 : vector<2x64xf32>
    %243 = math.tanh %242 : vector<2x64xf32>
    %244 = arith.mulf %239, %243 : vector<2x64xf32>
    %c6_95 = arith.constant 6 : index
    %c0_96 = arith.constant 0 : index
    %c0_97 = arith.constant 0 : index
    %245 = vector.load %arg1[%c6_95, %c0_96, %c0_97] : memref<8x2x64xf32, #tpu.memory_space<vmem>>, vector<1x2x64xf32>
    %246 = vector.shape_cast %245 : vector<1x2x64xf32> to vector<2x64xf32>
    %cst_98 = arith.constant 0.000000e+00 : f32
    %247 = vector.broadcast %cst_98 : f32 to vector<2x64xf32>
    %248 = arith.cmpf ogt, %246, %247 : vector<2x64xf32>
    %cst_99 = arith.constant 0.000000e+00 : f32
    %249 = vector.broadcast %cst_99 : f32 to vector<2x64xf32>
    %250 = arith.select %248, %244, %249 : vector<2x64xi1>, vector<2x64xf32>
    %251 = arith.select %248, %244, %216 : vector<2x64xi1>, vector<2x64xf32>
    %252 = arith.select %248, %242, %217 : vector<2x64xi1>, vector<2x64xf32>
    %253 = vector.extract_strided_slice %250 {offsets = [0, 0], sizes = [2, 32], strides = [1, 1]} : vector<2x64xf32> to vector<2x32xf32>
    %c6_100 = arith.constant 6 : index
    %c0_101 = arith.constant 0 : index
    %c0_102 = arith.constant 0 : index
    %254 = vector.load %arg10[%c6_100, %c0_101, %c0_102] : memref<8x2x32xf32, #tpu.memory_space<vmem>>, vector<1x2x32xf32>
    %255 = vector.shape_cast %254 : vector<1x2x32xf32> to vector<2x32xf32>
    %256 = vector.shape_cast %253 : vector<2x32xf32> to vector<1x2x32xf32>
    tpu.vector_store %arg10[%c6_100, %c0_101, %c0_102], %256 {strides = array<i32>} : memref<8x2x32xf32, #tpu.memory_space<vmem>>, vector<1x2x32xf32>,
    %257 = vector.extract_strided_slice %250 {offsets = [0, 32], sizes = [2, 32], strides = [1, 1]} : vector<2x64xf32> to vector<2x32xf32>
    %c1_103 = arith.constant 1 : index
    %c0_104 = arith.constant 0 : index
    %c0_105 = arith.constant 0 : index
    %258 = vector.load %arg11[%c1_103, %c0_104, %c0_105] : memref<8x2x32xf32, #tpu.memory_space<vmem>>, vector<1x2x32xf32>
    %259 = vector.shape_cast %258 : vector<1x2x32xf32> to vector<2x32xf32>
    %260 = vector.shape_cast %257 : vector<2x32xf32> to vector<1x2x32xf32>
    tpu.vector_store %arg11[%c1_103, %c0_104, %c0_105], %260 {strides = array<i32>} : memref<8x2x32xf32, #tpu.memory_space<vmem>>, vector<1x2x32xf32>,
    %c14 = arith.constant 14 : index
    %c0_106 = arith.constant 0 : index
    %261 = vector.load %arg9[%c14, %c0_106] : memref<16x256xf32, #tpu.memory_space<vmem>>, vector<2x256xf32>
    %cst_107 = arith.constant dense<0.000000e+00> : vector<2x256xf32>
    %262 = tpu.matmul %251, %7, %cst_107 {dimension_numbers = #tpu.dot_dimension_numbers<[1], [0], [0], [1], [0, 0, 1, 1], [], []>, precision = #tpu.contract_precision<fp32>} : vector<2x64xf32>, vector<64x256xf32>, vector<2x256xf32> -> vector<2x256xf32>
    %263 = arith.addf %261, %262 : vector<2x256xf32>
    %264 = math.tanh %263 : vector<2x256xf32>
    %265 = arith.negf %263 : vector<2x256xf32>
    %266 = math.exp %265 : vector<2x256xf32>
    %cst_108 = arith.constant 1.000000e+00 : f32
    %267 = vector.broadcast %cst_108 : f32 to vector<2x256xf32>
    %268 = arith.addf %267, %266 : vector<2x256xf32>
    %269 = arith.divf %267, %268 : vector<2x256xf32>
    %270 = arith.select %13, %264, %269 : vector<2x256xi1>, vector<2x256xf32>
    %271 = vector.extract_strided_slice %270 {offsets = [0, 0], sizes = [2, 64], strides = [1, 1]} : vector<2x256xf32> to vector<2x64xf32>
    %272 = vector.extract_strided_slice %270 {offsets = [0, 64], sizes = [2, 64], strides = [1, 1]} : vector<2x256xf32> to vector<2x64xf32>
    %273 = vector.extract_strided_slice %270 {offsets = [0, 128], sizes = [2, 64], strides = [1, 1]} : vector<2x256xf32> to vector<2x64xf32>
    %274 = vector.extract_strided_slice %270 {offsets = [0, 192], sizes = [2, 64], strides = [1, 1]} : vector<2x256xf32> to vector<2x64xf32>
    %275 = arith.mulf %272, %252 : vector<2x64xf32>
    %276 = arith.mulf %271, %273 : vector<2x64xf32>
    %277 = arith.addf %275, %276 : vector<2x64xf32>
    %278 = math.tanh %277 : vector<2x64xf32>
    %279 = arith.mulf %274, %278 : vector<2x64xf32>
    %c7_109 = arith.constant 7 : index
    %c0_110 = arith.constant 0 : index
    %c0_111 = arith.constant 0 : index
    %280 = vector.load %arg1[%c7_109, %c0_110, %c0_111] : memref<8x2x64xf32, #tpu.memory_space<vmem>>, vector<1x2x64xf32>
    %281 = vector.shape_cast %280 : vector<1x2x64xf32> to vector<2x64xf32>
    %cst_112 = arith.constant 0.000000e+00 : f32
    %282 = vector.broadcast %cst_112 : f32 to vector<2x64xf32>
    %283 = arith.cmpf ogt, %281, %282 : vector<2x64xf32>
    %cst_113 = arith.constant 0.000000e+00 : f32
    %284 = vector.broadcast %cst_113 : f32 to vector<2x64xf32>
    %285 = arith.select %283, %279, %284 : vector<2x64xi1>, vector<2x64xf32>
    %286 = vector.extract_strided_slice %285 {offsets = [0, 0], sizes = [2, 32], strides = [1, 1]} : vector<2x64xf32> to vector<2x32xf32>
    %c7_114 = arith.constant 7 : index
    %c0_115 = arith.constant 0 : index
    %c0_116 = arith.constant 0 : index
    %287 = vector.load %arg10[%c7_114, %c0_115, %c0_116] : memref<8x2x32xf32, #tpu.memory_space<vmem>>, vector<1x2x32xf32>
    %288 = vector.shape_cast %287 : vector<1x2x32xf32> to vector<2x32xf32>
    %289 = vector.shape_cast %286 : vector<2x32xf32> to vector<1x2x32xf32>
    tpu.vector_store %arg10[%c7_114, %c0_115, %c0_116], %289 {strides = array<i32>} : memref<8x2x32xf32, #tpu.memory_space<vmem>>, vector<1x2x32xf32>,
    %290 = vector.extract_strided_slice %285 {offsets = [0, 32], sizes = [2, 32], strides = [1, 1]} : vector<2x64xf32> to vector<2x32xf32>
    %c0_117 = arith.constant 0 : index
    %c0_118 = arith.constant 0 : index
    %c0_119 = arith.constant 0 : index
    %291 = vector.load %arg11[%c0_117, %c0_118, %c0_119] : memref<8x2x32xf32, #tpu.memory_space<vmem>>, vector<1x2x32xf32>
    %292 = vector.shape_cast %291 : vector<1x2x32xf32> to vector<2x32xf32>
    %293 = vector.shape_cast %290 : vector<2x32xf32> to vector<1x2x32xf32>
    tpu.vector_store %arg11[%c0_117, %c0_118, %c0_119], %293 {strides = array<i32>} : memref<8x2x32xf32, #tpu.memory_space<vmem>>, vector<1x2x32xf32>,
    %c0_120 = arith.constant 0 : index
    %c0_121 = arith.constant 0 : index
    %c0_122 = arith.constant 0 : index
    %294 = vector.load %arg10[%c0_120, %c0_121, %c0_122] : memref<8x2x32xf32, #tpu.memory_space<vmem>>, vector<8x2x32xf32>
    %c0_123 = arith.constant 0 : index
    %c0_124 = arith.constant 0 : index
    %c0_125 = arith.constant 0 : index
    %295 = vector.load %arg11[%c0_123, %c0_124, %c0_125] : memref<8x2x32xf32, #tpu.memory_space<vmem>>, vector<8x2x32xf32>
    %296 = arith.addf %294, %295 : vector<8x2x32xf32>
    %c0_126 = arith.constant 0 : index
    %c0_127 = arith.constant 0 : index
    %c0_128 = arith.constant 0 : index
    %297 = vector.load %arg1[%c0_126, %c0_127, %c0_128] : memref<8x2x64xf32, #tpu.memory_space<vmem>>, vector<8x2x1xf32>
    %c0_129 = arith.constant 0 : index
    %c0_130 = arith.constant 0 : index
    %298 = vector.load %arg5[%c0_129, %c0_130] : memref<1x32xf32, #tpu.memory_space<vmem>>, vector<1x32xf32>
    %299 = math.tanh %296 : vector<8x2x32xf32>
    %300 = vector.shape_cast %298 : vector<1x32xf32> to vector<1x1x32xf32>
    %301 = vector.broadcast %300 : vector<1x1x32xf32> to vector<8x2x32xf32>
    %302 = arith.mulf %299, %301 : vector<8x2x32xf32>
    %cst_131 = arith.constant dense<0.000000e+00> : vector<8x2xf32>
    %303 = vector.multi_reduction <add>, %302, %cst_131 [2] : vector<8x2x32xf32> to vector<8x2xf32>
    %304 = vector.shape_cast %303 : vector<8x2xf32> to vector<8x2x1xf32>
    %cst_132 = arith.constant 0.000000e+00 : f32
    %305 = vector.broadcast %cst_132 : f32 to vector<8x2x1xf32>
    %306 = arith.cmpf ogt, %297, %305 : vector<8x2x1xf32>
    %cst_133 = arith.constant -1.000000e+30 : f32
    %307 = vector.broadcast %cst_133 : f32 to vector<8x2x1xf32>
    %308 = arith.select %306, %304, %307 : vector<8x2x1xi1>, vector<8x2x1xf32>
    %cst_134 = arith.constant dense<0xFF800000> : vector<2x1xf32>
    %309 = vector.multi_reduction <maximumf>, %308, %cst_134 [0] : vector<8x2x1xf32> to vector<2x1xf32>
    %310 = vector.shape_cast %309 : vector<2x1xf32> to vector<1x2x1xf32>
    %311 = vector.broadcast %310 : vector<1x2x1xf32> to vector<8x2x1xf32>
    %312 = arith.subf %308, %311 : vector<8x2x1xf32>
    %313 = math.exp %312 : vector<8x2x1xf32>
    %cst_135 = arith.constant dense<0.000000e+00> : vector<2x1xf32>
    %314 = vector.multi_reduction <add>, %313, %cst_135 [0] : vector<8x2x1xf32> to vector<2x1xf32>
    %315 = vector.shape_cast %314 : vector<2x1xf32> to vector<1x2x1xf32>
    %316 = tpu.reciprocal %315 : vector<1x2x1xf32> -> vector<1x2x1xf32>
    %317 = vector.broadcast %316 : vector<1x2x1xf32> to vector<8x2x1xf32>
    %318 = arith.mulf %313, %317 : vector<8x2x1xf32>
    %319 = vector.broadcast %318 : vector<8x2x1xf32> to vector<8x2x32xf32>
    %320 = arith.mulf %296, %319 : vector<8x2x32xf32>
    %cst_136 = arith.constant dense<0.000000e+00> : vector<2x32xf32>
    %321 = vector.multi_reduction <add>, %320, %cst_136 [0] : vector<8x2x32xf32> to vector<2x32xf32>
    %322 = math.tanh %321 : vector<2x32xf32>
    %c0_137 = arith.constant 0 : index
    %c0_138 = arith.constant 0 : index
    %323 = vector.load %arg6[%c0_137, %c0_138] : memref<32x5xf32, #tpu.memory_space<vmem>>, vector<32x5xf32>
    %cst_139 = arith.constant dense<0.000000e+00> : vector<2x5xf32>
    %324 = tpu.matmul %322, %323, %cst_139 {dimension_numbers = #tpu.dot_dimension_numbers<[1], [0], [0], [1], [0, 0, 1, 1], [], []>, precision = #tpu.contract_precision<fp32>} : vector<2x32xf32>, vector<32x5xf32>, vector<2x5xf32> -> vector<2x5xf32>
    %c0_140 = arith.constant 0 : index
    %c0_141 = arith.constant 0 : index
    %325 = vector.load %arg7[%c0_140, %c0_141] : memref<1x5xf32, #tpu.memory_space<vmem>>, vector<1x5xf32>
    %326 = vector.broadcast %325 : vector<1x5xf32> to vector<2x5xf32>
    %327 = arith.addf %324, %326 : vector<2x5xf32>
    %cst_142 = arith.constant dense<0xFF800000> : vector<2xf32>
    %328 = vector.multi_reduction <maximumf>, %327, %cst_142 [1] : vector<2x5xf32> to vector<2xf32>
    %329 = vector.shape_cast %328 : vector<2xf32> to vector<2x1xf32>
    %330 = vector.broadcast %329 : vector<2x1xf32> to vector<2x5xf32>
    %331 = arith.subf %327, %330 : vector<2x5xf32>
    %332 = math.exp %331 : vector<2x5xf32>
    %cst_143 = arith.constant dense<0.000000e+00> : vector<2xf32>
    %333 = vector.multi_reduction <add>, %332, %cst_143 [1] : vector<2x5xf32> to vector<2xf32>
    %334 = vector.shape_cast %333 : vector<2xf32> to vector<2x1xf32>
    %335 = tpu.reciprocal %334 : vector<2x1xf32> -> vector<2x1xf32>
    %336 = vector.broadcast %335 : vector<2x1xf32> to vector<2x5xf32>
    %337 = arith.mulf %332, %336 : vector<2x5xf32>
    %c0_144 = arith.constant 0 : index
    %c0_145 = arith.constant 0 : index
    %338 = vector.load %arg8[%c0_144, %c0_145] : memref<2x5xf32, #tpu.memory_space<vmem>>, vector<2x5xf32>
    tpu.vector_store %arg8[%c0_144, %c0_145], %337 {strides = array<i32>} : memref<2x5xf32, #tpu.memory_space<vmem>>, vector<2x5xf32>,
    return
  }
}

</mosaic_0001>

<bundles_post_ra>
// kernel: tpu_custom_call.1
= control target key start
LH: loop header
LB: loop body
LE: loop exit
PB: predicated region body
PF: predicated region fallthrough
CT: control target
= control target key end

     0   :  { %13 = vsyncpa [#allocation6], 0  ;;  %s10044_s0 = inlined_call_operand.vmem [shape: f32[16,64], index: 0, kind: input, shape index: {}]   ;;  %s10045_s1 = inlined_call_operand.vmem [shape: f32[8,2,64], index: 1, kind: input, shape index: {}]   ;;  %s10046_s2 = inlined_call_operand.hbm [shape: f32[64,256], index: 2, kind: input, shape index: {}]   ;;  %s10047_s3 = inlined_call_operand.hbm [shape: f32[64,256], index: 3, kind: input, shape index: {}]   ;;  %s10048_s4 = inlined_call_operand.vmem [shape: f32[1,256], index: 4, kind: input, shape index: {}]   ;;  %s10049_s5 = inlined_call_operand.vmem [shape: f32[1,32], index: 5, kind: input, shape index: {}]   ;;  %s10050_s6 = inlined_call_operand.vmem [shape: f32[32,5], index: 6, kind: input, shape index: {}]   ;;  %s10051_s7 = inlined_call_operand.vmem [shape: f32[1,5], index: 7, kind: input, shape index: {}]   ;;  %s10052_s8 = inlined_call_operand.hbm [shape: f32[2,5], index: 8, kind: output, shape index: {}]  }
   0x1   :  { %14 = vsyncpa [#allocation9], 0 }
   0x2   :  { %15 = vsyncpa [#allocation7], 0  ;;  %s8608_s27 = smov [#allocation5]   ;;  %s8536_s9 = scalar_lea.hbm %s10046_s2, 2048 }
   0x3   :  { %s25_s28 = sshll.u32 %s8608_s27, 4  ;;  %p8537_p0 = scmp.ne.s32.totalorder %s10046_s2, %s8536_s9  ;;  %s26_s28 = int_to_ptr.vmem [resolvable:$true] %s25_s28 }
   0x4   :  { %p8540_p1 = scmp.lt.u32.totalorder %s8536_s9, %s10046_s2 }
   0x6   :  { %p8542_p2 = pnand %p8540_p1, %p8537_p0 }
   0x8   :  { %8545 = shalt.err (!%p8542_p2)
}
   0x9   :  { %s8546_s14 = scalar_lea.vmem %s26_s28, 2048  ;;  %p8551_p4 = scmp.lt.s32.totalorder %s26_s28, %s26_s28 }
   0xa   :  { %p8547_p3 = scmp.ne.s32.totalorder %s26_s28, %s8546_s14  ;;  %p8552_p5 = scmp.lt.s32.totalorder %s8546_s14, %s8546_s14 }
   0xc   :  { %p8553_p6 = por %p8552_p5, %p8551_p4 }
   0xe   :  { %p8554_p7 = pnand %p8553_p6, %p8547_p3 }
  0x10   :  { %8557 = shalt.err (!%p8554_p7)
}
  0x11   :  { %s8609_s15 = smov 256   ;;  %s8610_s16 = smov 16  }
  0x12   :  { %31 = dma.hbm_to_vmem [thread:$0]  %s10046_s2, 2048, %s26_s28, [#allocation6], %s8609_s15, %s8609_s15, %s8610_s16  }
  0x13   :  { %s8611_s19 = smov [#allocation8]   ;;  %s8558_s23 = scalar_lea.hbm %s10047_s3, 2048 }
  0x14   :  { %s37_s20 = sshll.u32 %s8611_s19, 4  ;;  %p8559_p8 = scmp.ne.s32.totalorder %s10047_s3, %s8558_s23  ;;  %s38_s20 = int_to_ptr.vmem [resolvable:$true] %s37_s20 }
  0x15   :  { %p8562_p9 = scmp.lt.u32.totalorder %s8558_s23, %s10047_s3 }
  0x17   :  { %p8564_p10 = pnand %p8562_p9, %p8559_p8 }
  0x19   :  { %8567 = shalt.err (!%p8564_p10)
}
  0x1a   :  { %s8568_s29 = scalar_lea.vmem %s38_s20, 2048  ;;  %p8573_p12 = scmp.lt.s32.totalorder %s38_s20, %s38_s20 }
  0x1b   :  { %p8569_p11 = scmp.ne.s32.totalorder %s38_s20, %s8568_s29  ;;  %p8574_p13 = scmp.lt.s32.totalorder %s8568_s29, %s8568_s29 }
  0x1d   :  { %p8575_p0 = por %p8574_p13, %p8573_p12 }
  0x1f   :  { %p8576_p1 = pnand %p8575_p0, %p8569_p11 }
  0x21   :  { %8579 = shalt.err (!%p8576_p1)
}
  0x22   :  { %43 = dma.hbm_to_vmem [thread:$0]  %s10047_s3, 2048, %s38_s20, [#allocation9], %s8609_s15, %s8609_s15, %s8610_s16  }
  0x23   :  { %8602 = dma.done.wait [#allocation6], 2048  }
  0x24   :  { %8603 = vsyncadd [#allocation6], 4294965248 }
  0x25   :  { %8604 = dma.done.wait [#allocation9], 2048  }
  0x26   :  { %8605 = vsyncadd [#allocation9], 4294965248  ;;  %v10072_v0 = vmov 0.0   ;;  %v61_v1 = vld [vmem:[#allocation5 + $0x8] sm:$0xff]  ;;  %v63_v2 = vld [vmem:[#allocation5 + $0x18] sm:$0xff]  ;;  %vm88_vm0 = vcmask 523264  }
  0x27   :  { %175 = vmatprep.mubr.f32.mxu1 %v10072_v0  ;;  %342 = vmatprep.mubr.f32.mxu0 %v10072_v0  ;;  %v60_v3 = vld [vmem:[#allocation5] sm:$0xff]  ;;  %v95_v4 = vand.u32 4294901760, %v61_v1  ;;  %v99_v5 = vand.u32 4294901760, %v63_v2  ;;  %v62_v6 = vld [vmem:[#allocation5 + $0x10] sm:$0xff]  ;;  %v65_v8 = vld [vmem:[#allocation5 + $0x28] sm:$0xff]  ;;  %vm1511_vm3 = vcmask 254976  }
  0x28   :  { %v97_v7 = vand.u32 4294901760, %v60_v3  ;;  %v67_v9 = vld [vmem:[#allocation5 + $0x38] sm:$0xff]  ;;  %v101_v10 = vand.u32 4294901760, %v62_v6  ;;  %v103_v11 = vand.u32 4294901760, %v65_v8  ;;  %v64_v13 = vld [vmem:[#allocation5 + $0x20] sm:$0xff]  ;;  %v66_v14 = vld [vmem:[#allocation5 + $0x30] sm:$0xff] }
  0x29   :  { %v107_v12 = vand.u32 4294901760, %v67_v9  ;;  %v8690_v15 = vpack.c.bf16 %v99_v5, %v95_v4  ;;  %v105_v17 = vand.u32 4294901760, %v64_v13  ;;  %v109_v18 = vand.u32 4294901760, %v66_v14  ;;  %v69_v19 = vld [vmem:[#allocation5 + $0x48] sm:$0xff]  ;;  %v71_v20 = vld [vmem:[#allocation5 + $0x58] sm:$0xff]  ;;  %v68_v25 = vld [vmem:[#allocation5 + $0x40] sm:$0xff] }
  0x2a   :  { %v8692_v16 = vsub.f32 %v60_v3, %v97_v7  ;;  %v8694_v21 = vpack.c.bf16 %v101_v10, %v97_v7  ;;  %v8696_v22 = vsub.f32 %v62_v6, %v101_v10  ;;  %v8700_v24 = vsub.f32 %v65_v8, %v103_v11  ;;  %v70_v26 = vld [vmem:[#allocation5 + $0x50] sm:$0xff]  ;;  %v73_v39 = vld [vmem:[#allocation5 + $0x68] sm:$0xff]  ;;  %v75_v44 = vld [vmem:[#allocation5 + $0x78] sm:$0xff]  ;;  %s8614_s26 = smov 96   ;;  %s8618_s29 = smov [#allocation10]  }
  0x2b   :  { %v8698_v23 = vpack.c.bf16 %v107_v12, %v103_v11  ;;  %7373 = vmatprep.subr.bf16.mxu1 %v8690_v15  ;;  %v8703_v27 = vsub.f32 %v67_v9, %v107_v12  ;;  %v8705_v28 = vpack.c.bf16 %v109_v18, %v105_v17  ;;  %v8707_v29 = vsub.f32 %v64_v13, %v105_v17  ;;  %v72_v57 = vld [vmem:[#allocation5 + $0x60] sm:$0xff]  ;;  %v74_v58 = vld [vmem:[#allocation5 + $0x70] sm:$0xff]  ;;  %v8768_v13 = vld [vmem:[#allocation8 + $0x8] sm:$0xff]  ;;  %s7241_s2 = sshll.u32 %s8618_s29, 4  ;;  %s7242_s2 = int_to_ptr.vmem [resolvable:$true] %s7241_s2 }
  0x2c   :  { %v8709_v30 = vsub.f32 %v66_v14, %v109_v18  ;;  %7375 = vmatpush1.bf16.msra.mxu1 %v8694_v21  ;;  %v111_v31 = vand.u32 4294901760, %v69_v19  ;;  %v115_v32 = vand.u32 4294901760, %v71_v20  ;;  %v8712_v33 = vsub.f32 %v61_v1, %v95_v4  ;;  %v58_v8 = vld [vmem:[%s10044_s0] sm:$0xff]  ;;  %p8585_p3 = scmp.lt.s32.totalorder %s7242_s2, %s7242_s2 }
  0x2d   :  { %v8714_v34 = vsub.f32 %v63_v2, %v99_v5  ;;  %7377 = vmatprep.subr.bf16.mxu1 %v8698_v23  ;;  %v113_v35 = vand.u32 4294901760, %v68_v25  ;;  %v117_v36 = vand.u32 4294901760, %v70_v26  ;;  %v10067_v37 = vand.u32 4294901760, %v8692_v16 }
  0x2e   :  { %v10066_v38 = vand.u32 4294901760, %v8696_v22  ;;  %v8719_v40 = vpack.c.bf16 %v115_v32, %v111_v31  ;;  %v8721_v41 = vsub.f32 %v69_v19, %v111_v31  ;;  %v8723_v42 = vsub.f32 %v71_v20, %v115_v32  ;;  %v8776_v20 = vld [vmem:[#allocation8 + $0x18] sm:$0xff] }
  0x2f   :  { %v10069_v43 = vand.u32 4294901760, %v8712_v33  ;;  %v10068_v45 = vand.u32 4294901760, %v8714_v34  ;;  %v8727_v46 = vpack.c.bf16 %v117_v36, %v113_v35  ;;  %v8729_v47 = vsub.f32 %v68_v25, %v113_v35 }
  0x30   :  { %v8731_v48 = vsub.f32 %v70_v26, %v117_v36  ;;  %7379 = vmatpush1.bf16.msra.mxu1 %v8705_v28  ;;  %v207_v50 = vsub.f32 %v8692_v16, %v10067_v37  ;;  %v219_v51 = vsub.f32 %v8696_v22, %v10066_v38  ;;  %v119_v52 = vand.u32 4294901760, %v73_v39  ;;  %v8885_v38 = vld [vmem:[#allocation8 + $0x68] sm:$0xff]  ;;  %v8887_v37 = vld [vmem:[#allocation8 + $0x78] sm:$0xff] }
  0x31   :  { %v201_v49 = vsub.f32 %v8712_v33, %v10069_v43  ;;  %7381 = vmatprep.subr.bf16.mxu1 %v8719_v40  ;;  %v213_v53 = vsub.f32 %v8714_v34, %v10068_v45  ;;  %v123_v54 = vand.u32 4294901760, %v75_v44  ;;  %v10064_v55 = vand.u32 4294901760, %v8700_v24 }
  0x32   :  { %v10062_v56 = vand.u32 4294901760, %v8703_v27  ;;  %v208_v60 = vand.u32 4294901760, %v207_v50  ;;  %v220_v61 = vand.u32 4294901760, %v219_v51  ;;  %v8749_v62 = vsub.f32 %v73_v39, %v119_v52 }
  0x33   :  { %v202_v59 = vand.u32 4294901760, %v201_v49  ;;  %v214_v63 = vand.u32 4294901760, %v213_v53  ;;  %v8751_v1 = vpack.c.bf16 %v123_v54, %v119_v52  ;;  %v8753_v2 = vsub.f32 %v75_v44, %v123_v54  ;;  %v8791_v49 = vld [vmem:[#allocation8] sm:$0xff] }
  0x34   :  { %v225_v3 = vsub.f32 %v8700_v24, %v10064_v55  ;;  %7383 = vmatpush1.bf16.msra.mxu1 %v8727_v46  ;;  %v7390_v4 = vpack.c.bf16 %v220_v61, %v208_v60  ;;  %v237_v5 = vsub.f32 %v8703_v27, %v10062_v56  ;;  %v121_v6 = vand.u32 4294901760, %v72_v57  ;;  %v8805_v60 = vld [vmem:[#allocation8 + $0x10] sm:$0xff]  ;;  %v8807_v61 = vld [vmem:[#allocation8 + $0x28] sm:$0xff] }
  0x35   :  { %v125_v7 = vand.u32 4294901760, %v74_v58  ;;  %v7388_v9 = vpack.c.bf16 %v214_v63, %v202_v59  ;;  %7385 = vmatprep.subr.bf16.mxu1 %v8751_v1  ;;  %v10058_v11 = vand.u32 4294901760, %v8707_v29  ;;  %v10057_v12 = vand.u32 4294901760, %v8709_v30  ;;  %v8874_v56 = vld [vmem:[#allocation8 + $0x50] sm:$0xff] }
  0x36   :  { %v226_v10 = vand.u32 4294901760, %v225_v3  ;;  %v238_v14 = vand.u32 4294901760, %v237_v5  ;;  %v8772_v18 = vsub.f32 %v72_v57, %v121_v6  ;;  %v90_v31 = vsel %vm88_vm0, %v58_v8, 0 }
  0x37   :  { %v8770_v17 = vpack.c.bf16 %v125_v7, %v121_v6  ;;  %v8774_v19 = vsub.f32 %v74_v58, %v125_v7  ;;  %7389 = vmatprep.subr.bf16.mxu0 %v7388_v9  ;;  %v231_v25 = vsub.f32 %v8707_v29, %v10058_v11  ;;  %v243_v26 = vsub.f32 %v8709_v30, %v10057_v12  ;;  %v8852_v12 = vld [vmem:[#allocation8 + $0x48] sm:$0xff]  ;;  %v8854_v11 = vld [vmem:[#allocation8 + $0x58] sm:$0xff] }
  0x38   :  { %10114 = vst [vmem:[#allocation14_spill] sm:$0xff] %v8772_v18  ;;  %v10056_v32 = vand.u32 4294901760, %v8721_v41  ;;  %7391 = vmatpush1.bf16.msra.mxu0 %v7390_v4  ;;  %v7392_v35 = vpack.c.bf16 %v238_v14, %v226_v10  ;;  %v8787_v36 = vand.u32 4294901760, %v90_v31  ;;  %v10055_v39 = vand.u32 4294901760, %v8723_v42  ;;  %v8823_v10 = vld [vmem:[#allocation8 + $0x38] sm:$0xff] }
  0x39   :  { %10115 = vst [vmem:[#allocation15_spill] sm:$0xff] %v8774_v19  ;;  %7387 = vmatpush1.bf16.msra.mxu1 %v8770_v17  ;;  %v825_v44 = vand.u32 4294901760, %v8768_v13  ;;  %v232_v50 = vand.u32 4294901760, %v231_v25  ;;  %v244_v51 = vand.u32 4294901760, %v243_v26  ;;  %v10080_v53 = vand.u32 4294901760, %v8776_v20 }
  0x3a   :  { %10116 = vst [vmem:[#allocation16_spill] sm:$0xff] %v8787_v36  ;;  %v249_v52 = vsub.f32 %v8721_v41, %v10056_v32  ;;  %7393 = vmatprep.subr.bf16.mxu0 %v7392_v35  ;;  %v8798_v54 = vsub.f32 %v90_v31, %v8787_v36  ;;  %v261_v57 = vsub.f32 %v8723_v42, %v10055_v39  ;;  %v10054_v58 = vand.u32 4294901760, %v8729_v47 }
  0x3b   :  { %v10053_v59 = vand.u32 4294901760, %v8731_v48  ;;  %v7394_v63 = vpack.c.bf16 %v244_v51, %v232_v50  ;;  %v8813_v4 = vpack.c.bf16 %v10080_v53, %v825_v44  ;;  %v10077_v5 = vand.u32 4294901760, %v8791_v49 }
  0x3c   :  { %v250_v3 = vand.u32 4294901760, %v249_v52  ;;  %v10060_v6 = vand.u32 4294901760, %v8798_v54  ;;  %v262_v7 = vand.u32 4294901760, %v261_v57  ;;  %v255_v8 = vsub.f32 %v8729_v47, %v10054_v58  ;;  %v8833_v57 = vld [vmem:[#allocation8 + $0x20] sm:$0xff] }
  0x3d   :  { %v267_v9 = vsub.f32 %v8731_v48, %v10053_v59  ;;  %7395 = vmatpush1.bf16.msra.mxu0 %v7394_v63  ;;  %7469 = vmatprep.subr.bf16.mxu1 %v8813_v4  ;;  %v10076_v14 = vand.u32 4294901760, %v8805_v60  ;;  %v10059_v25 = vand.u32 4294901760, %v8749_v62  ;;  %v10061_v26 = vand.u32 4294901760, %v8753_v2 }
  0x3e   :  { %v10071_v31 = vand.u32 4294901760, %v8807_v61  ;;  %v179_v35 = vsub.f32 %v8798_v54, %v10060_v6  ;;  %v7396_v50 = vpack.c.bf16 %v262_v7, %v250_v3  ;;  %v256_v51 = vand.u32 4294901760, %v255_v8  ;;  %v8848_v7 = vld [vmem:[#allocation8 + $0x30] sm:$0xff] }
  0x3f   :  { %v268_v52 = vand.u32 4294901760, %v267_v9  ;;  %v8839_v63 = vpack.c.bf16 %v10076_v14, %v10077_v5  ;;  %v273_v59 = vsub.f32 %v8749_v62, %v10059_v25  ;;  %v285_v58 = vsub.f32 %v8753_v2, %v10061_v26 }
  0x40   :  { %v10070_v3 = vand.u32 4294901760, %v8823_v10  ;;  %v180_v8 = vand.u32 4294901760, %v179_v35  ;;  %7397 = vmatprep.subr.bf16.mxu0 %v7396_v50  ;;  %v10063_v39 = vand.u32 4294901760, %v8772_v18  ;;  %v10065_v32 = vand.u32 4294901760, %v8774_v19  ;;  %v8863_v50 = vld [vmem:[#allocation8 + $0x40] sm:$0xff] }
  0x41   :  { %10117 = vst [vmem:[#allocation17_spill] sm:$0xff] %v8839_v63  ;;  %v7398_v9 = vpack.c.bf16 %v268_v52, %v256_v51  ;;  %v274_v25 = vand.u32 4294901760, %v273_v59  ;;  %v286_v6 = vand.u32 4294901760, %v285_v58  ;;  %v10075_v35 = vand.u32 4294901760, %v8833_v57 }
  0x42   :  { %v8860_v26 = vpack.c.bf16 %v10070_v3, %v10071_v31  ;;  %181 = vmatmul.mubr.f32.vlgmr.msra.gmra.mrb[0].mxu1 %v180_v8  ;;  %v279_v51 = vsub.f32 %v8772_v18, %v10063_v39  ;;  %v291_v58 = vsub.f32 %v8774_v19, %v10065_v32  ;;  %v10074_v59 = vand.u32 4294901760, %v8848_v7  ;;  %v59_v8 = vld [vmem:[%s10044_s0 + $0x8] sm:$0xff]  ;;  %v8897_v3 = vld [vmem:[#allocation8 + $0x60] sm:$0xff]  ;;  %v8899_v31 = vld [vmem:[#allocation8 + $0x70] sm:$0xff] }
  0x43   :  { %7399 = vmatpush1.bf16.msra.mxu0 %v7398_v9  ;;  %v7404_v52 = vpack.c.bf16 %v8714_v34, %v8712_v33  ;;  %7471 = vmatpush1.bf16.msra.mxu1 %v8839_v63  ;;  %v7400_v9 = vpack.c.bf16 %v286_v6, %v274_v25  ;;  %v10079_v39 = vand.u32 4294901760, %v8852_v12  ;;  %v10078_v55 = vand.u32 4294901760, %v8854_v11 }
  0x44   :  { %10118 = vst [vmem:[#allocation18_spill] sm:$0xff] %v8860_v26  ;;  %v7406_v32 = vpack.c.bf16 %v8696_v22, %v8692_v16  ;;  %186 = vmatprep.mubr.f32.mxu1 %v10072_v0  ;;  %7473 = vmatprep.subr.bf16.mxu1 %v8860_v26  ;;  %v280_v45 = vand.u32 4294901760, %v279_v51  ;;  %v292_v43 = vand.u32 4294901760, %v291_v58  ;;  %v8894_v6 = vpack.c.bf16 %v10074_v59, %v10075_v35 }
  0x45   :  { %v10082_v25 = vand.u32 4294901760, %v8863_v50  ;;  %7401 = vmatprep.subr.bf16.mxu0 %v7400_v9  ;;  %v8905_v0 = vpack.c.bf16 %v10078_v55, %v10079_v39  ;;  %v10081_v51 = vand.u32 4294901760, %v8874_v56  ;;  %v93_v58 = vsel %vm88_vm0, %v59_v8, 0 }
  0x46   :  { %10119 = vst [vmem:[#allocation19_spill] sm:$0xff] %v8894_v6  ;;  %v7408_v59 = vpack.c.bf16 %v8703_v27, %v8700_v24  ;;  %v7402_v35 = vpack.c.bf16 %v292_v43, %v280_v45  ;;  %v8911_v14 = vand.u32 4294901760, %v93_v58  ;;  %v10084_v5 = vand.u32 4294901760, %v8885_v38 }
  0x47   :  { %10120 = vst [vmem:[#allocation20_spill] sm:$0xff] %v8905_v0  ;;  %v10083_v9 = vand.u32 4294901760, %v8887_v37  ;;  %7475 = vmatpush1.bf16.msra.mxu1 %v8894_v6  ;;  %v8920_v55 = vpack.c.bf16 %v10081_v51, %v10082_v25  ;;  %v7410_v8 = vpack.c.bf16 %v8709_v30, %v8707_v29  ;;  %v10088_v39 = vand.u32 4294901760, %v8897_v3 }
  0x48   :  { %v10087_v43 = vand.u32 4294901760, %v8899_v31  ;;  %7403 = vmatpush1.bf16.msra.mxu0 %v7402_v35  ;;  %7477 = vmatprep.subr.bf16.mxu1 %v8905_v0  ;;  %v8928_v45 = vsub.f32 %v93_v58, %v8911_v14  ;;  %v7412_v51 = vpack.c.bf16 %v8723_v42, %v8721_v41  ;;  %v8947_v58 = vsub.f32 %v8768_v13, %v825_v44 }
  0x49   :  { %10121 = vst [vmem:[#allocation21_spill] sm:$0xff] %v8920_v55  ;;  %v8934_v53 = vpack.c.bf16 %v10083_v9, %v10084_v5  ;;  %7405 = vmatprep.subr.bf16.mxu0 %v7404_v52  ;;  %v10124_v25 = vand.u32 4294901760, %v8776_v20  ;;  %v7414_v5 = vpack.c.bf16 %v8731_v48, %v8729_v47  ;;  %v10125_v0 = vand.u32 4294901760, %v8791_v49 }
  0x4a   :  { %v8942_v35 = vpack.c.bf16 %v10087_v43, %v10088_v39  ;;  %v10126_v39 = vand.u32 4294901760, %v8805_v60  ;;  %v7416_v44 = vpack.c.bf16 %v8753_v2, %v8749_v62  ;;  %v10127_v52 = vand.u32 4294901760, %v8807_v61 }
  0x4b   :  { %10122 = vst [vmem:[#allocation22_spill] sm:$0xff] %v8934_v53  ;;  %v8952_v9 = vsub.f32 %v8776_v20, %v10124_v25  ;;  %v8960_v43 = vsub.f32 %v8791_v49, %v10125_v0  ;;  %344 = vmatmul.mubr.f32.vlgmr.msra.gmra.mrb[0].mxu0 %v8787_v36  ;;  %7479 = vmatpush1.bf16.msra.mxu1 %v8920_v55  ;;  %v10128_v49 = vand.u32 4294901760, %v8823_v10  ;;  %v10132_v55 = vmov 0.0  }
  0x4c   :  { %10123 = vst [vmem:[#allocation23_spill] sm:$0xff] %v8942_v35  ;;  %v8965_v13 = vsub.f32 %v8805_v60, %v10126_v39  ;;  %v8976_v0 = vsub.f32 %v8807_v61, %v10127_v52  ;;  %7407 = vmatpush1.bf16.msra.mxu0 %v7406_v32  ;;  %v10129_v60 = vand.u32 4294901760, %v8928_v45  ;;  %7481 = vmatprep.subr.bf16.mxu1 %v8934_v53  ;;  %v10130_v52 = vand.u32 4294901760, %v8947_v58 }
  0x4d   :  { %v8981_v39 = vsub.f32 %v8823_v10, %v10128_v49  ;;  %v7418_v61 = vpack.c.bf16 %v8774_v19, %v8772_v18  ;;  %7409 = vmatprep.subr.bf16.mxu0 %v7408_v59  ;;  %v10131_v32 = vand.u32 4294901760, %v8952_v9  ;;  %349 = vmatprep.mubr.f32.mxu0 %v10132_v55  ;;  %v10133_v25 = vand.u32 4294901760, %v8960_v43 }
  0x4e   :  { %v190_v36 = vsub.f32 %v8928_v45, %v10129_v60  ;;  %v920_v10 = vsub.f32 %v8947_v58, %v10130_v52  ;;  %v10134_v59 = vand.u32 4294901760, %v8965_v13  ;;  %v10135_v52 = vand.u32 4294901760, %v8833_v57 }
  0x4f   :  { %v932_v49 = vsub.f32 %v8952_v9, %v10131_v32  ;;  %v926_v6 = vsub.f32 %v8960_v43, %v10133_v25  ;;  %7483 = vmatpush1.bf16.msra.mxu1 %v8942_v35  ;;  %v10136_v20 = vand.u32 4294901760, %v8976_v0  ;;  %v10137_v19 = vand.u32 4294901760, %v8981_v39  ;;  %351 = vmatmul.mubr.f32.gmra.mrb[2].mxu0 %v8911_v14 }
  0x50   :  { %v191_v53 = vand.u32 4294901760, %v190_v36  ;;  %v938_v26 = vsub.f32 %v8965_v13, %v10134_v59  ;;  %v9009_v63 = vsub.f32 %v8833_v57, %v10135_v52  ;;  %v921_v32 = vand.u32 4294901760, %v920_v10  ;;  %7411 = vmatpush1.bf16.msra.mxu0 %v7410_v8  ;;  %453 = vmatprep.mubr.f32.mxu0 %v10132_v55 }
  0x51   :  { %v933_v60 = vand.u32 4294901760, %v932_v49  ;;  %v944_v36 = vsub.f32 %v8976_v0, %v10136_v20  ;;  %v956_v25 = vsub.f32 %v8981_v39, %v10137_v19  ;;  %v927_v59 = vand.u32 4294901760, %v926_v6  ;;  %7413 = vmatprep.subr.bf16.mxu0 %v7412_v51 }
  0x52   :  { %192 = vmatmul.mubr.f32.gmra.mrb[2].mxu1 %v191_v53  ;;  %v939_v18 = vand.u32 4294901760, %v938_v26  ;;  %v949_v57 = vand.u32 4294901760, %v9009_v63  ;;  %v10138_v52 = vand.u32 4294901760, %v8848_v7  ;;  %v10139_v35 = vand.u32 4294901760, %v8852_v12 }
  0x53   :  { %905 = vmatprep.mubr.f32.mxu1 %v10132_v55  ;;  %v9026_v20 = vpack.c.bf16 %v933_v60, %v921_v32  ;;  %v945_v49 = vand.u32 4294901760, %v944_v36  ;;  %v957_v19 = vand.u32 4294901760, %v956_v25  ;;  %v10140_v51 = vand.u32 4294901760, %v8854_v11 }
  0x54   :  { %v9023_v10 = vsub.f32 %v8848_v7, %v10138_v52  ;;  %v9031_v53 = vsub.f32 %v8852_v12, %v10139_v35  ;;  %v9033_v26 = vpack.c.bf16 %v939_v18, %v927_v59  ;;  %v950_v6 = vsub.f32 %v9009_v63, %v949_v57  ;;  %7415 = vmatpush1.bf16.msra.mxu0 %v7414_v5 }
  0x55   :  { %v9043_v8 = vsub.f32 %v8854_v11, %v10140_v51  ;;  %7485 = vmatprep.subr.bf16.mxu1 %v9026_v20  ;;  %v9046_v60 = vpack.c.bf16 %v957_v19, %v945_v49  ;;  %v10141_v18 = vand.u32 4294901760, %v8863_v50  ;;  %v10142_v32 = vand.u32 4294901760, %v8874_v56  ;;  %7417 = vmatprep.subr.bf16.mxu0 %v7416_v44 }
  0x56   :  { %v10109_v7 = vand.u32 4294901760, %v9023_v10  ;;  %v10106_v12 = vand.u32 4294901760, %v9031_v53  ;;  %911 = vmatmul.mubr.f32.vlgmr.msra.gmra.mrb[4].mxu1 %v10132_v55  ;;  %v951_v11 = vand.u32 4294901760, %v950_v6  ;;  %v10143_v52 = vand.u32 4294901760, %v8885_v38 }
  0x57   :  { %v9052_v35 = vsub.f32 %v8863_v50, %v10141_v18  ;;  %v9057_v36 = vsub.f32 %v8874_v56, %v10142_v32  ;;  %v10105_v59 = vand.u32 4294901760, %v9043_v8  ;;  %7487 = vmatpush1.bf16.msra.mxu1 %v9033_v26  ;;  %v10144_v19 = vand.u32 4294901760, %v8887_v37  ;;  %1061 = vmatprep.mubr.f32.mxu1 %v10132_v55 }
  0x58   :  { %v962_v25 = vsub.f32 %v9023_v10, %v10109_v7  ;;  %v9067_v50 = vsub.f32 %v8885_v38, %v10143_v52  ;;  %v968_v56 = vsub.f32 %v9031_v53, %v10106_v12  ;;  %7489 = vmatprep.subr.bf16.mxu1 %v9046_v60  ;;  %v10145_v18 = vand.u32 4294901760, %v8897_v3  ;;  %7419 = vmatpush1.bf16.msra.mxu0 %v7418_v61 }
  0x59   :  { %v10107_v5 = vand.u32 4294901760, %v9052_v35  ;;  %v10108_v49 = vand.u32 4294901760, %v9057_v36  ;;  %v9078_v6 = vsub.f32 %v8887_v37, %v10144_v19  ;;  %v980_v44 = vsub.f32 %v9043_v8, %v10105_v59  ;;  %7421 = vmatprep.subr.bf16.mxu0 %v8690_v15 }
  0x5a   :  { %v963_v38 = vand.u32 4294901760, %v962_v25  ;;  %v10113_v51 = vand.u32 4294901760, %v9067_v50  ;;  %v9088_v32 = vsub.f32 %v8897_v3, %v10145_v18  ;;  %v969_v52 = vand.u32 4294901760, %v968_v56 }
  0x5b   :  { %v974_v37 = vsub.f32 %v9052_v35, %v10107_v5  ;;  %v986_v25 = vsub.f32 %v9057_v36, %v10108_v49  ;;  %v10110_v19 = vand.u32 4294901760, %v9078_v6  ;;  %v981_v12 = vand.u32 4294901760, %v980_v44  ;;  %456 = vmatmul.mubr.f32.vlgmr.msra.gmra.mrb[0].mxu0 %v8798_v54 }
  0x5c   :  { %v9098_v59 = vpack.c.bf16 %v963_v38, %v951_v11  ;;  %v992_v3 = vsub.f32 %v9067_v50, %v10113_v51  ;;  %v10112_v56 = vand.u32 4294901760, %v9088_v32  ;;  %v10146_v7 = vand.u32 4294901760, %v8899_v31  ;;  %7423 = vmatpush1.bf16.msra.mxu0 %v8694_v21  ;;  %461 = vmatprep.mubr.f32.mxu0 %v10132_v55 }
  0x5d   :  { %v975_v18 = vand.u32 4294901760, %v974_v37  ;;  %v987_v5 = vand.u32 4294901760, %v986_v25  ;;  %v1004_v49 = vsub.f32 %v9078_v6, %v10110_v19  ;;  %v9114_v11 = vpack.c.bf16 %v981_v12, %v969_v52  ;;  %7425 = vmatprep.subr.bf16.mxu0 %v8698_v23 }
  0x5e   :  { %v9111_v61 = vsub.f32 %v8899_v31, %v10146_v7  ;;  %7491 = vmatpush1.bf16.msra.mxu1 %v9098_v59  ;;  %v993_v38 = vand.u32 4294901760, %v992_v3  ;;  %v998_v44 = vsub.f32 %v9088_v32, %v10112_v56  ;;  %v9147_v3 = vpack.c.bf16 %v8965_v13, %v8960_v43 }
  0x5f   :  { %v9120_v37 = vpack.c.bf16 %v987_v5, %v975_v18  ;;  %v1005_v25 = vand.u32 4294901760, %v1004_v49  ;;  %7493 = vmatprep.subr.bf16.mxu1 %v9114_v11  ;;  %464 = vmatmul.mubr.f32.gmra.mrb[2].mxu0 %v8928_v45  ;;  %v9138_v49 = vpack.c.bf16 %v8952_v9, %v8947_v58  ;;  %v9153_v18 = vpack.c.bf16 %v8981_v39, %v8976_v0 }
  0x60   :  { %v10111_v19 = vand.u32 4294901760, %v9111_v61  ;;  %v999_v7 = vand.u32 4294901760, %v998_v44  ;;  %7427 = vmatpush1.bf16.msra.mxu0 %v8705_v28  ;;  %550 = vmatprep.mubr.f32.mxu0 %v10132_v55  ;;  %v10148_v44 = vand.u32 4294901760, %v8714_v34  ;;  %v10149_v34 = vand.u32 4294901760, %v8692_v16 }
  0x61   :  { %v9126_v31 = vpack.c.bf16 %v1005_v25, %v993_v38  ;;  %7429 = vmatprep.subr.bf16.mxu0 %v8719_v40  ;;  %v10147_v38 = vand.u32 4294901760, %v8712_v33  ;;  %v9171_v33 = vpack.c.bf16 %v9043_v8, %v9031_v53  ;;  %v10153_v56 = vand.u32 4294901760, %v8798_v54 }
  0x62   :  { %v1010_v12 = vsub.f32 %v9111_v61, %v10111_v19  ;;  %7495 = vmatpush1.bf16.msra.mxu1 %v9120_v37  ;;  %v9186_v51 = vpack.c.bf16 %v9057_v36, %v9052_v35  ;;  %v9191_v16 = vpack.c.bf16 %v9078_v6, %v9067_v50  ;;  %v10156_v54 = vand.u32 4294901760, %v8721_v41 }
  0x63   :  { %7497 = vmatprep.subr.bf16.mxu1 %v9126_v31  ;;  %v7436_v25 = vpack.c.bf16 %v10148_v44, %v10147_v38  ;;  %v10151_v38 = vand.u32 4294901760, %v8700_v24  ;;  %v10152_v44 = vand.u32 4294901760, %v8703_v27  ;;  %v10155_v24 = vand.u32 4294901760, %v8709_v30 }
  0x64   :  { %v1011_v5 = vand.u32 4294901760, %v1010_v12  ;;  %7431 = vmatpush1.bf16.msra.mxu0 %v8727_v46  ;;  %v10150_v12 = vand.u32 4294901760, %v8696_v22  ;;  %v10154_v22 = vand.u32 4294901760, %v8707_v29  ;;  %v10159_v29 = vand.u32 4294901760, %v8729_v47 }
  0x65   :  { %7433 = vmatprep.subr.bf16.mxu0 %v8751_v1  ;;  %v7440_v19 = vpack.c.bf16 %v10152_v44, %v10151_v38  ;;  %v10160_v30 = vand.u32 4294901760, %v8731_v48  ;;  %v10165_v44 = vld [vmem:[#allocation15_spill] sm:$0xff]  ;;  %v10167_v48 = vld [vmem:[#allocation17_spill] sm:$0xff]  ;;  %vm6594_vm15 = vcmask 1024  }
  0x66   :  { %v9141_v52 = vpack.c.bf16 %v1011_v5, %v999_v7  ;;  %v9164_v7 = vpack.c.bf16 %v9023_v10, %v9009_v63  ;;  %v7438_v5 = vpack.c.bf16 %v10150_v12, %v10149_v34  ;;  %v7442_v27 = vpack.c.bf16 %v10155_v24, %v10154_v22  ;;  %v10170_v24 = vld [vmem:[#allocation16_spill] sm:$0xff] }
  0x67   :  { %v9205_v34 = vpack.c.bf16 %v9111_v61, %v9088_v32  ;;  %v10158_v12 = vand.u32 4294901760, %v8928_v45  ;;  %v7446_v41 = vpack.c.bf16 %v10160_v30, %v10159_v29  ;;  %v10163_v45 = vld [vmem:[#allocation14_spill] sm:$0xff]  ;;  %v10166_v47 = vand.u32 4294901760, %v10165_v44 }
  0x68   :  { %7499 = vmatpush1.bf16.msra.mxu1 %v9141_v52  ;;  %7435 = vmatpush1.bf16.msra.mxu0 %v8770_v17  ;;  %v10164_v38 = vand.u32 4294901760, %v10163_v45  ;;  %v10178_v29 = vand.u32 4294901760, %v8965_v13  ;;  %v10184_v63 = vand.u32 4294901760, %v9052_v35 }
  0x69   :  { %7501 = vmatprep.subr.bf16.mxu1 %v9138_v49  ;;  %7437 = vmatprep.subr.bf16.mxu0 %v7436_v25 }
  0x6a   :  { %v7450_v22 = vpack.c.bf16 %v10166_v47, %v10164_v38 }
  0x6b   :  { %1063 = vmatmul.mubr.f32.vlgmr.msra.gmra.mrb[4].mxu1 %v10132_v55  ;;  %554 = vmatmul.mubr.f32.vlgmr.msra.gmra.mrb[0].mxu0 %v10153_v56  ;;  %v10157_v56 = vand.u32 4294901760, %v8723_v42  ;;  %v10161_v42 = vand.u32 4294901760, %v8749_v62  ;;  %v10168_v62 = vld [vmem:[#allocation18_spill] sm:$0xff] }
  0x6c   :  { %7503 = vmatpush1.bf16.msra.mxu1 %v9147_v3  ;;  %1165 = vmatprep.mubr.f32.mxu1 %v10132_v55 }
  0x6d   :  { %7505 = vmatprep.subr.bf16.mxu1 %v9153_v18  ;;  %7439 = vmatpush1.bf16.msra.mxu0 %v7438_v5  ;;  %v7444_v25 = vpack.c.bf16 %v10157_v56, %v10156_v54  ;;  %v10172_v54 = vld [vmem:[#allocation21_spill] sm:$0xff]  ;;  %v10173_v56 = vld [vmem:[#allocation22_spill] sm:$0xff] }
  0x6e   :  { %7441 = vmatprep.subr.bf16.mxu0 %v7440_v19  ;;  %559 = vmatprep.mubr.f32.mxu0 %v10132_v55  ;;  %v10162_v19 = vand.u32 4294901760, %v8753_v2  ;;  %v10169_v2 = vld [vmem:[#allocation19_spill] sm:$0xff] }
  0x6f   :  { %563 = vmatmul.mubr.f32.gmra.mrb[2].mxu0 %v10158_v12 }
  0x70   :  { %7507 = vmatpush1.bf16.msra.mxu1 %v9164_v7  ;;  %v7448_v5 = vpack.c.bf16 %v10162_v19, %v10161_v42  ;;  %681 = vmatprep.mubr.f32.mxu0 %v10132_v55  ;;  %v76_v42 = vld [vmem:[%s10048_s4] sm:$0x3]  ;;  %s8613_s4 = smov 64  }
  0x71   :  { %7509 = vmatprep.subr.bf16.mxu1 %v9171_v33  ;;  %7443 = vmatpush1.bf16.msra.mxu0 %v7442_v27  ;;  %v10171_v27 = vld [vmem:[#allocation20_spill] sm:$0xff] }
  0x72   :  { %7445 = vmatprep.subr.bf16.mxu0 %v7444_v25  ;;  %v10175_v25 = vand.u32 4294901760, %v8952_v9  ;;  %v10180_v9 = vand.u32 4294901760, %v8981_v39 }
  0x74   :  { %7511 = vmatpush1.bf16.msra.mxu1 %v9186_v51 }
  0x75   :  { %7513 = vmatprep.subr.bf16.mxu1 %v9191_v16  ;;  %7447 = vmatpush1.bf16.msra.mxu0 %v7446_v41 }
  0x76   :  { %7449 = vmatprep.subr.bf16.mxu0 %v7448_v5 }
  0x78   :  { %7515 = vmatpush1.bf16.msra.mxu1 %v9205_v34 }
  0x79   :  { %7517 = vmatprep.subr.bf16.mxu1 %v8813_v4  ;;  %7451 = vmatpush1.bf16.msra.mxu0 %v7450_v22 }
  0x7a   :  { %7453 = vmatprep.subr.bf16.mxu0 %v8690_v15  ;;  %v10174_v15 = vand.u32 4294901760, %v8947_v58 }
  0x7b   :  { %1168 = vmatmul.mubr.f32.vlgmr.msra.gmra.mrb[4].mxu1 %v10132_v55 }
  0x7c   :  { %7519 = vmatpush1.bf16.msra.mxu1 %v10167_v48  ;;  %1254 = vmatprep.mubr.f32.mxu1 %v10132_v55  ;;  %v9244_v12 = vpack.c.bf16 %v10175_v25, %v10174_v15 }
  0x7d   :  { %7521 = vmatprep.subr.bf16.mxu1 %v10168_v62  ;;  %683 = vmatmul.mubr.f32.vlgmr.msra.gmra.mrb[0].mxu0 %v10170_v24 }
  0x7e   :  { %7455 = vmatpush1.bf16.msra.mxu0 %v8694_v21  ;;  %688 = vmatprep.mubr.f32.mxu0 %v10132_v55  ;;  %v10176_v21 = vld [vmem:[#allocation23_spill] sm:$0xff] }
  0x7f   :  { %7457 = vmatprep.subr.bf16.mxu0 %v8698_v23  ;;  %v10177_v23 = vand.u32 4294901760, %v8960_v43 }
  0x80   :  { %7523 = vmatpush1.bf16.msra.mxu1 %v10169_v2 }
  0x81   :  { %7525 = vmatprep.subr.bf16.mxu1 %v10171_v27  ;;  %690 = vmatmul.mubr.f32.gmra.mrb[2].mxu0 %v8911_v14  ;;  %v9253_v30 = vpack.c.bf16 %v10178_v29, %v10177_v23 }
  0x82   :  { %7459 = vmatpush1.bf16.msra.mxu0 %v8705_v28  ;;  %776 = vmatprep.mubr.f32.mxu0 %v10132_v55  ;;  %v10179_v28 = vand.u32 4294901760, %v8976_v0  ;;  %v10185_v0 = vand.u32 4294901760, %v9057_v36 }
  0x83   :  { %7461 = vmatprep.subr.bf16.mxu0 %v8719_v40  ;;  %v10181_v40 = vand.u32 4294901760, %v9023_v10 }
  0x84   :  { %7527 = vmatpush1.bf16.msra.mxu1 %v10172_v54  ;;  %v9261_v58 = vpack.c.bf16 %v10180_v9, %v10179_v28  ;;  %v9288_v39 = vpack.c.bf16 %v10185_v0, %v10184_v63 }
  0x85   :  { %7529 = vmatprep.subr.bf16.mxu1 %v10173_v56  ;;  %v9270_v43 = vpack.c.bf16 %v10181_v40, %v949_v57  ;;  %v10187_v57 = vand.u32 4294901760, %v9078_v6 }
  0x86   :  { %7463 = vmatpush1.bf16.msra.mxu0 %v8727_v46  ;;  %v10182_v46 = vand.u32 4294901760, %v9031_v53  ;;  %v10188_v53 = vand.u32 4294901760, %v9088_v32  ;;  %v78_v32 = vlaneseq }
  0x87   :  { %7465 = vmatprep.subr.bf16.mxu0 %v8751_v1  ;;  %v10183_v1 = vand.u32 4294901760, %v9043_v8  ;;  %v10189_v8 = vand.u32 4294901760, %v9111_v61 }
  0x88   :  { %7531 = vmatpush1.bf16.msra.mxu1 %v10176_v21  ;;  %v79_v61 = vshrl.u32 %v78_v32, 7 }
  0x89   :  { %7533 = vmatprep.subr.bf16.mxu1 %v9244_v12  ;;  %v9279_v13 = vpack.c.bf16 %v10183_v1, %v10182_v46  ;;  %v9306_v35 = vpack.c.bf16 %v10189_v8, %v10188_v53 }
  0x8a   :  { %7467 = vmatpush1.bf16.msra.mxu0 %v8770_v17  ;;  %v10186_v17 = vand.u32 4294901760, %v9067_v50  ;;  %v80_v41 = vsub.s32 0, %v79_v61  ;;  %v84_v19 = vsub.s32 1, %v79_v61  ;;  %v812_v61 = vand.u32 127, %v78_v32 }
  0x8b   :  { %1258 = vmatmul.mubr.f32.vlgmr.msra.gmra.mrb[4].mxu1 %v10132_v55  ;;  %7565 = vmatprep.subr.bf16.mxu0 %v8813_v4 }
  0x8c   :  { %7535 = vmatpush1.bf16.msra.mxu1 %v9253_v30  ;;  %1376 = vmatprep.mubr.f32.mxu1 %v10132_v55  ;;  %v9296_v10 = vpack.c.bf16 %v10187_v57, %v10186_v17  ;;  %v81_v5 = vrot.slane %v76_v42, %v80_v41  ;;  %v85_v45 = vrot.slane %v76_v42, %v84_v19  ;;  %v9341_v41 = vadd.s32 128, %v812_v61 }
  0x8d   :  { %7537 = vmatprep.subr.bf16.mxu1 %v9261_v58  ;;  %778 = vmatmul.mubr.f32.vlgmr.msra.gmra.mrb[0].mxu0 %v10170_v24 }
  0x8e   :  { %783 = vmatprep.mubr.f32.mxu0 %v10132_v55  ;;  %7567 = vmatpush1.bf16.msra.mxu0 %v10167_v48  ;;  %vm817_vm1 = vcmp.lt.s32.totalorder %v9341_v41, 192 }
  0x8f   :  { %7569 = vmatprep.subr.bf16.mxu0 %v10168_v62 }
  0x90   :  { %7539 = vmatpush1.bf16.msra.mxu1 %v9270_v43 }
  0x91   :  { %7541 = vmatprep.subr.bf16.mxu1 %v9279_v13  ;;  %785 = vmatmul.mubr.f32.gmra.mrb[2].mxu0 %v8911_v14 }
  0x92   :  { %1603 = vmatprep.mubr.f32.mxu0 %v10132_v55  ;;  %7571 = vmatpush1.bf16.msra.mxu0 %v10169_v2 }
  0x93   :  { %7573 = vmatprep.subr.bf16.mxu0 %v10171_v27 }
  0x94   :  { %7543 = vmatpush1.bf16.msra.mxu1 %v9288_v39 }
  0x95   :  { %7545 = vmatprep.subr.bf16.mxu1 %v9296_v10 }
  0x96   :  { %7575 = vmatpush1.bf16.msra.mxu0 %v10172_v54 }
  0x97   :  { %7577 = vmatprep.subr.bf16.mxu0 %v10173_v56 }
  0x98   :  { %7547 = vmatpush1.bf16.msra.mxu1 %v9306_v35 }
  0x99   :  { %7549 = vmatprep.subr.bf16.mxu1 %v8813_v4 }
  0x9a   :  { %7579 = vmatpush1.bf16.msra.mxu0 %v10176_v21 }
  0x9b   :  { %1378 = vmatmul.mubr.f32.vlgmr.msra.gmra.mrb[4].mxu1 %v10132_v55  ;;  %7581 = vmatprep.subr.bf16.mxu0 %v9026_v20 }
  0x9c   :  { %7551 = vmatpush1.bf16.msra.mxu1 %v10167_v48  ;;  %1464 = vmatprep.mubr.f32.mxu1 %v10132_v55 }
  0x9d   :  { %7553 = vmatprep.subr.bf16.mxu1 %v10168_v62 }
  0xa0   :  { %7555 = vmatpush1.bf16.msra.mxu1 %v10169_v2 }
  0xa1   :  { %7557 = vmatprep.subr.bf16.mxu1 %v10171_v27 }
  0xa4   :  { %7559 = vmatpush1.bf16.msra.mxu1 %v10172_v54 }
  0xa5   :  { %7561 = vmatprep.subr.bf16.mxu1 %v10173_v56 }
  0xa8   :  { %7563 = vmatpush1.bf16.msra.mxu1 %v10176_v21 }
  0xa9   :  { %7661 = vmatprep.subr.bf16.mxu1 %v8813_v4 }
  0xab   :  { %1466 = vmatmul.mubr.f32.vlgmr.msra.gmra.mrb[4].mxu1 %v10132_v55 }
  0xac   :  { %7663 = vmatpush1.bf16.msra.mxu1 %v10167_v48  ;;  %2317 = vmatprep.mubr.f32.mxu1 %v10132_v55 }
  0xad   :  { %7665 = vmatprep.subr.bf16.mxu1 %v10168_v62 }
  0xb0   :  { %7667 = vmatpush1.bf16.msra.mxu1 %v10169_v2 }
  0xb1   :  { %7669 = vmatprep.subr.bf16.mxu1 %v10171_v27 }
  0xb4   :  { %7671 = vmatpush1.bf16.msra.mxu1 %v10172_v54 }
  0xb5   :  { %7673 = vmatprep.subr.bf16.mxu1 %v10173_v56 }
  0xb8   :  { %7675 = vmatpush1.bf16.msra.mxu1 %v10176_v21 }
  0xb9   :  { %7677 = vmatprep.subr.bf16.mxu1 %v9026_v20 }
 0x115   :  { %v182_v14 = vpop.f32.mrb[0].mxu1 }
 0x116   :  { %v184_v36 = vpop.f32.mrb[1].mxu1  ;;  %v183_v38 = vadd.f32 %v182_v14, %v81_v5 }
 0x117   :  { %v185_v44 = vadd.f32 %v184_v36, %v85_v45 }
 0x125   :  { %v193_v50 = vpop.f32.mrb[2].mxu1 }
 0x126   :  { %v195_v6 = vpop.f32.mrb[3].mxu1  ;;  %v194_v25 = vadd.f32 %v193_v50, %v81_v5 }
 0x127   :  { %v196_v23 = vadd.f32 %v195_v6, %v85_v45 }
 0x160   :  { %v779_v47 = vpop.f32.mrb[0].mxu0 }
 0x161   :  { %v8273_v22 = vadd.f32 %v779_v47, %v183_v38  ;;  %v781_v24 = vpop.f32.mrb[1].mxu0 }
 0x162   :  { %v8275_v15 = vadd.f32 %v781_v24, %v185_v44 }
 0x163   :  { %791 = vst [vmem:[#allocation2] sm:$0xff] %v8273_v22 }
 0x164   :  { %792 = vst [vmem:[#allocation2 + $0x8] sm:$0xff] %v8275_v15  ;;  %v786_v29 = vpop.f32.mrb[2].mxu0  ;;  %v1499_v15 = vld [vmem:[%s10045_s1] sm:$0x3] }
 0x165   :  { %v8277_v28 = vadd.f32 %v786_v29, %v194_v25  ;;  %v788_v9 = vpop.f32.mrb[3].mxu0  ;;  %vm1500_vm2 = vcmp.gt.f32.partialorder %v1499_v15, 0.0 }
 0x166   :  { %v8279_v40 = vadd.f32 %v788_v9, %v196_v23 }
 0x167   :  { %793 = vst [vmem:[#allocation2 + $0x10] sm:$0xff] %v8277_v28 }
 0x168   :  { %794 = vst [vmem:[#allocation2 + $0x18] sm:$0xff] %v8279_v40 }
 0x16a   :  { %v820_v46 = vld [vmem:[#allocation2] sm:$0x3] }
 0x16b   :  { %v821_v0 = vld [vmem:[#allocation2 + $0x8] sm:$0x3] }
 0x17e   :  { %v1467_v1 = vpop.f32.mrb[4].mxu1 }
 0x17f   :  { %v1472_v63 = vadd.f32 %v1467_v1, %v820_v46  ;;  %v1469_v17 = vpop.f32.mrb[5].mxu1 }
 0x180   :  { %v1473_v57 = vadd.f32 %v1469_v17, %v821_v0 }
 0x181   :  { %v7251_v53 = vmul.f32 -1.442695, %v1472_v63 }
 0x182   :  { %v7252_v8 = vmul.f32 -1.442695, %v1473_v57 }
 0x183   :  { %8400 = vpow2.f32 %v7251_v53 }
 0x184   :  { %8402 = vpow2.f32 %v7252_v8 }
 0x185   :  { %8404 = vtanh.f32 %v1473_v57 }
 0x18d   :  { %v8401_v14 = vpop.eup %8400 }
 0x18e   :  { %v8403_v36 = vpop.eup %8402  ;;  %v1482_v50 = vadd.f32 1.0, %v8401_v14  ;;  %v1519_v14 = vld [vmem:[#allocation2] sm:$0xc] }
 0x18f   :  { %v1483_v6 = vadd.f32 1.0, %v8403_v36  ;;  %v8405_v42 = vpop.eup %8404 }
 0x191   :  { %8406 = vrcp.f32 %v1483_v6  ;;  %v1520_v6 = vld [vmem:[#allocation2 + $0x8] sm:$0xc] }
 0x192   :  { %8408 = vrcp.f32 %v1482_v50 }
 0x19b   :  { %v8407_v19 = vpop.eup %8406 }
 0x19c   :  { %v8409_v5 = vpop.eup %8408  ;;  %v1489_v45 = vsel %vm817_vm1, %v8405_v42, %v8407_v19 }
 0x19d   :  { %v1491_v38 = vmul.f32 %v8409_v5, %v1489_v45  ;;  %v1490_v44 = vmul.f32 0.0, %v8409_v5 }
 0x19f   :  { %1493 = vrot.lane.b32.xlu0 %v1491_v38, %s8613_s4 }
 0x211   :  { %v1494_v47 = vpop.permute.xlu0 %1493 }
 0x212   :  { %v1496_v22 = vadd.f32 %v1494_v47, %v1490_v44 }
 0x214   :  { %8410 = vtanh.f32 %v1496_v22  ;;  %1507 = vrot.lane.b32.xlu1 %v1496_v22, %s8613_s4 }
 0x21e   :  { %v8411_v32 = vpop.eup %8410 }
 0x21f   :  { %v1498_v24 = vmul.f32 %v8411_v32, %v1489_v45 }
 0x221   :  { %1502 = vrot.lane.b32.xlu0 %v1498_v24, %s8613_s4 }
 0x286   :  { %v1508_v25 = vpop.permute.xlu1 %1507 }
 0x287   :  { %v9352_v23 = vsel %vm1500_vm2, %v1508_v25, 0.0 }
 0x288   :  { %v2195_v29 = vrot.slane %v9352_v23, 6 }
 0x28a   :  { %2196 = vrot.lane.b32.xlu1 %v2195_v29, %s8613_s4 }
 0x293   :  { %v1503_v28 = vpop.permute.xlu0 %1502 }
 0x294   :  { %v9356_v9 = vsel %vm1500_vm2, %v1503_v28, 0.0 }
 0x295   :  { %1512 = vst.msk [vmem:[#allocation3] sm:$0x3] %vm1511_vm3, %v9356_v9  ;;  %v1521_v40 = vsel %vm88_vm0, %v9356_v9, 0 }
 0x296   :  { %v1604_v46 = vand.u32 4294901760, %v1521_v40 }
 0x298   :  { %v1605_v1 = vsub.f32 %v1521_v40, %v1604_v46 }
 0x29a   :  { %v1606_v63 = vand.u32 4294901760, %v1605_v1 }
 0x29c   :  { %v1607_v0 = vsub.f32 %v1605_v1, %v1606_v63 }
 0x29e   :  { %v1608_v17 = vand.u32 4294901760, %v1607_v0 }
 0x2a0   :  { %1609 = vmatmul.mubr.f32.vlgmr.msra.gmra.mrb[4].mxu0 %v1608_v17  ;;  %v7255_v17 = vld [vmem:[%s10045_s1 + $0x2] sm:$0x3] }
 0x2a1   :  { %7583 = vmatpush1.bf16.msra.mxu0 %v9033_v26  ;;  %1759 = vmatprep.mubr.f32.mxu0 %v10132_v55  ;;  %vm2210_vm4 = vcmp.gt.f32.partialorder %v7255_v17, 0.0 }
 0x2a2   :  { %7585 = vmatprep.subr.bf16.mxu0 %v9046_v60 }
 0x2a5   :  { %7587 = vmatpush1.bf16.msra.mxu0 %v9098_v59 }
 0x2a6   :  { %7589 = vmatprep.subr.bf16.mxu0 %v9114_v11 }
 0x2a9   :  { %7591 = vmatpush1.bf16.msra.mxu0 %v9120_v37 }
 0x2aa   :  { %7593 = vmatprep.subr.bf16.mxu0 %v9126_v31 }
 0x2ad   :  { %7595 = vmatpush1.bf16.msra.mxu0 %v9141_v52 }
 0x2ae   :  { %7597 = vmatprep.subr.bf16.mxu0 %v9138_v49 }
 0x2b0   :  { %1761 = vmatmul.mubr.f32.vlgmr.msra.gmra.mrb[4].mxu0 %v1604_v46 }
 0x2b1   :  { %7599 = vmatpush1.bf16.msra.mxu0 %v9147_v3  ;;  %1863 = vmatprep.mubr.f32.mxu0 %v10132_v55 }
 0x2b2   :  { %7601 = vmatprep.subr.bf16.mxu0 %v9153_v18 }
 0x2b5   :  { %7603 = vmatpush1.bf16.msra.mxu0 %v9164_v7 }
 0x2b6   :  { %7605 = vmatprep.subr.bf16.mxu0 %v9171_v33 }
 0x2b9   :  { %7607 = vmatpush1.bf16.msra.mxu0 %v9186_v51 }
 0x2ba   :  { %7609 = vmatprep.subr.bf16.mxu0 %v9191_v16 }
 0x2bd   :  { %7611 = vmatpush1.bf16.msra.mxu0 %v9205_v34 }
 0x2be   :  { %7613 = vmatprep.subr.bf16.mxu0 %v8813_v4 }
 0x2c0   :  { %1866 = vmatmul.mubr.f32.vlgmr.msra.gmra.mrb[4].mxu0 %v1605_v1 }
 0x2c1   :  { %7615 = vmatpush1.bf16.msra.mxu0 %v10167_v48  ;;  %1952 = vmatprep.mubr.f32.mxu0 %v10132_v55 }
 0x2c2   :  { %7617 = vmatprep.subr.bf16.mxu0 %v10168_v62 }
 0x2c5   :  { %7619 = vmatpush1.bf16.msra.mxu0 %v10169_v2 }
 0x2c6   :  { %7621 = vmatprep.subr.bf16.mxu0 %v10171_v27 }
 0x2c9   :  { %7623 = vmatpush1.bf16.msra.mxu0 %v10172_v54 }
 0x2ca   :  { %7625 = vmatprep.subr.bf16.mxu0 %v10173_v56 }
 0x2cd   :  { %7627 = vmatpush1.bf16.msra.mxu0 %v10176_v21 }
 0x2ce   :  { %7629 = vmatprep.subr.bf16.mxu0 %v9244_v12 }
 0x2d0   :  { %1956 = vmatmul.mubr.f32.vlgmr.msra.gmra.mrb[4].mxu0 %v1606_v63 }
 0x2d1   :  { %7631 = vmatpush1.bf16.msra.mxu0 %v9253_v30  ;;  %2074 = vmatprep.mubr.f32.mxu0 %v10132_v55 }
 0x2d2   :  { %7633 = vmatprep.subr.bf16.mxu0 %v9261_v58 }
 0x2d5   :  { %7635 = vmatpush1.bf16.msra.mxu0 %v9270_v43 }
 0x2d6   :  { %7637 = vmatprep.subr.bf16.mxu0 %v9279_v13 }
 0x2d9   :  { %7639 = vmatpush1.bf16.msra.mxu0 %v9288_v39 }
 0x2da   :  { %7641 = vmatprep.subr.bf16.mxu0 %v9296_v10 }
 0x2dd   :  { %7643 = vmatpush1.bf16.msra.mxu0 %v9306_v35 }
 0x2de   :  { %7645 = vmatprep.subr.bf16.mxu0 %v8813_v4 }
 0x2e0   :  { %2076 = vmatmul.mubr.f32.vlgmr.msra.gmra.mrb[4].mxu0 %v1604_v46 }
 0x2e1   :  { %7647 = vmatpush1.bf16.msra.mxu0 %v10167_v48  ;;  %2162 = vmatprep.mubr.f32.mxu0 %v10132_v55 }
 0x2e2   :  { %7649 = vmatprep.subr.bf16.mxu0 %v10168_v62 }
 0x2e5   :  { %7651 = vmatpush1.bf16.msra.mxu0 %v10169_v2 }
 0x2e6   :  { %7653 = vmatprep.subr.bf16.mxu0 %v10171_v27 }
 0x2e9   :  { %7655 = vmatpush1.bf16.msra.mxu0 %v10172_v54 }
 0x2ea   :  { %7657 = vmatprep.subr.bf16.mxu0 %v10173_v56 }
 0x2ed   :  { %7659 = vmatpush1.bf16.msra.mxu0 %v10176_v21 }
 0x2ee   :  { %7757 = vmatprep.subr.bf16.mxu0 %v8813_v4 }
 0x2f0   :  { %2164 = vmatmul.mubr.f32.vlgmr.msra.gmra.mrb[4].mxu0 %v1604_v46 }
 0x2f1   :  { %7759 = vmatpush1.bf16.msra.mxu0 %v10167_v48  ;;  %3031 = vmatprep.mubr.f32.mxu0 %v10132_v55 }
 0x2f2   :  { %7761 = vmatprep.subr.bf16.mxu0 %v10168_v62 }
 0x2f5   :  { %7763 = vmatpush1.bf16.msra.mxu0 %v10169_v2 }
 0x2f6   :  { %7765 = vmatprep.subr.bf16.mxu0 %v10171_v27 }
 0x2f9   :  { %7767 = vmatpush1.bf16.msra.mxu0 %v10172_v54 }
 0x2fa   :  { %7769 = vmatprep.subr.bf16.mxu0 %v10173_v56 }
 0x2fc   :  { %v2197_v25 = vpop.permute.xlu1 %2196 }
 0x2fd   :  { %7771 = vmatpush1.bf16.msra.mxu0 %v10176_v21 }
 0x2fe   :  { %7773 = vmatprep.subr.bf16.mxu0 %v9026_v20 }
 0x3c3   :  { %v2165_v57 = vpop.f32.mrb[4].mxu0 }
 0x3c4   :  { %v2172_v53 = vrot.slane %v2165_v57, 6  ;;  %v2167_v8 = vpop.f32.mrb[5].mxu0 }
 0x3c5   :  { %v2173_v36 = vrot.slane %v2167_v8, 6 }
 0x3c6   :  { %v2176_v50 = vadd.f32 %v2172_v53, %v1519_v14 }
 0x3c7   :  { %v2177_v61 = vadd.f32 %v2173_v36, %v1520_v6 }
 0x3c8   :  { %v7253_v42 = vmul.f32 -1.442695, %v2176_v50 }
 0x3c9   :  { %v7254_v19 = vmul.f32 -1.442695, %v2177_v61 }
 0x3ca   :  { %8412 = vpow2.f32 %v7253_v42 }
 0x3cb   :  { %8414 = vpow2.f32 %v7254_v19 }
 0x3cc   :  { %8416 = vtanh.f32 %v2177_v61 }
 0x3d4   :  { %v8413_v5 = vpop.eup %8412 }
 0x3d5   :  { %v8415_v45 = vpop.eup %8414  ;;  %v2186_v38 = vadd.f32 1.0, %v8413_v5 }
 0x3d6   :  { %v2187_v44 = vadd.f32 1.0, %v8415_v45  ;;  %v8417_v47 = vpop.eup %8416 }
 0x3d8   :  { %8418 = vrcp.f32 %v2187_v44 }
 0x3d9   :  { %8420 = vrcp.f32 %v2186_v38 }
 0x3e2   :  { %v8419_v22 = vpop.eup %8418 }
 0x3e3   :  { %v8421_v32 = vpop.eup %8420  ;;  %v2193_v24 = vsel %vm817_vm1, %v8417_v47, %v8419_v22  ;;  %v2232_v47 = vld [vmem:[#allocation2] sm:$0x30] }
 0x3e4   :  { %v2200_v15 = vmul.f32 %v8421_v32, %v2193_v24  ;;  %v2199_v29 = vmul.f32 %v8421_v32, %v2197_v25 }
 0x3e6   :  { %2202 = vrot.lane.b32.xlu0 %v2200_v15, %s8613_s4 }
 0x458   :  { %v2203_v28 = vpop.permute.xlu0 %2202 }
 0x459   :  { %v2205_v40 = vadd.f32 %v2203_v28, %v2199_v29 }
 0x45b   :  { %8422 = vtanh.f32 %v2205_v40  ;;  %v2219_v46 = vrot.slane %v2205_v40, 2 }
 0x45d   :  { %2220 = vrot.lane.b32.xlu0 %v2219_v46, %s8613_s4 }
 0x465   :  { %v8423_v1 = vpop.eup %8422 }
 0x466   :  { %v2207_v63 = vmul.f32 %v8423_v1, %v2193_v24  ;;  %v2233_v24 = vld [vmem:[#allocation2 + $0x8] sm:$0x30] }
 0x468   :  { %v2212_v0 = vrot.slane %v2207_v63, 2 }
 0x46a   :  { %2213 = vrot.lane.b32.xlu1 %v2212_v0, %s8613_s4 }
 0x4cf   :  { %v2221_v57 = vpop.permute.xlu0 %2220 }
 0x4d0   :  { %v9425_v53 = vsel %vm2210_vm4, %v2221_v57, %v9352_v23 }
 0x4d1   :  { %v2909_v8 = vrot.slane %v9425_v53, 4 }
 0x4d3   :  { %2910 = vrot.lane.b32.xlu1 %v2909_v8, %s8613_s4 }
 0x4dc   :  { %v2214_v14 = vpop.permute.xlu1 %2213 }
 0x4dd   :  { %v9430_v36 = vsel %vm2210_vm4, %v2214_v14, %v9356_v9  ;;  %v9432_v50 = vsel %vm2210_vm4, %v2214_v14, 0.0 }
 0x4de   :  { %v2235_v6 = vsel %vm88_vm0, %v9430_v36, 0  ;;  %2225 = vst.msk [vmem:[#allocation3 + $0x2] sm:$0x3] %vm1511_vm3, %v9432_v50 }
 0x4df   :  { %v2318_v61 = vand.u32 4294901760, %v2235_v6 }
 0x4e1   :  { %v2319_v42 = vsub.f32 %v2235_v6, %v2318_v61 }
 0x4e3   :  { %v2320_v23 = vand.u32 4294901760, %v2319_v42 }
 0x4e5   :  { %v2321_v19 = vsub.f32 %v2319_v42, %v2320_v23 }
 0x4e7   :  { %v2322_v5 = vand.u32 4294901760, %v2321_v19 }
 0x4e9   :  { %2323 = vmatmul.mubr.f32.vlgmr.msra.gmra.mrb[6].mxu1 %v2322_v5 }
 0x4ea   :  { %7679 = vmatpush1.bf16.msra.mxu1 %v9033_v26  ;;  %2473 = vmatprep.mubr.f32.mxu1 %v10132_v55 }
 0x4eb   :  { %7681 = vmatprep.subr.bf16.mxu1 %v9046_v60 }
 0x4ee   :  { %7683 = vmatpush1.bf16.msra.mxu1 %v9098_v59 }
 0x4ef   :  { %7685 = vmatprep.subr.bf16.mxu1 %v9114_v11 }
 0x4f2   :  { %7687 = vmatpush1.bf16.msra.mxu1 %v9120_v37 }
 0x4f3   :  { %7689 = vmatprep.subr.bf16.mxu1 %v9126_v31 }
 0x4f6   :  { %7691 = vmatpush1.bf16.msra.mxu1 %v9141_v52 }
 0x4f7   :  { %7693 = vmatprep.subr.bf16.mxu1 %v9138_v49 }
 0x4f9   :  { %2475 = vmatmul.mubr.f32.vlgmr.msra.gmra.mrb[6].mxu1 %v2318_v61 }
 0x4fa   :  { %7695 = vmatpush1.bf16.msra.mxu1 %v9147_v3  ;;  %2577 = vmatprep.mubr.f32.mxu1 %v10132_v55 }
 0x4fb   :  { %7697 = vmatprep.subr.bf16.mxu1 %v9153_v18 }
 0x4fe   :  { %7699 = vmatpush1.bf16.msra.mxu1 %v9164_v7 }
 0x4ff   :  { %7701 = vmatprep.subr.bf16.mxu1 %v9171_v33 }
 0x502   :  { %7703 = vmatpush1.bf16.msra.mxu1 %v9186_v51 }
 0x503   :  { %7705 = vmatprep.subr.bf16.mxu1 %v9191_v16 }
 0x506   :  { %7707 = vmatpush1.bf16.msra.mxu1 %v9205_v34 }
 0x507   :  { %7709 = vmatprep.subr.bf16.mxu1 %v8813_v4 }
 0x509   :  { %2580 = vmatmul.mubr.f32.vlgmr.msra.gmra.mrb[6].mxu1 %v2319_v42 }
 0x50a   :  { %7711 = vmatpush1.bf16.msra.mxu1 %v10167_v48  ;;  %2666 = vmatprep.mubr.f32.mxu1 %v10132_v55 }
 0x50b   :  { %7713 = vmatprep.subr.bf16.mxu1 %v10168_v62 }
 0x50e   :  { %7715 = vmatpush1.bf16.msra.mxu1 %v10169_v2 }
 0x50f   :  { %7717 = vmatprep.subr.bf16.mxu1 %v10171_v27 }
 0x512   :  { %7719 = vmatpush1.bf16.msra.mxu1 %v10172_v54 }
 0x513   :  { %7721 = vmatprep.subr.bf16.mxu1 %v10173_v56 }
 0x516   :  { %7723 = vmatpush1.bf16.msra.mxu1 %v10176_v21 }
 0x517   :  { %7725 = vmatprep.subr.bf16.mxu1 %v9244_v12 }
 0x519   :  { %2670 = vmatmul.mubr.f32.vlgmr.msra.gmra.mrb[6].mxu1 %v2320_v23 }
 0x51a   :  { %7727 = vmatpush1.bf16.msra.mxu1 %v9253_v30  ;;  %2788 = vmatprep.mubr.f32.mxu1 %v10132_v55 }
 0x51b   :  { %7729 = vmatprep.subr.bf16.mxu1 %v9261_v58 }
 0x51e   :  { %7731 = vmatpush1.bf16.msra.mxu1 %v9270_v43 }
 0x51f   :  { %7733 = vmatprep.subr.bf16.mxu1 %v9279_v13 }
 0x522   :  { %7735 = vmatpush1.bf16.msra.mxu1 %v9288_v39 }
 0x523   :  { %7737 = vmatprep.subr.bf16.mxu1 %v9296_v10 }
 0x526   :  { %7739 = vmatpush1.bf16.msra.mxu1 %v9306_v35 }
 0x527   :  { %7741 = vmatprep.subr.bf16.mxu1 %v8813_v4 }
 0x529   :  { %2790 = vmatmul.mubr.f32.vlgmr.msra.gmra.mrb[6].mxu1 %v2318_v61 }
 0x52a   :  { %7743 = vmatpush1.bf16.msra.mxu1 %v10167_v48  ;;  %2876 = vmatprep.mubr.f32.mxu1 %v10132_v55 }
 0x52b   :  { %7745 = vmatprep.subr.bf16.mxu1 %v10168_v62 }
 0x52e   :  { %7747 = vmatpush1.bf16.msra.mxu1 %v10169_v2 }
 0x52f   :  { %7749 = vmatprep.subr.bf16.mxu1 %v10171_v27 }
 0x532   :  { %7751 = vmatpush1.bf16.msra.mxu1 %v10172_v54 }
 0x533   :  { %7753 = vmatprep.subr.bf16.mxu1 %v10173_v56 }
 0x536   :  { %7755 = vmatpush1.bf16.msra.mxu1 %v10176_v21 }
 0x537   :  { %7853 = vmatprep.subr.bf16.mxu1 %v8813_v4 }
 0x539   :  { %2878 = vmatmul.mubr.f32.vlgmr.msra.gmra.mrb[6].mxu1 %v2318_v61 }
 0x53a   :  { %7855 = vmatpush1.bf16.msra.mxu1 %v10167_v48  ;;  %3745 = vmatprep.mubr.f32.mxu1 %v10132_v55 }
 0x53b   :  { %7857 = vmatprep.subr.bf16.mxu1 %v10168_v62 }
 0x53e   :  { %7859 = vmatpush1.bf16.msra.mxu1 %v10169_v2 }
 0x53f   :  { %7861 = vmatprep.subr.bf16.mxu1 %v10171_v27 }
 0x542   :  { %7863 = vmatpush1.bf16.msra.mxu1 %v10172_v54 }
 0x543   :  { %7865 = vmatprep.subr.bf16.mxu1 %v10173_v56 }
 0x545   :  { %v2911_v14 = vpop.permute.xlu1 %2910 }
 0x546   :  { %7867 = vmatpush1.bf16.msra.mxu1 %v10176_v21 }
 0x547   :  { %7869 = vmatprep.subr.bf16.mxu1 %v9026_v20 }
 0x60c   :  { %v2879_v45 = vpop.f32.mrb[6].mxu1 }
 0x60d   :  { %v2886_v38 = vrot.slane %v2879_v45, 4  ;;  %v2881_v44 = vpop.f32.mrb[7].mxu1 }
 0x60e   :  { %v2887_v22 = vrot.slane %v2881_v44, 4 }
 0x60f   :  { %v2890_v32 = vadd.f32 %v2886_v38, %v2232_v47  ;;  %v7258_v38 = vld [vmem:[%s10045_s1 + $0x4] sm:$0x3] }
 0x610   :  { %v2891_v15 = vadd.f32 %v2887_v22, %v2233_v24  ;;  %vm2924_vm5 = vcmp.gt.f32.partialorder %v7258_v38, 0.0 }
 0x611   :  { %v7256_v25 = vmul.f32 -1.442695, %v2890_v32 }
 0x612   :  { %v7257_v29 = vmul.f32 -1.442695, %v2891_v15 }
 0x613   :  { %8424 = vpow2.f32 %v7256_v25 }
 0x614   :  { %8426 = vpow2.f32 %v7257_v29 }
 0x615   :  { %8428 = vtanh.f32 %v2891_v15 }
 0x61d   :  { %v8425_v28 = vpop.eup %8424 }
 0x61e   :  { %v8427_v40 = vpop.eup %8426  ;;  %v2900_v46 = vadd.f32 1.0, %v8425_v28 }
 0x61f   :  { %v2901_v1 = vadd.f32 1.0, %v8427_v40  ;;  %v8429_v63 = vpop.eup %8428 }
 0x621   :  { %8430 = vrcp.f32 %v2901_v1 }
 0x622   :  { %8432 = vrcp.f32 %v2900_v46 }
 0x62b   :  { %v8431_v0 = vpop.eup %8430 }
 0x62c   :  { %v8433_v17 = vpop.eup %8432  ;;  %v2907_v57 = vsel %vm817_vm1, %v8429_v63, %v8431_v0  ;;  %v2946_v0 = vld [vmem:[#allocation2] sm:$0xc0] }
 0x62d   :  { %v2914_v8 = vmul.f32 %v8433_v17, %v2907_v57  ;;  %v2913_v6 = vmul.f32 %v8433_v17, %v2911_v14 }
 0x62f   :  { %2916 = vrot.lane.b32.xlu0 %v2914_v8, %s8613_s4  ;;  %v2947_v8 = vld [vmem:[#allocation2 + $0x8] sm:$0xc0] }
 0x6a1   :  { %v2917_v61 = vpop.permute.xlu0 %2916 }
 0x6a2   :  { %v2919_v42 = vadd.f32 %v2917_v61, %v2913_v6 }
 0x6a4   :  { %8434 = vtanh.f32 %v2919_v42  ;;  %v2933_v23 = vrot.slane %v2919_v42, 4 }
 0x6a6   :  { %2934 = vrot.lane.b32.xlu0 %v2933_v23, %s8613_s4 }
 0x6ae   :  { %v8435_v19 = vpop.eup %8434 }
 0x6af   :  { %v2921_v5 = vmul.f32 %v8435_v19, %v2907_v57 }
 0x6b1   :  { %v2926_v45 = vrot.slane %v2921_v5, 4 }
 0x6b3   :  { %2927 = vrot.lane.b32.xlu1 %v2926_v45, %s8613_s4 }
 0x718   :  { %v2935_v44 = vpop.permute.xlu0 %2934 }
 0x719   :  { %v9501_v47 = vsel %vm2924_vm5, %v2935_v44, %v9425_v53 }
 0x71a   :  { %v3623_v22 = vrot.slane %v9501_v47, 2 }
 0x71c   :  { %3624 = vrot.lane.b32.xlu1 %v3623_v22, %s8613_s4 }
 0x725   :  { %v2928_v32 = vpop.permute.xlu1 %2927 }
 0x726   :  { %v9506_v24 = vsel %vm2924_vm5, %v2928_v32, %v9430_v36  ;;  %v9508_v15 = vsel %vm2924_vm5, %v2928_v32, 0.0  ;;  %vm8617_vm5 = vmmov 0  }
 0x727   :  { %v2949_v25 = vsel %vm88_vm0, %v9506_v24, 0  ;;  %2939 = vst.msk [vmem:[#allocation3 + $0x4] sm:$0x3] %vm1511_vm3, %v9508_v15 }
 0x728   :  { %v3032_v29 = vand.u32 4294901760, %v2949_v25 }
 0x72a   :  { %v3033_v28 = vsub.f32 %v2949_v25, %v3032_v29 }
 0x72c   :  { %v3034_v53 = vand.u32 4294901760, %v3033_v28 }
 0x72e   :  { %v3035_v40 = vsub.f32 %v3033_v28, %v3034_v53 }
 0x730   :  { %v3036_v46 = vand.u32 4294901760, %v3035_v40 }
 0x732   :  { %3037 = vmatmul.mubr.f32.vlgmr.msra.gmra.mrb[6].mxu0 %v3036_v46 }
 0x733   :  { %7775 = vmatpush1.bf16.msra.mxu0 %v9033_v26  ;;  %3187 = vmatprep.mubr.f32.mxu0 %v10132_v55 }
 0x734   :  { %7777 = vmatprep.subr.bf16.mxu0 %v9046_v60 }
 0x737   :  { %7779 = vmatpush1.bf16.msra.mxu0 %v9098_v59 }
 0x738   :  { %7781 = vmatprep.subr.bf16.mxu0 %v9114_v11 }
 0x73b   :  { %7783 = vmatpush1.bf16.msra.mxu0 %v9120_v37 }
 0x73c   :  { %7785 = vmatprep.subr.bf16.mxu0 %v9126_v31 }
 0x73f   :  { %7787 = vmatpush1.bf16.msra.mxu0 %v9141_v52 }
 0x740   :  { %7789 = vmatprep.subr.bf16.mxu0 %v9138_v49 }
 0x742   :  { %3189 = vmatmul.mubr.f32.vlgmr.msra.gmra.mrb[6].mxu0 %v3032_v29 }
 0x743   :  { %7791 = vmatpush1.bf16.msra.mxu0 %v9147_v3  ;;  %3291 = vmatprep.mubr.f32.mxu0 %v10132_v55 }
 0x744   :  { %7793 = vmatprep.subr.bf16.mxu0 %v9153_v18 }
 0x747   :  { %7795 = vmatpush1.bf16.msra.mxu0 %v9164_v7 }
 0x748   :  { %7797 = vmatprep.subr.bf16.mxu0 %v9171_v33 }
 0x74b   :  { %7799 = vmatpush1.bf16.msra.mxu0 %v9186_v51 }
 0x74c   :  { %7801 = vmatprep.subr.bf16.mxu0 %v9191_v16 }
 0x74f   :  { %7803 = vmatpush1.bf16.msra.mxu0 %v9205_v34 }
 0x750   :  { %7805 = vmatprep.subr.bf16.mxu0 %v8813_v4 }
 0x752   :  { %3294 = vmatmul.mubr.f32.vlgmr.msra.gmra.mrb[6].mxu0 %v3033_v28 }
 0x753   :  { %7807 = vmatpush1.bf16.msra.mxu0 %v10167_v48  ;;  %3380 = vmatprep.mubr.f32.mxu0 %v10132_v55 }
 0x754   :  { %7809 = vmatprep.subr.bf16.mxu0 %v10168_v62 }
 0x757   :  { %7811 = vmatpush1.bf16.msra.mxu0 %v10169_v2 }
 0x758   :  { %7813 = vmatprep.subr.bf16.mxu0 %v10171_v27 }
 0x75b   :  { %7815 = vmatpush1.bf16.msra.mxu0 %v10172_v54 }
 0x75c   :  { %7817 = vmatprep.subr.bf16.mxu0 %v10173_v56 }
 0x75f   :  { %7819 = vmatpush1.bf16.msra.mxu0 %v10176_v21 }
 0x760   :  { %7821 = vmatprep.subr.bf16.mxu0 %v9244_v12 }
 0x762   :  { %3384 = vmatmul.mubr.f32.vlgmr.msra.gmra.mrb[6].mxu0 %v3034_v53 }
 0x763   :  { %7823 = vmatpush1.bf16.msra.mxu0 %v9253_v30  ;;  %3502 = vmatprep.mubr.f32.mxu0 %v10132_v55 }
 0x764   :  { %7825 = vmatprep.subr.bf16.mxu0 %v9261_v58 }
 0x767   :  { %7827 = vmatpush1.bf16.msra.mxu0 %v9270_v43 }
 0x768   :  { %7829 = vmatprep.subr.bf16.mxu0 %v9279_v13 }
 0x76b   :  { %7831 = vmatpush1.bf16.msra.mxu0 %v9288_v39 }
 0x76c   :  { %7833 = vmatprep.subr.bf16.mxu0 %v9296_v10 }
 0x76f   :  { %7835 = vmatpush1.bf16.msra.mxu0 %v9306_v35 }
 0x770   :  { %7837 = vmatprep.subr.bf16.mxu0 %v8813_v4 }
 0x772   :  { %3504 = vmatmul.mubr.f32.vlgmr.msra.gmra.mrb[6].mxu0 %v3032_v29 }
 0x773   :  { %7839 = vmatpush1.bf16.msra.mxu0 %v10167_v48  ;;  %3590 = vmatprep.mubr.f32.mxu0 %v10132_v55 }
 0x774   :  { %7841 = vmatprep.subr.bf16.mxu0 %v10168_v62 }
 0x777   :  { %7843 = vmatpush1.bf16.msra.mxu0 %v10169_v2 }
 0x778   :  { %7845 = vmatprep.subr.bf16.mxu0 %v10171_v27 }
 0x77b   :  { %7847 = vmatpush1.bf16.msra.mxu0 %v10172_v54 }
 0x77c   :  { %7849 = vmatprep.subr.bf16.mxu0 %v10173_v56 }
 0x77f   :  { %7851 = vmatpush1.bf16.msra.mxu0 %v10176_v21 }
 0x780   :  { %7949 = vmatprep.subr.bf16.mxu0 %v8813_v4 }
 0x782   :  { %3592 = vmatmul.mubr.f32.vlgmr.msra.gmra.mrb[6].mxu0 %v3032_v29 }
 0x783   :  { %7951 = vmatpush1.bf16.msra.mxu0 %v10167_v48  ;;  %4450 = vmatprep.mubr.f32.mxu0 %v10132_v55 }
 0x784   :  { %7953 = vmatprep.subr.bf16.mxu0 %v10168_v62 }
 0x787   :  { %7955 = vmatpush1.bf16.msra.mxu0 %v10169_v2 }
 0x788   :  { %7957 = vmatprep.subr.bf16.mxu0 %v10171_v27 }
 0x78b   :  { %7959 = vmatpush1.bf16.msra.mxu0 %v10172_v54 }
 0x78c   :  { %7961 = vmatprep.subr.bf16.mxu0 %v10173_v56 }
 0x78e   :  { %v3625_v25 = vpop.permute.xlu1 %3624 }
 0x78f   :  { %7963 = vmatpush1.bf16.msra.mxu0 %v10176_v21 }
 0x790   :  { %7965 = vmatprep.subr.bf16.mxu0 %v9026_v20 }
 0x855   :  { %v3593_v36 = vpop.f32.mrb[6].mxu0 }
 0x856   :  { %v3600_v1 = vrot.slane %v3593_v36, 2  ;;  %v3595_v63 = vpop.f32.mrb[7].mxu0 }
 0x857   :  { %v3601_v17 = vrot.slane %v3595_v63, 2  ;;  %v7261_v63 = vld [vmem:[%s10045_s1 + $0x6] sm:$0x3] }
 0x858   :  { %v3604_v57 = vadd.f32 %v3600_v1, %v2946_v0  ;;  %vm3638_vm6 = vcmp.gt.f32.partialorder %v7261_v63, 0.0 }
 0x859   :  { %v3605_v14 = vadd.f32 %v3601_v17, %v2947_v8 }
 0x85a   :  { %v7259_v6 = vmul.f32 -1.442695, %v3604_v57 }
 0x85b   :  { %v7260_v61 = vmul.f32 -1.442695, %v3605_v14 }
 0x85c   :  { %8436 = vpow2.f32 %v7259_v6 }
 0x85d   :  { %8438 = vpow2.f32 %v7260_v61 }
 0x85e   :  { %8440 = vtanh.f32 %v3605_v14 }
 0x866   :  { %v8437_v42 = vpop.eup %8436 }
 0x867   :  { %v8439_v23 = vpop.eup %8438  ;;  %v3614_v19 = vadd.f32 1.0, %v8437_v42 }
 0x868   :  { %v3615_v5 = vadd.f32 1.0, %v8439_v23  ;;  %v8441_v45 = vpop.eup %8440 }
 0x86a   :  { %8442 = vrcp.f32 %v3615_v5 }
 0x86b   :  { %8444 = vrcp.f32 %v3614_v19 }
 0x874   :  { %v8443_v38 = vpop.eup %8442 }
 0x875   :  { %v8445_v44 = vpop.eup %8444  ;;  %v3621_v22 = vsel %vm817_vm1, %v8441_v45, %v8443_v38  ;;  %v3661_v38 = vld [vmem:[#allocation2 + $0x18] sm:$0x3] }
 0x876   :  { %v3628_v32 = vmul.f32 %v8445_v44, %v3621_v22  ;;  %v3627_v29 = vmul.f32 %v8445_v44, %v3625_v25 }
 0x878   :  { %3630 = vrot.lane.b32.xlu0 %v3628_v32, %s8613_s4 }
 0x8ea   :  { %v3631_v28 = vpop.permute.xlu0 %3630 }
 0x8eb   :  { %v3633_v53 = vadd.f32 %v3631_v28, %v3627_v29 }
 0x8ed   :  { %8446 = vtanh.f32 %v3633_v53  ;;  %v3647_v40 = vrot.slane %v3633_v53, 6 }
 0x8ef   :  { %3648 = vrot.lane.b32.xlu0 %v3647_v40, %s8613_s4 }
 0x8f7   :  { %v8447_v46 = vpop.eup %8446 }
 0x8f8   :  { %v3635_v36 = vmul.f32 %v8447_v46, %v3621_v22 }
 0x8fa   :  { %v3640_v1 = vrot.slane %v3635_v36, 6 }
 0x8fc   :  { %3641 = vrot.lane.b32.xlu1 %v3640_v1, %s8613_s4 }
 0x961   :  { %v3649_v0 = vpop.permute.xlu0 %3648 }
 0x962   :  { %v9577_v17 = vsel %vm3638_vm6, %v3649_v0, %v9501_v47 }
 0x963   :  { %4331 = vrot.lane.b32.xlu1 %v9577_v17, %s8613_s4 }
 0x96e   :  { %v3642_v57 = vpop.permute.xlu1 %3641 }
 0x96f   :  { %v9582_v8 = vsel %vm3638_vm6, %v3642_v57, %v9506_v24  ;;  %v9584_v14 = vsel %vm3638_vm6, %v3642_v57, 0.0  ;;  %v3660_v24 = vld [vmem:[#allocation2 + $0x10] sm:$0x3]  ;;  %vm6733_vm6 = vcmask 261120  }
 0x970   :  { %v3663_v6 = vsel %vm88_vm0, %v9582_v8, 0  ;;  %3653 = vst.msk [vmem:[#allocation3 + $0x6] sm:$0x3] %vm1511_vm3, %v9584_v14 }
 0x971   :  { %v3746_v61 = vand.u32 4294901760, %v3663_v6 }
 0x973   :  { %v3747_v42 = vsub.f32 %v3663_v6, %v3746_v61 }
 0x975   :  { %v3748_v23 = vand.u32 4294901760, %v3747_v42 }
 0x977   :  { %v3749_v47 = vsub.f32 %v3747_v42, %v3748_v23 }
 0x979   :  { %v3750_v19 = vand.u32 4294901760, %v3749_v47 }
 0x97b   :  { %3751 = vmatmul.mubr.f32.vlgmr.msra.gmra.mrb[8].mxu1 %v3750_v19  ;;  %v7264_v19 = vld [vmem:[%s10045_s1 + $0x8] sm:$0x3] }
 0x97c   :  { %7871 = vmatpush1.bf16.msra.mxu1 %v9033_v26  ;;  %3901 = vmatprep.mubr.f32.mxu1 %v10132_v55  ;;  %vm4345_vm7 = vcmp.gt.f32.partialorder %v7264_v19, 0.0 }
 0x97d   :  { %7873 = vmatprep.subr.bf16.mxu1 %v9046_v60 }
 0x980   :  { %7875 = vmatpush1.bf16.msra.mxu1 %v9098_v59 }
 0x981   :  { %7877 = vmatprep.subr.bf16.mxu1 %v9114_v11 }
 0x984   :  { %7879 = vmatpush1.bf16.msra.mxu1 %v9120_v37 }
 0x985   :  { %7881 = vmatprep.subr.bf16.mxu1 %v9126_v31 }
 0x988   :  { %7883 = vmatpush1.bf16.msra.mxu1 %v9141_v52 }
 0x989   :  { %7885 = vmatprep.subr.bf16.mxu1 %v9138_v49 }
 0x98b   :  { %3903 = vmatmul.mubr.f32.vlgmr.msra.gmra.mrb[8].mxu1 %v3746_v61 }
 0x98c   :  { %7887 = vmatpush1.bf16.msra.mxu1 %v9147_v3  ;;  %4005 = vmatprep.mubr.f32.mxu1 %v10132_v55 }
 0x98d   :  { %7889 = vmatprep.subr.bf16.mxu1 %v9153_v18 }
 0x990   :  { %7891 = vmatpush1.bf16.msra.mxu1 %v9164_v7 }
 0x991   :  { %7893 = vmatprep.subr.bf16.mxu1 %v9171_v33 }
 0x994   :  { %7895 = vmatpush1.bf16.msra.mxu1 %v9186_v51 }
 0x995   :  { %7897 = vmatprep.subr.bf16.mxu1 %v9191_v16 }
 0x998   :  { %7899 = vmatpush1.bf16.msra.mxu1 %v9205_v34 }
 0x999   :  { %7901 = vmatprep.subr.bf16.mxu1 %v8813_v4 }
 0x99b   :  { %4008 = vmatmul.mubr.f32.vlgmr.msra.gmra.mrb[8].mxu1 %v3747_v42 }
 0x99c   :  { %7903 = vmatpush1.bf16.msra.mxu1 %v10167_v48  ;;  %4094 = vmatprep.mubr.f32.mxu1 %v10132_v55 }
 0x99d   :  { %7905 = vmatprep.subr.bf16.mxu1 %v10168_v62 }
 0x9a0   :  { %7907 = vmatpush1.bf16.msra.mxu1 %v10169_v2 }
 0x9a1   :  { %7909 = vmatprep.subr.bf16.mxu1 %v10171_v27 }
 0x9a4   :  { %7911 = vmatpush1.bf16.msra.mxu1 %v10172_v54 }
 0x9a5   :  { %7913 = vmatprep.subr.bf16.mxu1 %v10173_v56 }
 0x9a8   :  { %7915 = vmatpush1.bf16.msra.mxu1 %v10176_v21 }
 0x9a9   :  { %7917 = vmatprep.subr.bf16.mxu1 %v9244_v12 }
 0x9ab   :  { %4098 = vmatmul.mubr.f32.vlgmr.msra.gmra.mrb[8].mxu1 %v3748_v23 }
 0x9ac   :  { %7919 = vmatpush1.bf16.msra.mxu1 %v9253_v30  ;;  %4216 = vmatprep.mubr.f32.mxu1 %v10132_v55 }
 0x9ad   :  { %7921 = vmatprep.subr.bf16.mxu1 %v9261_v58 }
 0x9b0   :  { %7923 = vmatpush1.bf16.msra.mxu1 %v9270_v43 }
 0x9b1   :  { %7925 = vmatprep.subr.bf16.mxu1 %v9279_v13 }
 0x9b4   :  { %7927 = vmatpush1.bf16.msra.mxu1 %v9288_v39 }
 0x9b5   :  { %7929 = vmatprep.subr.bf16.mxu1 %v9296_v10 }
 0x9b8   :  { %7931 = vmatpush1.bf16.msra.mxu1 %v9306_v35 }
 0x9b9   :  { %7933 = vmatprep.subr.bf16.mxu1 %v8813_v4 }
 0x9bb   :  { %4218 = vmatmul.mubr.f32.vlgmr.msra.gmra.mrb[8].mxu1 %v3746_v61 }
 0x9bc   :  { %7935 = vmatpush1.bf16.msra.mxu1 %v10167_v48  ;;  %4304 = vmatprep.mubr.f32.mxu1 %v10132_v55 }
 0x9bd   :  { %7937 = vmatprep.subr.bf16.mxu1 %v10168_v62 }
 0x9c0   :  { %7939 = vmatpush1.bf16.msra.mxu1 %v10169_v2 }
 0x9c1   :  { %7941 = vmatprep.subr.bf16.mxu1 %v10171_v27 }
 0x9c4   :  { %7943 = vmatpush1.bf16.msra.mxu1 %v10172_v54 }
 0x9c5   :  { %7945 = vmatprep.subr.bf16.mxu1 %v10173_v56 }
 0x9c8   :  { %7947 = vmatpush1.bf16.msra.mxu1 %v10176_v21 }
 0x9c9   :  { %8045 = vmatprep.subr.bf16.mxu1 %v8813_v4 }
 0x9cb   :  { %4306 = vmatmul.mubr.f32.vlgmr.msra.gmra.mrb[8].mxu1 %v3746_v61 }
 0x9cc   :  { %8047 = vmatpush1.bf16.msra.mxu1 %v10167_v48  ;;  %5164 = vmatprep.mubr.f32.mxu1 %v10132_v55 }
 0x9cd   :  { %8049 = vmatprep.subr.bf16.mxu1 %v10168_v62 }
 0x9d0   :  { %8051 = vmatpush1.bf16.msra.mxu1 %v10169_v2 }
 0x9d1   :  { %8053 = vmatprep.subr.bf16.mxu1 %v10171_v27 }
 0x9d4   :  { %8055 = vmatpush1.bf16.msra.mxu1 %v10172_v54 }
 0x9d5   :  { %8057 = vmatprep.subr.bf16.mxu1 %v10173_v56  ;;  %v4332_v57 = vpop.permute.xlu1 %4331 }
 0x9d8   :  { %8059 = vmatpush1.bf16.msra.mxu1 %v10176_v21 }
 0x9d9   :  { %8061 = vmatprep.subr.bf16.mxu1 %v9026_v20 }
 0xa9e   :  { %v4307_v5 = vpop.f32.mrb[8].mxu1 }
 0xa9f   :  { %v4312_v45 = vadd.f32 %v4307_v5, %v3660_v24  ;;  %v4309_v44 = vpop.f32.mrb[9].mxu1 }
 0xaa0   :  { %v4313_v22 = vadd.f32 %v4309_v44, %v3661_v38 }
 0xaa1   :  { %v7262_v32 = vmul.f32 -1.442695, %v4312_v45 }
 0xaa2   :  { %v7263_v25 = vmul.f32 -1.442695, %v4313_v22 }
 0xaa3   :  { %8448 = vpow2.f32 %v7262_v32 }
 0xaa4   :  { %8450 = vpow2.f32 %v7263_v25 }
 0xaa5   :  { %8452 = vtanh.f32 %v4313_v22 }
 0xaad   :  { %v8449_v29 = vpop.eup %8448 }
 0xaae   :  { %v8451_v28 = vpop.eup %8450  ;;  %v4322_v53 = vadd.f32 1.0, %v8449_v29 }
 0xaaf   :  { %v4323_v40 = vadd.f32 1.0, %v8451_v28  ;;  %v8453_v46 = vpop.eup %8452 }
 0xab1   :  { %8454 = vrcp.f32 %v4323_v40 }
 0xab2   :  { %8456 = vrcp.f32 %v4322_v53 }
 0xabb   :  { %v8455_v36 = vpop.eup %8454 }
 0xabc   :  { %v8457_v1 = vpop.eup %8456  ;;  %v4329_v63 = vsel %vm817_vm1, %v8453_v46, %v8455_v36  ;;  %v4365_v36 = vld [vmem:[#allocation2 + $0x10] sm:$0xc] }
 0xabd   :  { %v4335_v0 = vmul.f32 %v8457_v1, %v4329_v63  ;;  %v4334_v6 = vmul.f32 %v8457_v1, %v4332_v57 }
 0xabf   :  { %4337 = vrot.lane.b32.xlu0 %v4335_v0, %s8613_s4  ;;  %v4366_v0 = vld [vmem:[#allocation2 + $0x18] sm:$0xc] }
 0xb31   :  { %v4338_v61 = vpop.permute.xlu0 %4337 }
 0xb32   :  { %v4340_v42 = vadd.f32 %v4338_v61, %v4334_v6 }
 0xb34   :  { %8458 = vtanh.f32 %v4340_v42  ;;  %4353 = vrot.lane.b32.xlu0 %v4340_v42, %s8613_s4 }
 0xb3e   :  { %v8459_v23 = vpop.eup %8458 }
 0xb3f   :  { %v4342_v47 = vmul.f32 %v8459_v23, %v4329_v63 }
 0xb41   :  { %4347 = vrot.lane.b32.xlu1 %v4342_v47, %s8613_s4 }
 0xba6   :  { %v4354_v24 = vpop.permute.xlu0 %4353 }
 0xba7   :  { %v9653_v5 = vsel %vm4345_vm7, %v4354_v24, %v9577_v17 }
 0xba8   :  { %v5042_v45 = vrot.slane %v9653_v5, 6 }
 0xbaa   :  { %5043 = vrot.lane.b32.xlu1 %v5042_v45, %s8613_s4 }
 0xbb3   :  { %v4348_v38 = vpop.permute.xlu1 %4347 }
 0xbb4   :  { %v9658_v44 = vsel %vm4345_vm7, %v4348_v38, %v9582_v8  ;;  %v9660_v22 = vsel %vm4345_vm7, %v4348_v38, 0.0 }
 0xbb5   :  { %v4368_v32 = vsel %vm88_vm0, %v9658_v44, 0  ;;  %4358 = vst.msk [vmem:[#allocation3 + $0x8] sm:$0x3] %vm1511_vm3, %v9660_v22 }
 0xbb6   :  { %v4451_v25 = vand.u32 4294901760, %v4368_v32 }
 0xbb8   :  { %v4452_v29 = vsub.f32 %v4368_v32, %v4451_v25 }
 0xbba   :  { %v4453_v17 = vand.u32 4294901760, %v4452_v29 }
 0xbbc   :  { %v4454_v28 = vsub.f32 %v4452_v29, %v4453_v17 }
 0xbbe   :  { %v4455_v53 = vand.u32 4294901760, %v4454_v28 }
 0xbc0   :  { %4456 = vmatmul.mubr.f32.vlgmr.msra.gmra.mrb[8].mxu0 %v4455_v53 }
 0xbc1   :  { %7967 = vmatpush1.bf16.msra.mxu0 %v9033_v26  ;;  %4606 = vmatprep.mubr.f32.mxu0 %v10132_v55 }
 0xbc2   :  { %7969 = vmatprep.subr.bf16.mxu0 %v9046_v60 }
 0xbc5   :  { %7971 = vmatpush1.bf16.msra.mxu0 %v9098_v59 }
 0xbc6   :  { %7973 = vmatprep.subr.bf16.mxu0 %v9114_v11 }
 0xbc9   :  { %7975 = vmatpush1.bf16.msra.mxu0 %v9120_v37 }
 0xbca   :  { %7977 = vmatprep.subr.bf16.mxu0 %v9126_v31 }
 0xbcd   :  { %7979 = vmatpush1.bf16.msra.mxu0 %v9141_v52 }
 0xbce   :  { %7981 = vmatprep.subr.bf16.mxu0 %v9138_v49 }
 0xbd0   :  { %4608 = vmatmul.mubr.f32.vlgmr.msra.gmra.mrb[8].mxu0 %v4451_v25 }
 0xbd1   :  { %7983 = vmatpush1.bf16.msra.mxu0 %v9147_v3  ;;  %4710 = vmatprep.mubr.f32.mxu0 %v10132_v55 }
 0xbd2   :  { %7985 = vmatprep.subr.bf16.mxu0 %v9153_v18 }
 0xbd5   :  { %7987 = vmatpush1.bf16.msra.mxu0 %v9164_v7 }
 0xbd6   :  { %7989 = vmatprep.subr.bf16.mxu0 %v9171_v33 }
 0xbd9   :  { %7991 = vmatpush1.bf16.msra.mxu0 %v9186_v51 }
 0xbda   :  { %7993 = vmatprep.subr.bf16.mxu0 %v9191_v16 }
 0xbdd   :  { %7995 = vmatpush1.bf16.msra.mxu0 %v9205_v34 }
 0xbde   :  { %7997 = vmatprep.subr.bf16.mxu0 %v8813_v4 }
 0xbe0   :  { %4713 = vmatmul.mubr.f32.vlgmr.msra.gmra.mrb[8].mxu0 %v4452_v29 }
 0xbe1   :  { %7999 = vmatpush1.bf16.msra.mxu0 %v10167_v48  ;;  %4799 = vmatprep.mubr.f32.mxu0 %v10132_v55 }
 0xbe2   :  { %8001 = vmatprep.subr.bf16.mxu0 %v10168_v62 }
 0xbe5   :  { %8003 = vmatpush1.bf16.msra.mxu0 %v10169_v2 }
 0xbe6   :  { %8005 = vmatprep.subr.bf16.mxu0 %v10171_v27 }
 0xbe9   :  { %8007 = vmatpush1.bf16.msra.mxu0 %v10172_v54 }
 0xbea   :  { %8009 = vmatprep.subr.bf16.mxu0 %v10173_v56 }
 0xbed   :  { %8011 = vmatpush1.bf16.msra.mxu0 %v10176_v21 }
 0xbee   :  { %8013 = vmatprep.subr.bf16.mxu0 %v9244_v12 }
 0xbf0   :  { %4803 = vmatmul.mubr.f32.vlgmr.msra.gmra.mrb[8].mxu0 %v4453_v17 }
 0xbf1   :  { %8015 = vmatpush1.bf16.msra.mxu0 %v9253_v30  ;;  %4921 = vmatprep.mubr.f32.mxu0 %v10132_v55 }
 0xbf2   :  { %8017 = vmatprep.subr.bf16.mxu0 %v9261_v58 }
 0xbf5   :  { %8019 = vmatpush1.bf16.msra.mxu0 %v9270_v43 }
 0xbf6   :  { %8021 = vmatprep.subr.bf16.mxu0 %v9279_v13 }
 0xbf9   :  { %8023 = vmatpush1.bf16.msra.mxu0 %v9288_v39 }
 0xbfa   :  { %8025 = vmatprep.subr.bf16.mxu0 %v9296_v10 }
 0xbfd   :  { %8027 = vmatpush1.bf16.msra.mxu0 %v9306_v35 }
 0xbfe   :  { %8029 = vmatprep.subr.bf16.mxu0 %v8813_v4 }
 0xc00   :  { %4923 = vmatmul.mubr.f32.vlgmr.msra.gmra.mrb[8].mxu0 %v4451_v25 }
 0xc01   :  { %8031 = vmatpush1.bf16.msra.mxu0 %v10167_v48  ;;  %5009 = vmatprep.mubr.f32.mxu0 %v10132_v55 }
 0xc02   :  { %8033 = vmatprep.subr.bf16.mxu0 %v10168_v62 }
 0xc05   :  { %8035 = vmatpush1.bf16.msra.mxu0 %v10169_v2 }
 0xc06   :  { %8037 = vmatprep.subr.bf16.mxu0 %v10171_v27 }
 0xc09   :  { %8039 = vmatpush1.bf16.msra.mxu0 %v10172_v54 }
 0xc0a   :  { %8041 = vmatprep.subr.bf16.mxu0 %v10173_v56 }
 0xc0d   :  { %8043 = vmatpush1.bf16.msra.mxu0 %v10176_v21 }
 0xc0e   :  { %8141 = vmatprep.subr.bf16.mxu0 %v8813_v4 }
 0xc10   :  { %5011 = vmatmul.mubr.f32.vlgmr.msra.gmra.mrb[8].mxu0 %v4451_v25 }
 0xc11   :  { %8143 = vmatpush1.bf16.msra.mxu0 %v10167_v48  ;;  %5878 = vmatprep.mubr.f32.mxu0 %v10132_v55 }
 0xc12   :  { %8145 = vmatprep.subr.bf16.mxu0 %v10168_v62 }
 0xc15   :  { %8147 = vmatpush1.bf16.msra.mxu0 %v10169_v2 }
 0xc16   :  { %8149 = vmatprep.subr.bf16.mxu0 %v10171_v27 }
 0xc19   :  { %8151 = vmatpush1.bf16.msra.mxu0 %v10172_v54 }
 0xc1a   :  { %8153 = vmatprep.subr.bf16.mxu0 %v10173_v56 }
 0xc1c   :  { %v5044_v25 = vpop.permute.xlu1 %5043 }
 0xc1d   :  { %8155 = vmatpush1.bf16.msra.mxu0 %v10176_v21 }
 0xc1e   :  { %8157 = vmatprep.subr.bf16.mxu0 %v9026_v20 }
 0xce3   :  { %v5012_v8 = vpop.f32.mrb[8].mxu0 }
 0xce4   :  { %v5019_v40 = vrot.slane %v5012_v8, 6  ;;  %v5014_v46 = vpop.f32.mrb[9].mxu0 }
 0xce5   :  { %v5020_v1 = vrot.slane %v5014_v46, 6 }
 0xce6   :  { %v5023_v63 = vadd.f32 %v5019_v40, %v4365_v36  ;;  %v7267_v36 = vld [vmem:[%s10045_s1 + $0xa] sm:$0x3] }
 0xce7   :  { %v5024_v57 = vadd.f32 %v5020_v1, %v4366_v0  ;;  %vm5057_vm8 = vcmp.gt.f32.partialorder %v7267_v36, 0.0 }
 0xce8   :  { %v7265_v6 = vmul.f32 -1.442695, %v5023_v63 }
 0xce9   :  { %v7266_v61 = vmul.f32 -1.442695, %v5024_v57 }
 0xcea   :  { %8460 = vpow2.f32 %v7265_v6 }
 0xceb   :  { %8462 = vpow2.f32 %v7266_v61 }
 0xcec   :  { %8464 = vtanh.f32 %v5024_v57 }
 0xcf4   :  { %v8461_v42 = vpop.eup %8460 }
 0xcf5   :  { %v8463_v23 = vpop.eup %8462  ;;  %v5033_v47 = vadd.f32 1.0, %v8461_v42 }
 0xcf6   :  { %v5034_v19 = vadd.f32 1.0, %v8463_v23  ;;  %v8465_v20 = vpop.eup %8464 }
 0xcf8   :  { %8466 = vrcp.f32 %v5034_v19 }
 0xcf9   :  { %8468 = vrcp.f32 %v5033_v47 }
 0xd02   :  { %v8467_v24 = vpop.eup %8466 }
 0xd03   :  { %v8469_v45 = vpop.eup %8468  ;;  %v5040_v38 = vsel %vm817_vm1, %v8465_v20, %v8467_v24 }
 0xd04   :  { %v5047_v32 = vmul.f32 %v8469_v45, %v5040_v38  ;;  %v5046_v29 = vmul.f32 %v8469_v45, %v5044_v25 }
 0xd06   :  { %5049 = vrot.lane.b32.xlu0 %v5047_v32, %s8613_s4 }
 0xd78   :  { %v5050_v17 = vpop.permute.xlu0 %5049 }
 0xd79   :  { %v5052_v28 = vadd.f32 %v5050_v17, %v5046_v29  ;;  %v5080_v29 = vld [vmem:[#allocation2 + $0x18] sm:$0x30] }
 0xd7b   :  { %8470 = vtanh.f32 %v5052_v28  ;;  %v5066_v53 = vrot.slane %v5052_v28, 2 }
 0xd7d   :  { %5067 = vrot.lane.b32.xlu0 %v5066_v53, %s8613_s4 }
 0xd85   :  { %v8471_v8 = vpop.eup %8470 }
 0xd86   :  { %v5054_v40 = vmul.f32 %v8471_v8, %v5040_v38  ;;  %v5079_v38 = vld [vmem:[#allocation2 + $0x10] sm:$0x30] }
 0xd88   :  { %v5059_v46 = vrot.slane %v5054_v40, 2 }
 0xd8a   :  { %5060 = vrot.lane.b32.xlu1 %v5059_v46, %s8613_s4 }
 0xdef   :  { %v5068_v1 = vpop.permute.xlu0 %5067 }
 0xdf0   :  { %v9729_v63 = vsel %vm5057_vm8, %v5068_v1, %v9653_v5 }
 0xdf1   :  { %v5756_v0 = vrot.slane %v9729_v63, 4 }
 0xdf3   :  { %5757 = vrot.lane.b32.xlu1 %v5756_v0, %s8613_s4 }
 0xdfc   :  { %v5061_v57 = vpop.permute.xlu1 %5060 }
 0xdfd   :  { %v9734_v6 = vsel %vm5057_vm8, %v5061_v57, %v9658_v44  ;;  %v9736_v61 = vsel %vm5057_vm8, %v5061_v57, 0.0 }
 0xdfe   :  { %v5082_v42 = vsel %vm88_vm0, %v9734_v6, 0  ;;  %5072 = vst.msk [vmem:[#allocation3 + $0xa] sm:$0x3] %vm1511_vm3, %v9736_v61 }
 0xdff   :  { %v5165_v23 = vand.u32 4294901760, %v5082_v42 }
 0xe01   :  { %v5166_v47 = vsub.f32 %v5082_v42, %v5165_v23 }
 0xe03   :  { %v5167_v5 = vand.u32 4294901760, %v5166_v47 }
 0xe05   :  { %v5168_v19 = vsub.f32 %v5166_v47, %v5167_v5 }
 0xe07   :  { %v5169_v20 = vand.u32 4294901760, %v5168_v19 }
 0xe09   :  { %5170 = vmatmul.mubr.f32.vlgmr.msra.gmra.mrb[10].mxu1 %v5169_v20 }
 0xe0a   :  { %8063 = vmatpush1.bf16.msra.mxu1 %v9033_v26  ;;  %5320 = vmatprep.mubr.f32.mxu1 %v10132_v55 }
 0xe0b   :  { %8065 = vmatprep.subr.bf16.mxu1 %v9046_v60 }
 0xe0e   :  { %8067 = vmatpush1.bf16.msra.mxu1 %v9098_v59 }
 0xe0f   :  { %8069 = vmatprep.subr.bf16.mxu1 %v9114_v11 }
 0xe12   :  { %8071 = vmatpush1.bf16.msra.mxu1 %v9120_v37 }
 0xe13   :  { %8073 = vmatprep.subr.bf16.mxu1 %v9126_v31 }
 0xe16   :  { %8075 = vmatpush1.bf16.msra.mxu1 %v9141_v52 }
 0xe17   :  { %8077 = vmatprep.subr.bf16.mxu1 %v9138_v49 }
 0xe19   :  { %5322 = vmatmul.mubr.f32.vlgmr.msra.gmra.mrb[10].mxu1 %v5165_v23 }
 0xe1a   :  { %8079 = vmatpush1.bf16.msra.mxu1 %v9147_v3  ;;  %5424 = vmatprep.mubr.f32.mxu1 %v10132_v55 }
 0xe1b   :  { %8081 = vmatprep.subr.bf16.mxu1 %v9153_v18 }
 0xe1e   :  { %8083 = vmatpush1.bf16.msra.mxu1 %v9164_v7 }
 0xe1f   :  { %8085 = vmatprep.subr.bf16.mxu1 %v9171_v33 }
 0xe22   :  { %8087 = vmatpush1.bf16.msra.mxu1 %v9186_v51 }
 0xe23   :  { %8089 = vmatprep.subr.bf16.mxu1 %v9191_v16 }
 0xe26   :  { %8091 = vmatpush1.bf16.msra.mxu1 %v9205_v34 }
 0xe27   :  { %8093 = vmatprep.subr.bf16.mxu1 %v8813_v4 }
 0xe29   :  { %5427 = vmatmul.mubr.f32.vlgmr.msra.gmra.mrb[10].mxu1 %v5166_v47 }
 0xe2a   :  { %8095 = vmatpush1.bf16.msra.mxu1 %v10167_v48  ;;  %5513 = vmatprep.mubr.f32.mxu1 %v10132_v55 }
 0xe2b   :  { %8097 = vmatprep.subr.bf16.mxu1 %v10168_v62 }
 0xe2e   :  { %8099 = vmatpush1.bf16.msra.mxu1 %v10169_v2 }
 0xe2f   :  { %8101 = vmatprep.subr.bf16.mxu1 %v10171_v27 }
 0xe32   :  { %8103 = vmatpush1.bf16.msra.mxu1 %v10172_v54 }
 0xe33   :  { %8105 = vmatprep.subr.bf16.mxu1 %v10173_v56 }
 0xe36   :  { %8107 = vmatpush1.bf16.msra.mxu1 %v10176_v21 }
 0xe37   :  { %8109 = vmatprep.subr.bf16.mxu1 %v9244_v12 }
 0xe39   :  { %5517 = vmatmul.mubr.f32.vlgmr.msra.gmra.mrb[10].mxu1 %v5167_v5 }
 0xe3a   :  { %8111 = vmatpush1.bf16.msra.mxu1 %v9253_v30  ;;  %5635 = vmatprep.mubr.f32.mxu1 %v10132_v55 }
 0xe3b   :  { %8113 = vmatprep.subr.bf16.mxu1 %v9261_v58 }
 0xe3e   :  { %8115 = vmatpush1.bf16.msra.mxu1 %v9270_v43 }
 0xe3f   :  { %8117 = vmatprep.subr.bf16.mxu1 %v9279_v13 }
 0xe42   :  { %8119 = vmatpush1.bf16.msra.mxu1 %v9288_v39 }
 0xe43   :  { %8121 = vmatprep.subr.bf16.mxu1 %v9296_v10 }
 0xe46   :  { %8123 = vmatpush1.bf16.msra.mxu1 %v9306_v35 }
 0xe47   :  { %8125 = vmatprep.subr.bf16.mxu1 %v8813_v4 }
 0xe49   :  { %5637 = vmatmul.mubr.f32.vlgmr.msra.gmra.mrb[10].mxu1 %v5165_v23 }
 0xe4a   :  { %8127 = vmatpush1.bf16.msra.mxu1 %v10167_v48  ;;  %5723 = vmatprep.mubr.f32.mxu1 %v10132_v55 }
 0xe4b   :  { %8129 = vmatprep.subr.bf16.mxu1 %v10168_v62 }
 0xe4e   :  { %8131 = vmatpush1.bf16.msra.mxu1 %v10169_v2 }
 0xe4f   :  { %8133 = vmatprep.subr.bf16.mxu1 %v10171_v27 }
 0xe52   :  { %8135 = vmatpush1.bf16.msra.mxu1 %v10172_v54 }
 0xe53   :  { %8137 = vmatprep.subr.bf16.mxu1 %v10173_v56 }
 0xe56   :  { %8139 = vmatpush1.bf16.msra.mxu1 %v10176_v21 }
 0xe59   :  { %5725 = vmatmul.mubr.f32.vlgmr.msra.gmra.mrb[10].mxu1 %v5165_v23 }
 0xe5a   :  { %7314 = vmatprep.mubr.msk.f32.mxu1 %vm8617_vm5, %v10132_v55 }
 0xe65   :  { %v5758_v47 = vpop.permute.xlu1 %5757 }
 0xf2c   :  { %v5726_v44 = vpop.f32.mrb[10].mxu1 }
 0xf2d   :  { %v5733_v24 = vrot.slane %v5726_v44, 4  ;;  %v5728_v45 = vpop.f32.mrb[11].mxu1 }
 0xf2e   :  { %v5734_v32 = vrot.slane %v5728_v45, 4 }
 0xf2f   :  { %v5737_v25 = vadd.f32 %v5733_v24, %v5079_v38 }
 0xf30   :  { %v5738_v17 = vadd.f32 %v5734_v32, %v5080_v29  ;;  %v7270_v32 = vld [vmem:[%s10045_s1 + $0xc] sm:$0x3] }
 0xf31   :  { %v7268_v28 = vmul.f32 -1.442695, %v5737_v25  ;;  %vm5771_vm9 = vcmp.gt.f32.partialorder %v7270_v32, 0.0  ;;  %v6504_v32 = vld [vmem:[#allocation3 + $0xa] sm:$0x3] }
 0xf32   :  { %v7269_v53 = vmul.f32 -1.442695, %v5738_v17 }
 0xf33   :  { %8472 = vpow2.f32 %v7268_v28 }
 0xf34   :  { %8474 = vpow2.f32 %v7269_v53 }
 0xf35   :  { %8476 = vtanh.f32 %v5738_v17 }
 0xf3d   :  { %v8473_v8 = vpop.eup %8472 }
 0xf3e   :  { %v8475_v40 = vpop.eup %8474  ;;  %v5747_v46 = vadd.f32 1.0, %v8473_v8 }
 0xf3f   :  { %v5748_v36 = vadd.f32 1.0, %v8475_v40  ;;  %v8477_v1 = vpop.eup %8476 }
 0xf41   :  { %8478 = vrcp.f32 %v5748_v36 }
 0xf42   :  { %8480 = vrcp.f32 %v5747_v46 }
 0xf4b   :  { %v8479_v0 = vpop.eup %8478 }
 0xf4c   :  { %v8481_v57 = vpop.eup %8480  ;;  %v5754_v42 = vsel %vm817_vm1, %v8477_v1, %v8479_v0 }
 0xf4d   :  { %v5761_v23 = vmul.f32 %v8481_v57, %v5754_v42  ;;  %v5760_v5 = vmul.f32 %v8481_v57, %v5758_v47 }
 0xf4f   :  { %5763 = vrot.lane.b32.xlu0 %v5761_v23, %s8613_s4 }
 0xfc1   :  { %v5764_v19 = vpop.permute.xlu0 %5763 }
 0xfc2   :  { %v5766_v20 = vadd.f32 %v5764_v19, %v5760_v5  ;;  %v6503_v5 = vld [vmem:[#allocation3 + $0x8] sm:$0x3]  ;;  %v6501_v19 = vld [vmem:[#allocation3 + $0x4] sm:$0x3] }
 0xfc4   :  { %8482 = vtanh.f32 %v5766_v20  ;;  %v5780_v44 = vrot.slane %v5766_v20, 4 }
 0xfc6   :  { %5781 = vrot.lane.b32.xlu0 %v5780_v44, %s8613_s4 }
 0xfce   :  { %v8483_v24 = vpop.eup %8482 }
 0xfcf   :  { %v5768_v45 = vmul.f32 %v8483_v24, %v5754_v42  ;;  %v6502_v42 = vld [vmem:[#allocation3 + $0x6] sm:$0x3] }
 0xfd1   :  { %v5773_v38 = vrot.slane %v5768_v45, 4 }
 0xfd3   :  { %5774 = vrot.lane.b32.xlu1 %v5773_v38, %s8613_s4 }
0x1038   :  { %v5782_v25 = vpop.permute.xlu0 %5781 }
0x1039   :  { %v5784_v29 = vsel %vm5771_vm9, %v5782_v25, %v9729_v63  ;;  %v6500_v63 = vld [vmem:[#allocation3 + $0x2] sm:$0x3] }
0x103a   :  { %v6470_v17 = vrot.slane %v5784_v29, 2 }
0x103c   :  { %6471 = vrot.lane.b32.xlu1 %v6470_v17, %s8613_s4 }
0x1045   :  { %v5775_v28 = vpop.permute.xlu1 %5774 }
0x1046   :  { %v5778_v53 = vsel %vm5771_vm9, %v5775_v28, %v9734_v6  ;;  %v9797_v8 = vsel %vm5771_vm9, %v5775_v28, 0.0 }
0x1047   :  { %v5796_v40 = vsel %vm88_vm0, %v5778_v53, 0  ;;  %5786 = vst.msk [vmem:[#allocation3 + $0xc] sm:$0x3] %vm1511_vm3, %v9797_v8 }
0x1048   :  { %v5879_v46 = vand.u32 4294901760, %v5796_v40 }
0x104a   :  { %v5880_v36 = vsub.f32 %v5796_v40, %v5879_v46 }
0x104c   :  { %v5881_v1 = vand.u32 4294901760, %v5880_v36 }
0x104e   :  { %v5882_v0 = vsub.f32 %v5880_v36, %v5881_v1  ;;  %v6505_v29 = vld [vmem:[#allocation3 + $0xc] sm:$0x3] }
0x1050   :  { %v5883_v57 = vand.u32 4294901760, %v5882_v0 }
0x1052   :  { %5884 = vmatmul.mubr.f32.vlgmr.msra.gmra.mrb[10].mxu0 %v5883_v57 }
0x1053   :  { %8159 = vmatpush1.bf16.msra.mxu0 %v9033_v26  ;;  %6034 = vmatprep.mubr.f32.mxu0 %v10132_v55 }
0x1054   :  { %8161 = vmatprep.subr.bf16.mxu0 %v9046_v60 }
0x1057   :  { %8163 = vmatpush1.bf16.msra.mxu0 %v9098_v59  ;;  %v5793_v59 = vld [vmem:[#allocation2 + $0x10] sm:$0xc0] }
0x1058   :  { %8165 = vmatprep.subr.bf16.mxu0 %v9114_v11 }
0x105b   :  { %8167 = vmatpush1.bf16.msra.mxu0 %v9120_v37  ;;  %v5794_v37 = vld [vmem:[#allocation2 + $0x18] sm:$0xc0] }
0x105c   :  { %8169 = vmatprep.subr.bf16.mxu0 %v9126_v31 }
0x105f   :  { %8171 = vmatpush1.bf16.msra.mxu0 %v9141_v52 }
0x1060   :  { %8173 = vmatprep.subr.bf16.mxu0 %v9138_v49 }
0x1062   :  { %6036 = vmatmul.mubr.f32.vlgmr.msra.gmra.mrb[10].mxu0 %v5879_v46 }
0x1063   :  { %8175 = vmatpush1.bf16.msra.mxu0 %v9147_v3  ;;  %6138 = vmatprep.mubr.f32.mxu0 %v10132_v55 }
0x1064   :  { %8177 = vmatprep.subr.bf16.mxu0 %v9153_v18 }
0x1067   :  { %8179 = vmatpush1.bf16.msra.mxu0 %v9164_v7 }
0x1068   :  { %8181 = vmatprep.subr.bf16.mxu0 %v9171_v33 }
0x106b   :  { %8183 = vmatpush1.bf16.msra.mxu0 %v9186_v51 }
0x106c   :  { %8185 = vmatprep.subr.bf16.mxu0 %v9191_v16 }
0x106f   :  { %8187 = vmatpush1.bf16.msra.mxu0 %v9205_v34 }
0x1070   :  { %8189 = vmatprep.subr.bf16.mxu0 %v8813_v4 }
0x1072   :  { %6141 = vmatmul.mubr.f32.vlgmr.msra.gmra.mrb[10].mxu0 %v5880_v36 }
0x1073   :  { %8191 = vmatpush1.bf16.msra.mxu0 %v10167_v48  ;;  %6227 = vmatprep.mubr.f32.mxu0 %v10132_v55 }
0x1074   :  { %8193 = vmatprep.subr.bf16.mxu0 %v10168_v62 }
0x1077   :  { %8195 = vmatpush1.bf16.msra.mxu0 %v10169_v2 }
0x1078   :  { %8197 = vmatprep.subr.bf16.mxu0 %v10171_v27 }
0x107b   :  { %8199 = vmatpush1.bf16.msra.mxu0 %v10172_v54 }
0x107c   :  { %8201 = vmatprep.subr.bf16.mxu0 %v10173_v56 }
0x107f   :  { %8203 = vmatpush1.bf16.msra.mxu0 %v10176_v21 }
0x1080   :  { %8205 = vmatprep.subr.bf16.mxu0 %v9244_v12 }
0x1082   :  { %6231 = vmatmul.mubr.f32.vlgmr.msra.gmra.mrb[10].mxu0 %v5881_v1 }
0x1083   :  { %8207 = vmatpush1.bf16.msra.mxu0 %v9253_v30  ;;  %6349 = vmatprep.mubr.f32.mxu0 %v10132_v55 }
0x1084   :  { %8209 = vmatprep.subr.bf16.mxu0 %v9261_v58 }
0x1087   :  { %8211 = vmatpush1.bf16.msra.mxu0 %v9270_v43 }
0x1088   :  { %8213 = vmatprep.subr.bf16.mxu0 %v9279_v13 }
0x108b   :  { %8215 = vmatpush1.bf16.msra.mxu0 %v9288_v39 }
0x108c   :  { %8217 = vmatprep.subr.bf16.mxu0 %v9296_v10 }
0x108f   :  { %8219 = vmatpush1.bf16.msra.mxu0 %v9306_v35  ;;  %v7273_v35 = vld [vmem:[%s10045_s1 + $0xe] sm:$0x3] }
0x1090   :  { %8221 = vmatprep.subr.bf16.mxu0 %v8813_v4  ;;  %vm6485_vm10 = vcmp.gt.f32.partialorder %v7273_v35, 0.0  ;;  %v6529_v35 = vld [vmem:[%s10045_s1 + $0xc] sm:$0x3] }
0x1091   :  { %vm6584_vm13 = vcmp.gt.f32.partialorder %v6529_v35, 0.0 }
0x1092   :  { %6351 = vmatmul.mubr.f32.vlgmr.msra.gmra.mrb[10].mxu0 %v5879_v46 }
0x1093   :  { %8223 = vmatpush1.bf16.msra.mxu0 %v10167_v48  ;;  %6437 = vmatprep.mubr.f32.mxu0 %v10132_v55 }
0x1094   :  { %8225 = vmatprep.subr.bf16.mxu0 %v10168_v62 }
0x1097   :  { %8227 = vmatpush1.bf16.msra.mxu0 %v10169_v2 }
0x1098   :  { %8229 = vmatprep.subr.bf16.mxu0 %v10171_v27 }
0x109b   :  { %8231 = vmatpush1.bf16.msra.mxu0 %v10172_v54 }
0x109c   :  { %8233 = vmatprep.subr.bf16.mxu0 %v10173_v56 }
0x109f   :  { %8235 = vmatpush1.bf16.msra.mxu0 %v10176_v21 }
0x10a2   :  { %6439 = vmatmul.mubr.f32.vlgmr.msra.gmra.mrb[10].mxu0 %v5879_v46 }
0x10ae   :  { %v6472_v27 = vpop.permute.xlu1 %6471 }
0x1175   :  { %v6440_v26 = vpop.f32.mrb[10].mxu0 }
0x1176   :  { %v6447_v4 = vrot.slane %v6440_v26, 2  ;;  %v6442_v60 = vpop.f32.mrb[11].mxu0 }
0x1177   :  { %v6448_v51 = vrot.slane %v6442_v60, 2 }
0x1178   :  { %v6451_v11 = vadd.f32 %v6447_v4, %v5793_v59 }
0x1179   :  { %v6452_v31 = vadd.f32 %v6448_v51, %v5794_v37 }
0x117a   :  { %v7271_v49 = vmul.f32 -1.442695, %v6451_v11 }
0x117b   :  { %v7272_v52 = vmul.f32 -1.442695, %v6452_v31 }
0x117c   :  { %8484 = vpow2.f32 %v7271_v49 }
0x117d   :  { %8486 = vpow2.f32 %v7272_v52 }
0x117e   :  { %8488 = vtanh.f32 %v6452_v31 }
0x1186   :  { %v8485_v3 = vpop.eup %8484 }
0x1187   :  { %v8487_v18 = vpop.eup %8486  ;;  %v6461_v7 = vadd.f32 1.0, %v8485_v3 }
0x1188   :  { %v6462_v33 = vadd.f32 1.0, %v8487_v18  ;;  %v8489_v16 = vpop.eup %8488 }
0x118a   :  { %8490 = vrcp.f32 %v6462_v33 }
0x118b   :  { %8492 = vrcp.f32 %v6461_v7 }
0x1194   :  { %v8491_v34 = vpop.eup %8490 }
0x1195   :  { %v8493_v48 = vpop.eup %8492  ;;  %v6468_v62 = vsel %vm817_vm1, %v8489_v16, %v8491_v34  ;;  %v6499_v16 = vld [vmem:[#allocation3] sm:$0x3] }
0x1196   :  { %v6475_v2 = vmul.f32 %v8493_v48, %v6468_v62  ;;  %v6474_v54 = vmul.f32 %v8493_v48, %v6472_v27 }
0x1198   :  { %6477 = vrot.lane.b32.xlu0 %v6475_v2, %s8613_s4 }
0x119c   :  { %1514 = vrot.lane.b32.xlu0 %v9356_v9, %s8614_s26 }
0x11a0   :  { %2941 = vrot.lane.b32.xlu0 %v9508_v15, %s8614_s26 }
0x11a4   :  { %4360 = vrot.lane.b32.xlu0 %v9660_v22, %s8614_s26 }
0x11a8   :  { %5788 = vrot.lane.b32.xlu0 %v9797_v8, %s8614_s26  ;;  %v7274_v8 = vld [vmem:[%s10049_s5] ss:$0 sm:$0xff] }
0x120a   :  { %v6478_v56 = vpop.permute.xlu0 %6477 }
0x120b   :  { %v6480_v12 = vadd.f32 %v6478_v56, %v6474_v54 }
0x120d   :  { %8494 = vtanh.f32 %v6480_v12 }
0x120e   :  { %v1515_v21 = vpop.permute.xlu0 %1514 }
0x120f   :  { %1518 = vst.msk [vmem:[#allocation4 + $0xe] sm:$0x3] %vm1511_vm3, %v1515_v21  ;;  %v8615_v21 = vmov 0  }
0x1210   :  { %8399 = vset.pattern.permute.xlu0 %v8615_v21  ;;  %8398 = vset.pattern.permute.xlu1 %v8615_v21 }
0x1212   :  { %v2942_v30 = vpop.permute.xlu0 %2941 }
0x1213   :  { %2945 = vst.msk [vmem:[#allocation4 + $0xa] sm:$0x3] %vm1511_vm3, %v2942_v30 }
0x1216   :  { %v4361_v58 = vpop.permute.xlu0 %4360  ;;  %v6514_v7 = vld [vmem:[#allocation4 + $0xe] sm:$0x3] }
0x1217   :  { %v8495_v43 = vpop.eup %8494  ;;  %4364 = vst.msk [vmem:[#allocation4 + $0x6] sm:$0x3] %vm1511_vm3, %v4361_v58 }
0x1218   :  { %v6482_v13 = vmul.f32 %v8495_v43, %v6468_v62 }
0x121a   :  { %v5789_v39 = vpop.permute.xlu0 %5788  ;;  %v6487_v10 = vrot.slane %v6482_v13, 6  ;;  %v6512_v24 = vld [vmem:[#allocation4 + $0xa] sm:$0x3] }
0x121b   :  { %5792 = vst.msk [vmem:[#allocation4 + $0x2] sm:$0x3] %vm1511_vm3, %v5789_v39  ;;  %v9879_v25 = vadd.f32 %v6512_v24, %v6504_v32  ;;  %v6527_v39 = vld [vmem:[%s10045_s1 + $0x8] sm:$0x3] }
0x121c   :  { %6488 = vrot.lane.b32.xlu1 %v6487_v10, %s8613_s4  ;;  %v6528_v10 = vld [vmem:[%s10045_s1 + $0xa] sm:$0x3]  ;;  %vm6582_vm11 = vcmp.gt.f32.partialorder %v6527_v39, 0.0 }
0x121d   :  { %vm6583_vm12 = vcmp.gt.f32.partialorder %v6528_v10, 0.0 }
0x121e   :  { %v6510_v6 = vld [vmem:[#allocation4 + $0x6] sm:$0x3] }
0x121f   :  { %v9870_v47 = vadd.f32 %v6510_v6, %v6502_v42 }
0x1220   :  { %2227 = vrot.lane.b32.xlu1 %v9432_v50, %s8614_s26 }
0x1224   :  { %3655 = vrot.lane.b32.xlu1 %v9584_v14, %s8614_s26  ;;  %v6508_v14 = vld [vmem:[#allocation4 + $0x2] sm:$0x3] }
0x1228   :  { %5074 = vrot.lane.b32.xlu1 %v9736_v61, %s8614_s26  ;;  %v9868_v61 = vadd.f32 %v6508_v14, %v6500_v63  ;;  %v6530_v63 = vld [vmem:[%s10045_s1 + $0xe] sm:$0x3] }
0x1229   :  { %vm6585_vm4 = vcmp.gt.f32.partialorder %v6530_v63, 0.0 }
0x122a   :  { %8496 = vtanh.f32 %v9868_v61 }
0x122b   :  { %8498 = vtanh.f32 %v9870_v47 }
0x1234   :  { %v8497_v28 = vpop.eup %8496 }
0x1235   :  { %v8499_v53 = vpop.eup %8498  ;;  %v6547_v46 = vmul.f32 %v8497_v28, %v7274_v8 }
0x1236   :  { %v6549_v57 = vmul.f32 %v8499_v53, %v7274_v8 }
0x1237   :  { %v6557_v4 = vsel %vm1511_vm3, %v6547_v46, 0.0 }
0x1238   :  { %v6563_v51 = vsel %vm1511_vm3, %v6549_v57, 0.0 }
0x128e   :  { %v6489_v41 = vpop.permute.xlu1 %6488 }
0x128f   :  { %v6491_v9 = vsel %vm6485_vm10, %v6489_v41, 0.0  ;;  %v6523_v41 = vld [vmem:[%s10045_s1] sm:$0x3] }
0x1290   :  { %6493 = vst.msk [vmem:[#allocation3 + $0xe] sm:$0x3] %vm1511_vm3, %v6491_v9  ;;  %6495 = vrot.lane.b32.xlu1 %v6491_v9, %s8614_s26  ;;  %v6525_v9 = vld [vmem:[%s10045_s1 + $0x4] sm:$0x3]  ;;  %vm6578_vm14 = vcmp.gt.f32.partialorder %v6523_v41, 0.0 }
0x1291   :  { %vm6580_vm0 = vcmp.gt.f32.partialorder %v6525_v9, 0.0 }
0x1292   :  { %v2228_v15 = vpop.permute.xlu1 %2227 }
0x1293   :  { %2231 = vst.msk [vmem:[#allocation4 + $0xc] sm:$0x3] %vm1511_vm3, %v2228_v15 }
0x1296   :  { %v3656_v22 = vpop.permute.xlu1 %3655 }
0x1297   :  { %3659 = vst.msk [vmem:[#allocation4 + $0x8] sm:$0x3] %vm1511_vm3, %v3656_v22  ;;  %v6506_v18 = vld [vmem:[#allocation3 + $0xe] sm:$0x3]  ;;  %v6524_v22 = vld [vmem:[%s10045_s1 + $0x2] sm:$0x3] }
0x1298   :  { %v9896_v33 = vadd.f32 %v6514_v7, %v6506_v18  ;;  %vm6579_vm1 = vcmp.gt.f32.partialorder %v6524_v22, 0.0 }
0x129a   :  { %v5075_v50 = vpop.permute.xlu1 %5074  ;;  %v6513_v38 = vld [vmem:[#allocation4 + $0xc] sm:$0x3] }
0x129b   :  { %5078 = vst.msk [vmem:[#allocation4 + $0x4] sm:$0x3] %vm1511_vm3, %v5075_v50  ;;  %v9882_v17 = vadd.f32 %v6513_v38, %v6505_v29  ;;  %v6526_v50 = vld [vmem:[%s10045_s1 + $0x6] sm:$0x3] }
0x129c   :  { %vm6581_vm2 = vcmp.gt.f32.partialorder %v6526_v50, 0.0 }
0x129e   :  { %v6511_v23 = vld [vmem:[#allocation4 + $0x8] sm:$0x3] }
0x129f   :  { %v9873_v44 = vadd.f32 %v6511_v23, %v6503_v5 }
0x12a2   :  { %v6509_v20 = vld [vmem:[#allocation4 + $0x4] sm:$0x3] }
0x12a3   :  { %v9875_v45 = vadd.f32 %v6509_v20, %v6501_v19 }
0x12a5   :  { %8500 = vtanh.f32 %v9875_v45 }
0x12a6   :  { %8502 = vtanh.f32 %v9873_v44 }
0x12a7   :  { %8504 = vtanh.f32 %v9879_v25 }
0x12a8   :  { %8506 = vtanh.f32 %v9882_v17 }
0x12a9   :  { %8508 = vtanh.f32 %v9896_v33 }
0x12af   :  { %v8501_v40 = vpop.eup %8500 }
0x12b0   :  { %v8503_v36 = vpop.eup %8502  ;;  %v6548_v1 = vmul.f32 %v8501_v40, %v7274_v8 }
0x12b1   :  { %v8505_v26 = vpop.eup %8504  ;;  %v6550_v60 = vmul.f32 %v8503_v36, %v7274_v8 }
0x12b2   :  { %v6560_v0 = vsel %vm1511_vm3, %v6548_v1, 0.0  ;;  %v8507_v59 = vpop.eup %8506  ;;  %v6551_v11 = vmul.f32 %v8505_v26, %v7274_v8 }
0x12b3   :  { %6561 = vadd.xlane.f32.xlu0 %v6560_v0  ;;  %v6566_v37 = vsel %vm1511_vm3, %v6550_v60, 0.0  ;;  %v6552_v31 = vmul.f32 %v8507_v59, %v7274_v8  ;;  %v8509_v62 = vpop.eup %8508 }
0x12b4   :  { %6558 = vadd.xlane.f32.xlu1 %v6557_v4  ;;  %v6569_v49 = vsel %vm1511_vm3, %v6551_v11, 0.0  ;;  %v6553_v56 = vmul.f32 %v8509_v62, %v7274_v8 }
0x12b5   :  { %v6572_v52 = vsel %vm1511_vm3, %v6552_v31, 0.0 }
0x12b6   :  { %v6575_v12 = vsel %vm1511_vm3, %v6553_v56, 0.0 }
0x12b7   :  { %6564 = vadd.xlane.f32.xlu0 %v6563_v51 }
0x12b8   :  { %6567 = vadd.xlane.f32.xlu1 %v6566_v37 }
0x12bb   :  { %6570 = vadd.xlane.f32.xlu0 %v6569_v49 }
0x12bc   :  { %6573 = vadd.xlane.f32.xlu1 %v6572_v52 }
0x1302   :  { %v6496_v3 = vpop.permute.xlu1 %6495 }
0x1303   :  { %6498 = vst.msk [vmem:[#allocation4] sm:$0x3] %vm1511_vm3, %v6496_v3 }
0x130a   :  { %v6507_v34 = vld [vmem:[#allocation4] sm:$0x3] }
0x130b   :  { %v9898_v48 = vadd.f32 %v6507_v34, %v6499_v16 }
0x130d   :  { %8510 = vtanh.f32 %v9898_v48 }
0x1317   :  { %v8511_v2 = vpop.eup %8510 }
0x1318   :  { %v6546_v27 = vmul.f32 %v8511_v2, %v7274_v8 }
0x131a   :  { %v6554_v54 = vsel %vm1511_vm3, %v6546_v27, 0.0 }
0x131b   :  { %6555 = vadd.xlane.f32.xlu0 %v6554_v54 }
0x131f   :  { %6576 = vadd.xlane.f32.xlu0 %v6575_v12 }
0x1340   :  { %v6562_v30 = vpop.xlane.xlu0 %6561 }
0x1341   :  { %v6559_v58 = vpop.xlane.xlu1 %6558  ;;  %v6588_v24 = vsel %vm6580_vm0, %v6562_v30, -1e+30 }
0x1342   :  { %v6587_v38 = vsel %vm6579_vm1, %v6559_v58, -1e+30  ;;  %v6597_v36 = vsel %vm6594_vm15, %v6588_v24, -inf }
0x1343   :  { %v6596_v1 = vsel %vm6594_vm15, %v6587_v38, -inf }
0x1344   :  { %v6565_v43 = vpop.xlane.xlu0 %6564 }
0x1345   :  { %v6568_v13 = vpop.xlane.xlu1 %6567  ;;  %v6589_v32 = vsel %vm6581_vm2, %v6565_v43, -1e+30 }
0x1346   :  { %v6590_v6 = vsel %vm6582_vm11, %v6568_v13, -1e+30  ;;  %v6598_v0 = vsel %vm6594_vm15, %v6589_v32, -inf }
0x1347   :  { %v6599_v29 = vsel %vm6594_vm15, %v6590_v6, -inf }
0x1348   :  { %v6571_v15 = vpop.xlane.xlu0 %6570 }
0x1349   :  { %v6574_v14 = vpop.xlane.xlu1 %6573  ;;  %v6591_v23 = vsel %vm6583_vm12, %v6571_v15, -1e+30 }
0x134a   :  { %v6592_v5 = vsel %vm6584_vm13, %v6574_v14, -1e+30  ;;  %v6601_v28 = vsel %vm6594_vm15, %v6591_v23, -inf }
0x134b   :  { %v6603_v53 = vsel %vm6594_vm15, %v6592_v5, -inf  ;;  %v6602_v26 = vmax.f32 %v6596_v1, %v6601_v28 }
0x134c   :  { %v6604_v4 = vmax.f32 %v6597_v36, %v6603_v53 }
0x13a8   :  { %v6556_v42 = vpop.xlane.xlu0 %6555 }
0x13a9   :  { %v6586_v19 = vsel %vm6578_vm14, %v6556_v42, -1e+30 }
0x13aa   :  { %v6595_v20 = vsel %vm6594_vm15, %v6586_v19, -inf }
0x13ab   :  { %v6600_v40 = vmax.f32 %v6595_v20, %v6599_v29 }
0x13ac   :  { %v6577_v8 = vpop.xlane.xlu0 %6576 }
0x13ad   :  { %v6593_v46 = vsel %vm6585_vm4, %v6577_v8, -1e+30  ;;  %v6607_v59 = vmax.f32 %v6600_v40, %v6602_v26  ;;  %v6723_v26 = vld [vmem:[%s10050_s6 + $0x8] sm:$0xff] }
0x13ae   :  { %v6605_v57 = vsel %vm6594_vm15, %v6593_v46, -inf }
0x13af   :  { %v6606_v60 = vmax.f32 %v6598_v0, %v6605_v57  ;;  %v6722_v57 = vld [vmem:[%s10050_s6] sm:$0xff] }
0x13b1   :  { %v6608_v51 = vmax.f32 %v6604_v4, %v6606_v60  ;;  %v6724_v4 = vld [vmem:[%s10050_s6 + $0x10] sm:$0xff]  ;;  %v8616_v60 = vmov 0.0|0.0  }
0x13b2   :  { %8236 = vmatprep.subr.bf16.mxu1 %v8616_v60 }
0x13b3   :  { %v6609_v11 = vmax.f32 %v6607_v59, %v6608_v51  ;;  %v6738_v59 = vand.u32 4294901760, %v6722_v57  ;;  %v6741_v51 = vand.u32 4294901760, %v6723_v26 }
0x13b5   :  { %v6610_v37 = vsub.f32 %v6586_v19, %v6609_v11  ;;  %v6611_v31 = vsub.f32 %v6587_v38, %v6609_v11  ;;  %v6612_v49 = vsub.f32 %v6588_v24, %v6609_v11  ;;  %v6613_v52 = vsub.f32 %v6589_v32, %v6609_v11 }
0x13b6   :  { %v6614_v3 = vsub.f32 %v6590_v6, %v6609_v11  ;;  %v6615_v34 = vsub.f32 %v6591_v23, %v6609_v11  ;;  %v6616_v2 = vsub.f32 %v6592_v5, %v6609_v11  ;;  %v6617_v54 = vsub.f32 %v6593_v46, %v6609_v11  ;;  %v6725_v11 = vld [vmem:[%s10050_s6 + $0x18] sm:$0xff] }
0x13b7   :  { %v6618_v18 = vmul.f32 1.442695, %v6610_v37  ;;  %v6620_v7 = vmul.f32 1.442695, %v6611_v31  ;;  %v6622_v16 = vmul.f32 1.442695, %v6612_v49  ;;  %v9959_v49 = vpack.c.bf16 %v6741_v51, %v6738_v59 }
0x13b8   :  { %v6624_v62 = vmul.f32 1.442695, %v6613_v52  ;;  %v6626_v27 = vmul.f32 1.442695, %v6614_v3  ;;  %v6628_v56 = vmul.f32 1.442695, %v6615_v34  ;;  %v9961_v52 = vsub.f32 %v6722_v57, %v6738_v59 }
0x13b9   :  { %8512 = vpow2.f32 %v6618_v18  ;;  %v6630_v12 = vmul.f32 1.442695, %v6616_v2  ;;  %v6632_v21 = vmul.f32 1.442695, %v6617_v54  ;;  %v6744_v37 = vand.u32 4294901760, %v6724_v4  ;;  %8238 = vmatpush3.bf16.msra.mxu1 %v9959_v49 }
0x13ba   :  { %8514 = vpow2.f32 %v6620_v7  ;;  %v6747_v31 = vand.u32 4294901760, %v6725_v11  ;;  %v9963_v3 = vsub.f32 %v6723_v26, %v6741_v51  ;;  %8239 = vmatprep.subr.bf16.mxu1 %v8616_v60  ;;  %v6819_v34 = vand.u32 4294901760, %v9961_v52 }
0x13bb   :  { %8516 = vpow2.f32 %v6622_v16  ;;  %v9965_v18 = vsub.f32 %v6724_v4, %v6744_v37 }
0x13bc   :  { %8518 = vpow2.f32 %v6624_v62  ;;  %v9967_v7 = vsub.f32 %v6725_v11, %v6747_v31  ;;  %v9970_v16 = vpack.c.bf16 %v6747_v31, %v6744_v37  ;;  %v6826_v62 = vand.u32 4294901760, %v9963_v3 }
0x13bd   :  { %8520 = vpow2.f32 %v6626_v27  ;;  %v6820_v2 = vsub.f32 %v9961_v52, %v6819_v34  ;;  %v6833_v54 = vand.u32 4294901760, %v9965_v18 }
0x13be   :  { %8522 = vpow2.f32 %v6628_v56  ;;  %8241 = vmatpush3.bf16.msra.mxu1 %v9970_v16  ;;  %v6827_v27 = vsub.f32 %v9963_v3, %v6826_v62  ;;  %v6840_v56 = vand.u32 4294901760, %v9967_v7 }
0x13bf   :  { %8524 = vpow2.f32 %v6630_v12  ;;  %8242 = vmatprep.subr.bf16.mxu1 %v8616_v60  ;;  %v6821_v12 = vand.u32 4294901760, %v6820_v2 }
0x13c0   :  { %8526 = vpow2.f32 %v6632_v21  ;;  %v6828_v21 = vand.u32 4294901760, %v6827_v27 }
0x13c3   :  { %v8513_v30 = vpop.eup %8512 }
0x13c4   :  { %v8515_v58 = vpop.eup %8514  ;;  %v6634_v43 = vsel %vm6594_vm15, %v8513_v30, 0.0 }
0x13c5   :  { %v8517_v13 = vpop.eup %8516  ;;  %v6635_v39 = vsel %vm6594_vm15, %v8515_v58, 0.0 }
0x13c6   :  { %v8519_v10 = vpop.eup %8518  ;;  %v6636_v35 = vadd.f32 %v6635_v39, %v6634_v43  ;;  %v6637_v41 = vsel %vm6594_vm15, %v8517_v13, 0.0  ;;  %v8243_v43 = vpack.c.bf16 %v6828_v21, %v6821_v12 }
0x13c7   :  { %v8521_v9 = vpop.eup %8520  ;;  %v6639_v22 = vsel %vm6594_vm15, %v8519_v10, 0.0 }
0x13c8   :  { %v6638_v15 = vadd.f32 %v6637_v41, %v6636_v35  ;;  %v8523_v50 = vpop.eup %8522  ;;  %v6641_v63 = vsel %vm6594_vm15, %v8521_v9, 0.0  ;;  %v8249_v35 = vpack.c.bf16 %v9963_v3, %v9961_v52  ;;  %v8252_v41 = vpack.c.bf16 %v9967_v7, %v9965_v18 }
0x13c9   :  { %v8525_v6 = vpop.eup %8524  ;;  %v6643_v23 = vsel %vm6594_vm15, %v8523_v50, 0.0 }
0x13ca   :  { %v6640_v14 = vadd.f32 %v6639_v22, %v6638_v15  ;;  %v8527_v5 = vpop.eup %8526  ;;  %v6645_v20 = vsel %vm6594_vm15, %v8525_v6, 0.0  ;;  %v8264_v15 = vpack.c.bf16 %v6840_v56, %v6833_v54 }
0x13cb   :  { %v6647_v38 = vsel %vm6594_vm15, %v8527_v5, 0.0 }
0x13cc   :  { %v6642_v42 = vadd.f32 %v6641_v63, %v6640_v14 }
0x13ce   :  { %v6644_v19 = vadd.f32 %v6643_v23, %v6642_v42 }
0x13d0   :  { %v6646_v24 = vadd.f32 %v6645_v20, %v6644_v19 }
0x13d2   :  { %v6648_v32 = vadd.f32 %v6647_v38, %v6646_v24 }
0x13d4   :  { %8528 = vrcp.f32 %v6648_v32 }
0x13de   :  { %v8529_v29 = vpop.eup %8528 }
0x13df   :  { %v6651_v28 = vmul.f32 %v8529_v29, %v8515_v58  ;;  %v6650_v53 = vmul.f32 %v8529_v29, %v8513_v30  ;;  %v6652_v8 = vmul.f32 %v8529_v29, %v8517_v13  ;;  %v6653_v40 = vmul.f32 %v8529_v29, %v8519_v10 }
0x13e0   :  { %v6654_v46 = vmul.f32 %v8529_v29, %v8521_v9  ;;  %v6655_v36 = vmul.f32 %v8529_v29, %v8523_v50  ;;  %v6656_v1 = vmul.f32 %v8529_v29, %v8525_v6  ;;  %v6657_v0 = vmul.f32 %v8529_v29, %v8527_v5 }
0x13e1   :  { %6665 = vperm.xlu0 %8399, %v6651_v28   ;;  %6660 = vperm.xlu1 %8398, %v6650_v53   ;;  %v6834_v30 = vsub.f32 %v9965_v18, %v6833_v54  ;;  %v6841_v58 = vsub.f32 %v9967_v7, %v6840_v56  ;;  %v8261_v9 = vpack.c.bf16 %v6826_v62, %v6819_v34 }
0x13e3   :  { %v6835_v13 = vand.u32 4294901760, %v6834_v30  ;;  %v6842_v39 = vand.u32 4294901760, %v6841_v58 }
0x13e5   :  { %6670 = vperm.xlu1 %8398, %v6652_v8   ;;  %v8246_v10 = vpack.c.bf16 %v6842_v39, %v6835_v13 }
0x13e9   :  { %6675 = vperm.xlu1 %8398, %v6653_v40  }
0x13ed   :  { %6680 = vperm.xlu1 %8398, %v6654_v46  }
0x13f1   :  { %6685 = vperm.xlu1 %8398, %v6655_v36  }
0x13f5   :  { %6690 = vperm.xlu1 %8398, %v6656_v1  }
0x13f9   :  { %6695 = vperm.xlu1 %8398, %v6657_v0  }
0x1460   :  { %v6661_v22 = vpop.permute.xlu1 %6660  ;;  %v6666_v14 = vpop.permute.xlu0 %6665 }
0x1461   :  { %v6699_v6 = vmul.f32 %v6666_v14, %v9868_v61  ;;  %v6698_v42 = vmul.f32 %v6661_v22, %v9898_v48 }
0x1463   :  { %v6707_v19 = vsel %vm1511_vm3, %v6699_v6, 0.0  ;;  %v6706_v20 = vsel %vm1511_vm3, %v6698_v42, 0.0 }
0x1464   :  { %v6671_v50 = vpop.permute.xlu1 %6670  ;;  %v6708_v29 = vadd.f32 %v6707_v19, %v6706_v20 }
0x1465   :  { %v6700_v23 = vmul.f32 %v6671_v50, %v9875_v45 }
0x1467   :  { %v6709_v38 = vsel %vm1511_vm3, %v6700_v23, 0.0 }
0x1468   :  { %v6676_v63 = vpop.permute.xlu1 %6675  ;;  %v6710_v48 = vadd.f32 %v6709_v38, %v6708_v29 }
0x1469   :  { %v6701_v24 = vmul.f32 %v6676_v63, %v9870_v47 }
0x146b   :  { %v6711_v53 = vsel %vm1511_vm3, %v6701_v24, 0.0 }
0x146c   :  { %v6681_v5 = vpop.permute.xlu1 %6680  ;;  %v6712_v8 = vadd.f32 %v6711_v53, %v6710_v48 }
0x146d   :  { %v6702_v32 = vmul.f32 %v6681_v5, %v9873_v44 }
0x146f   :  { %v6713_v45 = vsel %vm1511_vm3, %v6702_v32, 0.0 }
0x1470   :  { %v6686_v28 = vpop.permute.xlu1 %6685  ;;  %v6714_v47 = vadd.f32 %v6713_v45, %v6712_v8 }
0x1471   :  { %v6703_v61 = vmul.f32 %v6686_v28, %v9879_v25 }
0x1473   :  { %v6715_v46 = vsel %vm1511_vm3, %v6703_v61, 0.0 }
0x1474   :  { %v6691_v40 = vpop.permute.xlu1 %6690  ;;  %v6716_v0 = vadd.f32 %v6715_v46, %v6714_v47 }
0x1475   :  { %v6704_v36 = vmul.f32 %v6691_v40, %v9882_v17 }
0x1477   :  { %v6717_v1 = vsel %vm1511_vm3, %v6704_v36, 0.0 }
0x1478   :  { %v6696_v44 = vpop.permute.xlu1 %6695  ;;  %v6718_v26 = vadd.f32 %v6717_v1, %v6716_v0 }
0x1479   :  { %v6705_v57 = vmul.f32 %v6696_v44, %v9896_v33  ;;  %v7275_v33 = vld [vmem:[%s10051_s7] ss:$0 sm:$0xff]  ;;  %s8580_s7 = scalar_lea.vmem %s7242_s2, 32 }
0x147a   :  { %p8581_p2 = scmp.ne.s32.totalorder %s7242_s2, %s8580_s7  ;;  %p8586_p4 = scmp.lt.s32.totalorder %s8580_s7, %s8580_s7 }
0x147b   :  { %v6719_v4 = vsel %vm1511_vm3, %v6705_v57, 0.0  ;;  %vm7222_vm3 = vcmask 33792  }
0x147c   :  { %v6720_v25 = vadd.f32 %v6719_v4, %v6718_v26  ;;  %p8587_p5 = por %p8586_p4, %p8585_p3 }
0x147e   :  { %8530 = vtanh.f32 %v6720_v25  ;;  %p8588_p6 = pnand %p8587_p5, %p8581_p2 }
0x1488   :  { %v8531_v59 = vpop.eup %8530 }
0x1489   :  { %v6735_v51 = vsel %vm6733_vm6, %v8531_v59, 0 }
0x148a   :  { %v6806_v11 = vand.u32 4294901760, %v6735_v51 }
0x148c   :  { %v6807_v37 = vsub.f32 %v6735_v51, %v6806_v11 }
0x148e   :  { %v6808_v31 = vand.u32 4294901760, %v6807_v37 }
0x1490   :  { %v6809_v52 = vsub.f32 %v6807_v37, %v6808_v31 }
0x1492   :  { %v6810_v17 = vand.u32 4294901760, %v6809_v52 }
0x1494   :  { %7315 = vmatmul.mubr.f32.vlgmr.msra.gmra.mrb[12].mxu1 %v6810_v17 }
0x1495   :  { %8244 = vmatpush3.bf16.msra.mxu1 %v8243_v43  ;;  %7325 = vmatprep.mubr.msk.f32.mxu1 %vm8617_vm5, %v10132_v55 }
0x1496   :  { %8245 = vmatprep.subr.bf16.mxu1 %v8616_v60 }
0x1499   :  { %8247 = vmatpush3.bf16.msra.mxu1 %v8246_v10 }
0x149a   :  { %8248 = vmatprep.subr.bf16.mxu1 %v8616_v60 }
0x149c   :  { %7326 = vmatmul.mubr.f32.vlgmr.msra.gmra.mrb[12].mxu1 %v6806_v11 }
0x149d   :  { %8250 = vmatpush3.bf16.msra.mxu1 %v8249_v35  ;;  %7336 = vmatprep.mubr.msk.f32.mxu1 %vm8617_vm5, %v10132_v55 }
0x149e   :  { %8251 = vmatprep.subr.bf16.mxu1 %v8616_v60 }
0x14a1   :  { %8253 = vmatpush3.bf16.msra.mxu1 %v8252_v41 }
0x14a2   :  { %8254 = vmatprep.subr.bf16.mxu1 %v8616_v60 }
0x14a4   :  { %7337 = vmatmul.mubr.f32.vlgmr.msra.gmra.mrb[12].mxu1 %v6807_v37 }
0x14a5   :  { %8256 = vmatpush3.bf16.msra.mxu1 %v9959_v49  ;;  %7347 = vmatprep.mubr.msk.f32.mxu1 %vm8617_vm5, %v10132_v55 }
0x14a6   :  { %8257 = vmatprep.subr.bf16.mxu1 %v8616_v60 }
0x14a9   :  { %8259 = vmatpush3.bf16.msra.mxu1 %v9970_v16 }
0x14aa   :  { %8260 = vmatprep.subr.bf16.mxu1 %v8616_v60 }
0x14ac   :  { %7348 = vmatmul.mubr.f32.vlgmr.msra.gmra.mrb[12].mxu1 %v6808_v31 }
0x14ad   :  { %8262 = vmatpush3.bf16.msra.mxu1 %v8261_v9  ;;  %7358 = vmatprep.mubr.msk.f32.mxu1 %vm8617_vm5, %v10132_v55 }
0x14ae   :  { %8263 = vmatprep.subr.bf16.mxu1 %v8616_v60 }
0x14b1   :  { %8265 = vmatpush3.bf16.msra.mxu1 %v8264_v15 }
0x14b2   :  { %8266 = vmatprep.subr.bf16.mxu1 %v8616_v60 }
0x14b4   :  { %7359 = vmatmul.mubr.f32.vlgmr.msra.gmra.mrb[12].mxu1 %v6806_v11 }
0x14b5   :  { %8268 = vmatpush3.bf16.msra.mxu1 %v9959_v49  ;;  %7369 = vmatprep.mubr.msk.f32.mxu1 %vm8617_vm5, %v10132_v55 }
0x14b6   :  { %8269 = vmatprep.subr.bf16.mxu1 %v8616_v60 }
0x14b9   :  { %8271 = vmatpush3.bf16.msra.mxu1 %v9970_v16 }
0x14bc   :  { %7370 = vmatmul.mubr.f32.vlgmr.msra.gmra.mrb[12].mxu1 %v6806_v11 }
0x158f   :  { %v7218_v3 = vpop.f32.mrb[12].mxu1 }
0x1590   :  { %v8280_v18 = vadd.f32 %v7275_v33, %v7218_v3  ;;  %v7371_v7 = vpop.f32.mrb[13].mxu1 }
0x1592   :  { %v7223_v34 = vsel %vm7222_vm3, %v8280_v18, -inf }
0x1593   :  { %7224 = vmax.xlane.f32.xlu1 %v7223_v34 }
0x1620   :  { %v7225_v49 = vpop.xlane.xlu1 %7224 }
0x1621   :  { %v7226_v62 = vsub.f32 %v8280_v18, %v7225_v49 }
0x1623   :  { %v7227_v2 = vmul.f32 1.442695, %v7226_v62 }
0x1625   :  { %8532 = vpow2.f32 %v7227_v2 }
0x162f   :  { %v8533_v55 = vpop.eup %8532 }
0x1630   :  { %v7229_v60 = vsel %vm7222_vm3, %v8533_v55, 0.0 }
0x1631   :  { %7230 = vadd.xlane.f32.xlu0 %v7229_v60 }
0x16be   :  { %v7231_v16 = vpop.xlane.xlu0 %7230 }
0x16bf   :  { %8534 = vrcp.f32 %v7231_v16 }
0x16c9   :  { %v8535_v27 = vpop.eup %8534 }
0x16ca   :  { %v7233_v54 = vmul.f32 %v8535_v27, %v8533_v55 }
0x16cc   :  { %7234 = vst.msk [vmem:[#allocation10] sm:$0x3] %vm7222_vm3, %v7233_v54 }
0x16cd   :  { %8591 = shalt.err (!%p8588_p6)
}
0x16ce   :  { %s8592_s3 = scalar_lea.hbm %s10052_s8, 32 }
0x16cf   :  { %p8593_p7 = scmp.ne.s32.totalorder %s10052_s8, %s8592_s3  ;;  %p8596_p8 = scmp.lt.u32.totalorder %s8592_s3, %s10052_s8 }
0x16d1   :  { %p8598_p9 = pnand %p8596_p8, %p8593_p7 }
0x16d3   :  { %8601 = shalt.err (!%p8598_p9)
}
0x16d4   :  { %7244 = dma.vmem_to_hbm [thread:$0]  %s7242_s2, 32, %s10052_s8, [#allocation7]  }
0x16d5   :  { %8606 = dma.done.wait [#allocation7], 32  }
0x16d6   :  { %8607 = vsyncadd [#allocation7], 4294967264 }
0x16d7   :  { %7248 = vsyncpa [#allocation6], 1 }
0x16d8   :  { %7249 = vsyncpa [#allocation9], 1 }
0x16d9   :  { %7250 = vsyncpa [#allocation7], 1 }

</bundles_post_ra>
